<compile_context>
chip_gen: v6e
topology: v6e:2x2x1
jax: 0.10.0
libtpu: 0.0.40
codegen_flags: <defaults>
</compile_context>

<pallas_src>
import functools

import jax
import jax.numpy as jnp
import numpy as np
from jax import lax
from jax.experimental import pallas as pl
from jax.experimental.pallas import tpu as pltpu


def _round_up(n, m):
    return ((n + m - 1) // m) * m


# ---------------------------------------------------------------------------
# Fused kernel: all LSTM layers + linear head in one invocation.
# ---------------------------------------------------------------------------
def _charlie_fused_kernel(x_ref, wih0_ref, wihr_ref, whh_ref, b_ref,
                          wout_ref, bout_ref,
                          y_ref, hn_ref, cn_ref,
                          gx_sc, hall_sc, h_sc, c_sc,
                          *, T, Bp, Hp, L, mm_dtype):
    f32 = jnp.float32

    # ---- Layer-0 input projection: one big MXU matmul, bias folded in. ------
    gx_sc[...] = (
        jnp.dot(x_ref[...], wih0_ref[...], preferred_element_type=f32)
        + b_ref[0]
    )

    for l in range(L):                        # static unroll over layers
        if l > 0:
            # Hoisted input projection for layer l from the previous layer's
            # full h_all (still resident in VMEM scratch). Bias folded in.
            gx_sc[...] = (
                jnp.dot(hall_sc[...].astype(mm_dtype), wihr_ref[l - 1],
                        preferred_element_type=f32)
                + b_ref[l]
            )

        h_sc[...] = jnp.zeros_like(h_sc)
        c_sc[...] = jnp.zeros_like(c_sc)

        def step(t, carry, l=l):
            row = pl.multiple_of(t * Bp, Bp)
            # Recurrent critical path: one (Bp,Hp) @ (Hp,4Hp) dot + elementwise.
            gates = gx_sc[pl.ds(row, Bp), :] + jnp.dot(
                h_sc[...].astype(mm_dtype), whh_ref[l],
                preferred_element_type=f32)
            # Gate order matches PyTorch: i, f, g, o. Slices are 128-lane aligned.
            i_g = jax.nn.sigmoid(gates[:, 0 * Hp:1 * Hp])
            f_g = jax.nn.sigmoid(gates[:, 1 * Hp:2 * Hp])
            g_g = jnp.tanh(gates[:, 2 * Hp:3 * Hp])
            o_g = jax.nn.sigmoid(gates[:, 3 * Hp:4 * Hp])
            c_new = f_g * c_sc[...] + i_g * g_g
            h_new = o_g * jnp.tanh(c_new)
            c_sc[...] = c_new
            h_sc[...] = h_new
            hall_sc[pl.ds(row, Bp), :] = h_new
            return carry

        lax.fori_loop(0, T, step, 0, unroll=True)

        hn_ref[l] = h_sc[...]
        cn_ref[l] = c_sc[...]

    # ---- Linear head over all (T*Bp) rows; lane-dense padded output. --------
    y_ref[...] = (
        jnp.dot(hall_sc[...].astype(mm_dtype), wout_ref[...],
                preferred_element_type=f32)
        + bout_ref[...]
    )


def _charlie_pallas(x2d, packed, *, T, Bp):
    d = packed["dims"]
    Hp, L = d["Hp"], d["L"]
    Dp_in, Dp_out = d["Dp_in"], d["Dp_out"]
    TB = T * Bp
    mm_dtype = packed["mm_dtype"]

    kernel = functools.partial(_charlie_fused_kernel,
                               T=T, Bp=Bp, Hp=Hp, L=L, mm_dtype=mm_dtype)

    return pl.pallas_call(
        kernel,
        in_specs=[
            pl.BlockSpec((TB, Dp_in), lambda: (0, 0)),                  # x (bf16)
            pl.BlockSpec((Dp_in, 4 * Hp), lambda: (0, 0)),              # W_ih layer 0
            pl.BlockSpec(packed["wihr"].shape, lambda: (0, 0, 0)),      # W_ih layers 1..L-1
            pl.BlockSpec((L, Hp, 4 * Hp), lambda: (0, 0, 0)),           # W_hh (all layers)
            pl.BlockSpec((L, 1, 4 * Hp), lambda: (0, 0, 0)),            # combined biases
            pl.BlockSpec((Hp, Dp_out), lambda: (0, 0)),                 # head weight
            pl.BlockSpec((1, Dp_out), lambda: (0, 0)),                  # head bias
        ],
        out_specs=[
            pl.BlockSpec((TB, Dp_out), lambda: (0, 0)),                 # y (lane-dense)
            pl.BlockSpec((L, Bp, Hp), lambda: (0, 0, 0)),               # h_n
            pl.BlockSpec((L, Bp, Hp), lambda: (0, 0, 0)),               # c_n
        ],
        out_shape=[
            jax.ShapeDtypeStruct((TB, Dp_out), jnp.float32),
            jax.ShapeDtypeStruct((L, Bp, Hp), jnp.float32),
            jax.ShapeDtypeStruct((L, Bp, Hp), jnp.float32),
        ],
        scratch_shapes=[
            pltpu.VMEM((TB, 4 * Hp), jnp.float32),   # gates_x of current layer
            pltpu.VMEM((TB, Hp), jnp.float32),       # h_all of current layer
            pltpu.VMEM((Bp, Hp), jnp.float32),       # h carry
            pltpu.VMEM((Bp, Hp), jnp.float32),       # c carry
        ],
        compiler_params=pltpu.CompilerParams(
            vmem_limit_bytes=32 * 1024 * 1024),      # explicit budget, safe on v5e/v6e/v7x
    )(x2d, packed["wih0"], packed["wihr"], packed["whh"], packed["b"],
      packed["wout"], packed["bout"])


# ---------------------------------------------------------------------------
# Charlie forward (batch-first interface like PyTorch).
# ---------------------------------------------------------------------------
def charlie_forward(x_btf, packed):
    """x_btf: (B, T, input_size). Returns (y (B, T, input_size), (h_n, c_n))."""
    d = packed["dims"]
    mm_dtype = packed["mm_dtype"]
    H, Hp, D_in, Dp_in = d["H"], d["Hp"], d["D_in"], d["Dp_in"]
    D_out, Dp_out = d["D_out"], d["Dp_out"]

    B, T, _ = x_btf.shape
    Bp = _round_up(B, 8)

    # Time-major, pad batch -> sublane multiple and features -> lane multiple.
    x_tbf = jnp.transpose(x_btf, (1, 0, 2)).astype(mm_dtype)
    x_pad = jnp.zeros((T, Bp, Dp_in), mm_dtype).at[:, :B, :D_in].set(x_tbf)
    x2d = x_pad.reshape(T * Bp, Dp_in)

    y_pad, hn_pad, cn_pad = _charlie_pallas(x2d, packed, T=T, Bp=Bp)

    y = y_pad.reshape(T, Bp, Dp_out)[:, :B, :D_out]
    y_btf = jnp.transpose(y, (1, 0, 2)).astype(jnp.float32)
    h_n = hn_pad[:, :B, :H]
    c_n = cn_pad[:, :B, :H]
    return y_btf, (h_n, c_n)


# ---------------------------------------------------------------------------
# Parameter init (PyTorch nn.LSTM / nn.Linear shapes) and kernel packing.
# ---------------------------------------------------------------------------
def init_params(key, input_size, hidden_units, layers_num):
    bound = 1.0 / np.sqrt(hidden_units)
    layers = []
    for l in range(layers_num):
        d_in = input_size if l == 0 else hidden_units
        key, k1, k2, k3, k4 = jax.random.split(key, 5)
        layers.append(dict(
            w_ih=jax.random.uniform(k1, (4 * hidden_units, d_in),
                                    jnp.float32, -bound, bound),
            w_hh=jax.random.uniform(k2, (4 * hidden_units, hidden_units),
                                    jnp.float32, -bound, bound),
            b_ih=jax.random.uniform(k3, (4 * hidden_units,),
                                    jnp.float32, -bound, bound),
            b_hh=jax.random.uniform(k4, (4 * hidden_units,),
                                    jnp.float32, -bound, bound),
        ))
    key, k5, k6 = jax.random.split(key, 3)
    out_w = jax.random.uniform(k5, (input_size, hidden_units),
                               jnp.float32, -bound, bound)
    out_b = jax.random.uniform(k6, (input_size,), jnp.float32, -bound, bound)
    return dict(layers=layers, out_w=out_w, out_b=out_b,
                input_size=input_size, hidden_units=hidden_units,
                layers_num=layers_num)


def _pad2(a, rows, cols):
    return jnp.zeros((rows, cols), a.dtype).at[:a.shape[0], :a.shape[1]].set(a)


def pack_params(raw, mm_dtype=jnp.bfloat16):
    """Transpose, pad (per-gate) to lane/sublane alignment, stack layers, cast
    matmul weights to mm_dtype (biases stay f32). Zero padding is exact."""
    H = raw["hidden_units"]
    L = raw["layers_num"]
    D_in = raw["input_size"]
    D_out = raw["out_w"].shape[0]
    Hp = _round_up(H, 128)
    Dp_in = _round_up(D_in, 128)
    Dp_out = _round_up(D_out, 128)

    def pad_gates(w_t, rows_p):
        # w_t: (d, 4H) transposed weight with gate order [i,f,g,o];
        # pad each gate block to Hp lanes so in-kernel slices are 128-aligned.
        blocks = [_pad2(w_t[:, g * H:(g + 1) * H], rows_p, Hp) for g in range(4)]
        return jnp.concatenate(blocks, axis=1)          # (rows_p, 4*Hp)

    def pad_bias(b4h):
        blocks = [jnp.zeros((Hp,), jnp.float32).at[:H].set(b4h[g * H:(g + 1) * H])
                  for g in range(4)]
        return jnp.concatenate(blocks).reshape(1, 4 * Hp)

    lp0 = raw["layers"][0]
    wih0 = pad_gates(lp0["w_ih"].T, Dp_in).astype(mm_dtype)          # (Dp_in, 4Hp)

    whh_list, b_list, wihr_list = [], [], []
    for l, lp in enumerate(raw["layers"]):
        whh_list.append(pad_gates(lp["w_hh"].T, Hp).astype(mm_dtype))
        b_list.append(pad_bias(lp["b_ih"] + lp["b_hh"]))             # bias folded once
        if l > 0:
            wihr_list.append(pad_gates(lp["w_ih"].T, Hp).astype(mm_dtype))

    whh = jnp.stack(whh_list)                                        # (L, Hp, 4Hp)
    b = jnp.stack(b_list)                                            # (L, 1, 4Hp)
    wihr = (jnp.stack(wihr_list) if wihr_list
            else jnp.zeros((1, Hp, 4 * Hp), mm_dtype))               # dummy if L == 1

    wout = _pad2(raw["out_w"].T, Hp, Dp_out).astype(mm_dtype)        # (Hp, Dp_out)
    bout = jnp.zeros((1, Dp_out), jnp.float32).at[:, :D_out].set(raw["out_b"][None, :])

    return dict(wih0=wih0, wihr=wihr, whh=whh, b=b, wout=wout, bout=bout,
                mm_dtype=mm_dtype,
                dims=dict(H=H, Hp=Hp, D_in=D_in, Dp_in=Dp_in,
                          D_out=D_out, Dp_out=Dp_out, L=L))


# ---------------------------------------------------------------------------
# Pure-JAX references. mm_dtype=None -> full fp32 (PyTorch semantics);
# mm_dtype=bf16 -> same matmul precision as the kernel (tight check).
# ---------------------------------------------------------------------------
def charlie_reference(x_btf, raw, mm_dtype=None):
    B, T, _ = x_btf.shape
    H = raw["hidden_units"]
    cast = (lambda a: a) if mm_dtype is None else (lambda a: a.astype(mm_dtype))

    layer_in = jnp.transpose(x_btf, (1, 0, 2))       # (T, B, D)
    h_ns, c_ns = [], []
    for lp in raw["layers"]:
        w_ih_t = cast(lp["w_ih"].T)
        w_hh_t = cast(lp["w_hh"].T)
        bias = (lp["b_ih"] + lp["b_hh"])[None, :]
        d_in = layer_in.shape[-1]
        gates_x = (jnp.dot(cast(layer_in).reshape(T * B, d_in), w_ih_t,
                           preferred_element_type=jnp.float32)
                   .reshape(T, B, 4 * H) + bias)

        def step(carry, gx, w_hh_t=w_hh_t):
            h, c = carry
            gates = gx + jnp.dot(cast(h), w_hh_t,
                                 preferred_element_type=jnp.float32)
            i = jax.nn.sigmoid(gates[:, :H])
            f = jax.nn.sigmoid(gates[:, H:2 * H])
            g = jnp.tanh(gates[:, 2 * H:3 * H])
            o = jax.nn.sigmoid(gates[:, 3 * H:])
            c = f * c + i * g
            h = o * jnp.tanh(c)
            return (h, c), h

        init = (jnp.zeros((B, H), jnp.float32), jnp.zeros((B, H), jnp.float32))
        (h_n, c_n), h_all = lax.scan(step, init, gates_x)
        h_ns.append(h_n)
        c_ns.append(c_n)
        layer_in = h_all

    y = (jnp.dot(cast(layer_in).reshape(T * B, H), cast(raw["out_w"].T),
                 preferred_element_type=jnp.float32)
         .reshape(T, B, -1) + raw["out_b"][None, None, :])
    return jnp.transpose(y, (1, 0, 2)), (jnp.stack(h_ns), jnp.stack(c_ns))


if __name__ == "__main__":
    input_size = 32
    hidden_units = 32
    layers_num = 2
    batch = 2
    seq = 8

    key = jax.random.PRNGKey(0)
    key, kx = jax.random.split(key)
    x = jax.random.normal(kx, (batch, seq, input_size), jnp.float32)

    raw = init_params(key, input_size, hidden_units, layers_num)
    packed = pack_params(raw, mm_dtype=jnp.bfloat16)

    y, (h_n, c_n) = charlie_forward(x, packed)
    jax.block_until_ready((y, h_n, c_n))

    # Tight check against a reference using the same bf16-matmul / f32-accum math.
    y_m, (h_m, c_m) = charlie_reference(x, raw, mm_dtype=jnp.bfloat16)
    np.testing.assert_allclose(np.asarray(y), np.asarray(y_m), rtol=5e-3, atol=5e-3)
    np.testing.assert_allclose(np.asarray(h_n), np.asarray(h_m), rtol=5e-3, atol=5e-3)
    np.testing.assert_allclose(np.asarray(c_n), np.asarray(c_m), rtol=5e-3, atol=5e-3)

    # Looser check against the exact fp32 (PyTorch-semantics) reference.
    y_f, _ = charlie_reference(x, raw, mm_dtype=None)
    np.testing.assert_allclose(np.asarray(y), np.asarray(y_f), rtol=3e-2, atol=3e-2)

    assert y.shape == (batch, seq, input_size)
    assert h_n.shape == (layers_num, batch, hidden_units)
    assert c_n.shape == (layers_num, batch, hidden_units)

    print("KERNEL_OK")
</pallas_src>

<mosaic_0001>
module attributes {stable_mosaic.version = 11 : i64} {
  func.func @_charlie_fused_kernel(%arg0: memref<64x128xbf16, #tpu.memory_space<vmem>>, %arg1: memref<128x512xbf16, #tpu.memory_space<vmem>>, %arg2: memref<1x128x512xbf16, #tpu.memory_space<vmem>>, %arg3: memref<2x128x512xbf16, #tpu.memory_space<vmem>>, %arg4: memref<2x1x512xf32, #tpu.memory_space<vmem>>, %arg5: memref<128x128xbf16, #tpu.memory_space<vmem>>, %arg6: memref<1x128xf32, #tpu.memory_space<vmem>>, %arg7: memref<64x128xf32, #tpu.memory_space<vmem>>, %arg8: memref<2x8x128xf32, #tpu.memory_space<vmem>>, %arg9: memref<2x8x128xf32, #tpu.memory_space<vmem>>, %arg10: memref<64x512xf32, #tpu.memory_space<vmem>>, %arg11: memref<64x128xf32, #tpu.memory_space<vmem>>, %arg12: memref<8x128xf32, #tpu.memory_space<vmem>>, %arg13: memref<8x128xf32, #tpu.memory_space<vmem>>) attributes {dimension_semantics = [], scalar_prefetch = 0 : i64, scratch_operands = 4 : i64, tpu.core_type = #tpu.core_type<tc>} {
    %c0 = arith.constant 0 : index
    %c0_0 = arith.constant 0 : index
    %0 = vector.load %arg0[%c0, %c0_0] : memref<64x128xbf16, #tpu.memory_space<vmem>>, vector<64x128xbf16>
    %c0_1 = arith.constant 0 : index
    %c0_2 = arith.constant 0 : index
    %1 = vector.load %arg1[%c0_1, %c0_2] : memref<128x512xbf16, #tpu.memory_space<vmem>>, vector<128x512xbf16>
    %cst = arith.constant dense<0.000000e+00> : vector<64x512xf32>
    %2 = tpu.matmul %0, %1, %cst {dimension_numbers = #tpu.dot_dimension_numbers<[1], [0], [0], [1], [0, 0, 1, 1], [], []>} : vector<64x128xbf16>, vector<128x512xbf16>, vector<64x512xf32> -> vector<64x512xf32>
    %c0_3 = arith.constant 0 : index
    %c0_4 = arith.constant 0 : index
    %c0_5 = arith.constant 0 : index
    %3 = vector.load %arg4[%c0_3, %c0_4, %c0_5] : memref<2x1x512xf32, #tpu.memory_space<vmem>>, vector<1x1x512xf32>
    %4 = vector.shape_cast %3 : vector<1x1x512xf32> to vector<1x512xf32>
    %5 = vector.broadcast %4 : vector<1x512xf32> to vector<64x512xf32>
    %6 = arith.addf %2, %5 : vector<64x512xf32>
    %c0_6 = arith.constant 0 : index
    %c0_7 = arith.constant 0 : index
    %7 = vector.load %arg10[%c0_6, %c0_7] : memref<64x512xf32, #tpu.memory_space<vmem>>, vector<64x512xf32>
    tpu.vector_store %arg10[%c0_6, %c0_7], %6 {strides = array<i32>} : memref<64x512xf32, #tpu.memory_space<vmem>>, vector<64x512xf32>,
    %cst_8 = arith.constant 0.000000e+00 : f32
    %8 = vector.broadcast %cst_8 : f32 to vector<8x128xf32>
    %c0_9 = arith.constant 0 : index
    %c0_10 = arith.constant 0 : index
    %9 = vector.load %arg12[%c0_9, %c0_10] : memref<8x128xf32, #tpu.memory_space<vmem>>, vector<8x128xf32>
    tpu.vector_store %arg12[%c0_9, %c0_10], %8 {strides = array<i32>} : memref<8x128xf32, #tpu.memory_space<vmem>>, vector<8x128xf32>,
    %cst_11 = arith.constant 0.000000e+00 : f32
    %10 = vector.broadcast %cst_11 : f32 to vector<8x128xf32>
    %c0_12 = arith.constant 0 : index
    %c0_13 = arith.constant 0 : index
    %11 = vector.load %arg13[%c0_12, %c0_13] : memref<8x128xf32, #tpu.memory_space<vmem>>, vector<8x128xf32>
    tpu.vector_store %arg13[%c0_12, %c0_13], %10 {strides = array<i32>} : memref<8x128xf32, #tpu.memory_space<vmem>>, vector<8x128xf32>,
    %c0_i32 = arith.constant 0 : i32
    %c8_i32 = arith.constant 8 : i32
    %12 = arith.muli %c0_i32, %c8_i32 : i32
    %13 = tpu.assume_multiple %12, 8 : i32
    %14 = arith.index_cast %13 : i32 to index
    %c0_14 = arith.constant 0 : index
    %15 = vector.load %arg10[%14, %c0_14] : memref<64x512xf32, #tpu.memory_space<vmem>>, vector<8x512xf32>
    %c0_15 = arith.constant 0 : index
    %c0_16 = arith.constant 0 : index
    %16 = vector.load %arg12[%c0_15, %c0_16] : memref<8x128xf32, #tpu.memory_space<vmem>>, vector<8x128xf32>
    %17 = arith.truncf %16 : vector<8x128xf32> to vector<8x128xbf16>
    %c0_17 = arith.constant 0 : index
    %c0_18 = arith.constant 0 : index
    %c0_19 = arith.constant 0 : index
    %18 = vector.load %arg3[%c0_17, %c0_18, %c0_19] : memref<2x128x512xbf16, #tpu.memory_space<vmem>>, vector<1x128x512xbf16>
    %19 = vector.shape_cast %18 : vector<1x128x512xbf16> to vector<128x512xbf16>
    %cst_20 = arith.constant dense<0.000000e+00> : vector<8x512xf32>
    %20 = tpu.matmul %17, %19, %cst_20 {dimension_numbers = #tpu.dot_dimension_numbers<[1], [0], [0], [1], [0, 0, 1, 1], [], []>} : vector<8x128xbf16>, vector<128x512xbf16>, vector<8x512xf32> -> vector<8x512xf32>
    %21 = arith.addf %15, %20 : vector<8x512xf32>
    %22 = vector.extract_strided_slice %21 {offsets = [0, 0], sizes = [8, 128], strides = [1, 1]} : vector<8x512xf32> to vector<8x128xf32>
    %23 = arith.negf %22 : vector<8x128xf32>
    %24 = math.exp %23 : vector<8x128xf32>
    %cst_21 = arith.constant 1.000000e+00 : f32
    %25 = vector.broadcast %cst_21 : f32 to vector<8x128xf32>
    %26 = arith.addf %25, %24 : vector<8x128xf32>
    %27 = arith.divf %25, %26 : vector<8x128xf32>
    %28 = vector.extract_strided_slice %21 {offsets = [0, 128], sizes = [8, 128], strides = [1, 1]} : vector<8x512xf32> to vector<8x128xf32>
    %29 = arith.negf %28 : vector<8x128xf32>
    %30 = math.exp %29 : vector<8x128xf32>
    %cst_22 = arith.constant 1.000000e+00 : f32
    %31 = vector.broadcast %cst_22 : f32 to vector<8x128xf32>
    %32 = arith.addf %31, %30 : vector<8x128xf32>
    %33 = arith.divf %31, %32 : vector<8x128xf32>
    %34 = vector.extract_strided_slice %21 {offsets = [0, 256], sizes = [8, 128], strides = [1, 1]} : vector<8x512xf32> to vector<8x128xf32>
    %35 = math.tanh %34 : vector<8x128xf32>
    %36 = vector.extract_strided_slice %21 {offsets = [0, 384], sizes = [8, 128], strides = [1, 1]} : vector<8x512xf32> to vector<8x128xf32>
    %37 = arith.negf %36 : vector<8x128xf32>
    %38 = math.exp %37 : vector<8x128xf32>
    %cst_23 = arith.constant 1.000000e+00 : f32
    %39 = vector.broadcast %cst_23 : f32 to vector<8x128xf32>
    %40 = arith.addf %39, %38 : vector<8x128xf32>
    %41 = arith.divf %39, %40 : vector<8x128xf32>
    %c0_24 = arith.constant 0 : index
    %c0_25 = arith.constant 0 : index
    %42 = vector.load %arg13[%c0_24, %c0_25] : memref<8x128xf32, #tpu.memory_space<vmem>>, vector<8x128xf32>
    %43 = arith.mulf %33, %42 : vector<8x128xf32>
    %44 = arith.mulf %27, %35 : vector<8x128xf32>
    %45 = arith.addf %43, %44 : vector<8x128xf32>
    %46 = math.tanh %45 : vector<8x128xf32>
    %47 = arith.mulf %41, %46 : vector<8x128xf32>
    %c0_26 = arith.constant 0 : index
    %c0_27 = arith.constant 0 : index
    %48 = vector.load %arg13[%c0_26, %c0_27] : memref<8x128xf32, #tpu.memory_space<vmem>>, vector<8x128xf32>
    tpu.vector_store %arg13[%c0_26, %c0_27], %45 {strides = array<i32>} : memref<8x128xf32, #tpu.memory_space<vmem>>, vector<8x128xf32>,
    %c0_28 = arith.constant 0 : index
    %c0_29 = arith.constant 0 : index
    %49 = vector.load %arg12[%c0_28, %c0_29] : memref<8x128xf32, #tpu.memory_space<vmem>>, vector<8x128xf32>
    tpu.vector_store %arg12[%c0_28, %c0_29], %47 {strides = array<i32>} : memref<8x128xf32, #tpu.memory_space<vmem>>, vector<8x128xf32>,
    %50 = arith.index_cast %13 : i32 to index
    %c0_30 = arith.constant 0 : index
    %51 = vector.load %arg11[%50, %c0_30] : memref<64x128xf32, #tpu.memory_space<vmem>>, vector<8x128xf32>
    tpu.vector_store %arg11[%50, %c0_30], %47 {strides = array<i32>} : memref<64x128xf32, #tpu.memory_space<vmem>>, vector<8x128xf32>,
    %c1_i32 = arith.constant 1 : i32
    %c8_i32_31 = arith.constant 8 : i32
    %52 = arith.muli %c1_i32, %c8_i32_31 : i32
    %53 = tpu.assume_multiple %52, 8 : i32
    %54 = arith.index_cast %53 : i32 to index
    %c0_32 = arith.constant 0 : index
    %55 = vector.load %arg10[%54, %c0_32] : memref<64x512xf32, #tpu.memory_space<vmem>>, vector<8x512xf32>
    %c0_33 = arith.constant 0 : index
    %c0_34 = arith.constant 0 : index
    %56 = vector.load %arg12[%c0_33, %c0_34] : memref<8x128xf32, #tpu.memory_space<vmem>>, vector<8x128xf32>
    %57 = arith.truncf %56 : vector<8x128xf32> to vector<8x128xbf16>
    %c0_35 = arith.constant 0 : index
    %c0_36 = arith.constant 0 : index
    %c0_37 = arith.constant 0 : index
    %58 = vector.load %arg3[%c0_35, %c0_36, %c0_37] : memref<2x128x512xbf16, #tpu.memory_space<vmem>>, vector<1x128x512xbf16>
    %59 = vector.shape_cast %58 : vector<1x128x512xbf16> to vector<128x512xbf16>
    %cst_38 = arith.constant dense<0.000000e+00> : vector<8x512xf32>
    %60 = tpu.matmul %57, %59, %cst_38 {dimension_numbers = #tpu.dot_dimension_numbers<[1], [0], [0], [1], [0, 0, 1, 1], [], []>} : vector<8x128xbf16>, vector<128x512xbf16>, vector<8x512xf32> -> vector<8x512xf32>
    %61 = arith.addf %55, %60 : vector<8x512xf32>
    %62 = vector.extract_strided_slice %61 {offsets = [0, 0], sizes = [8, 128], strides = [1, 1]} : vector<8x512xf32> to vector<8x128xf32>
    %63 = arith.negf %62 : vector<8x128xf32>
    %64 = math.exp %63 : vector<8x128xf32>
    %cst_39 = arith.constant 1.000000e+00 : f32
    %65 = vector.broadcast %cst_39 : f32 to vector<8x128xf32>
    %66 = arith.addf %65, %64 : vector<8x128xf32>
    %67 = arith.divf %65, %66 : vector<8x128xf32>
    %68 = vector.extract_strided_slice %61 {offsets = [0, 128], sizes = [8, 128], strides = [1, 1]} : vector<8x512xf32> to vector<8x128xf32>
    %69 = arith.negf %68 : vector<8x128xf32>
    %70 = math.exp %69 : vector<8x128xf32>
    %cst_40 = arith.constant 1.000000e+00 : f32
    %71 = vector.broadcast %cst_40 : f32 to vector<8x128xf32>
    %72 = arith.addf %71, %70 : vector<8x128xf32>
    %73 = arith.divf %71, %72 : vector<8x128xf32>
    %74 = vector.extract_strided_slice %61 {offsets = [0, 256], sizes = [8, 128], strides = [1, 1]} : vector<8x512xf32> to vector<8x128xf32>
    %75 = math.tanh %74 : vector<8x128xf32>
    %76 = vector.extract_strided_slice %61 {offsets = [0, 384], sizes = [8, 128], strides = [1, 1]} : vector<8x512xf32> to vector<8x128xf32>
    %77 = arith.negf %76 : vector<8x128xf32>
    %78 = math.exp %77 : vector<8x128xf32>
    %cst_41 = arith.constant 1.000000e+00 : f32
    %79 = vector.broadcast %cst_41 : f32 to vector<8x128xf32>
    %80 = arith.addf %79, %78 : vector<8x128xf32>
    %81 = arith.divf %79, %80 : vector<8x128xf32>
    %c0_42 = arith.constant 0 : index
    %c0_43 = arith.constant 0 : index
    %82 = vector.load %arg13[%c0_42, %c0_43] : memref<8x128xf32, #tpu.memory_space<vmem>>, vector<8x128xf32>
    %83 = arith.mulf %73, %82 : vector<8x128xf32>
    %84 = arith.mulf %67, %75 : vector<8x128xf32>
    %85 = arith.addf %83, %84 : vector<8x128xf32>
    %86 = math.tanh %85 : vector<8x128xf32>
    %87 = arith.mulf %81, %86 : vector<8x128xf32>
    %c0_44 = arith.constant 0 : index
    %c0_45 = arith.constant 0 : index
    %88 = vector.load %arg13[%c0_44, %c0_45] : memref<8x128xf32, #tpu.memory_space<vmem>>, vector<8x128xf32>
    tpu.vector_store %arg13[%c0_44, %c0_45], %85 {strides = array<i32>} : memref<8x128xf32, #tpu.memory_space<vmem>>, vector<8x128xf32>,
    %c0_46 = arith.constant 0 : index
    %c0_47 = arith.constant 0 : index
    %89 = vector.load %arg12[%c0_46, %c0_47] : memref<8x128xf32, #tpu.memory_space<vmem>>, vector<8x128xf32>
    tpu.vector_store %arg12[%c0_46, %c0_47], %87 {strides = array<i32>} : memref<8x128xf32, #tpu.memory_space<vmem>>, vector<8x128xf32>,
    %90 = arith.index_cast %53 : i32 to index
    %c0_48 = arith.constant 0 : index
    %91 = vector.load %arg11[%90, %c0_48] : memref<64x128xf32, #tpu.memory_space<vmem>>, vector<8x128xf32>
    tpu.vector_store %arg11[%90, %c0_48], %87 {strides = array<i32>} : memref<64x128xf32, #tpu.memory_space<vmem>>, vector<8x128xf32>,
    %c2_i32 = arith.constant 2 : i32
    %c8_i32_49 = arith.constant 8 : i32
    %92 = arith.muli %c2_i32, %c8_i32_49 : i32
    %93 = tpu.assume_multiple %92, 8 : i32
    %94 = arith.index_cast %93 : i32 to index
    %c0_50 = arith.constant 0 : index
    %95 = vector.load %arg10[%94, %c0_50] : memref<64x512xf32, #tpu.memory_space<vmem>>, vector<8x512xf32>
    %c0_51 = arith.constant 0 : index
    %c0_52 = arith.constant 0 : index
    %96 = vector.load %arg12[%c0_51, %c0_52] : memref<8x128xf32, #tpu.memory_space<vmem>>, vector<8x128xf32>
    %97 = arith.truncf %96 : vector<8x128xf32> to vector<8x128xbf16>
    %c0_53 = arith.constant 0 : index
    %c0_54 = arith.constant 0 : index
    %c0_55 = arith.constant 0 : index
    %98 = vector.load %arg3[%c0_53, %c0_54, %c0_55] : memref<2x128x512xbf16, #tpu.memory_space<vmem>>, vector<1x128x512xbf16>
    %99 = vector.shape_cast %98 : vector<1x128x512xbf16> to vector<128x512xbf16>
    %cst_56 = arith.constant dense<0.000000e+00> : vector<8x512xf32>
    %100 = tpu.matmul %97, %99, %cst_56 {dimension_numbers = #tpu.dot_dimension_numbers<[1], [0], [0], [1], [0, 0, 1, 1], [], []>} : vector<8x128xbf16>, vector<128x512xbf16>, vector<8x512xf32> -> vector<8x512xf32>
    %101 = arith.addf %95, %100 : vector<8x512xf32>
    %102 = vector.extract_strided_slice %101 {offsets = [0, 0], sizes = [8, 128], strides = [1, 1]} : vector<8x512xf32> to vector<8x128xf32>
    %103 = arith.negf %102 : vector<8x128xf32>
    %104 = math.exp %103 : vector<8x128xf32>
    %cst_57 = arith.constant 1.000000e+00 : f32
    %105 = vector.broadcast %cst_57 : f32 to vector<8x128xf32>
    %106 = arith.addf %105, %104 : vector<8x128xf32>
    %107 = arith.divf %105, %106 : vector<8x128xf32>
    %108 = vector.extract_strided_slice %101 {offsets = [0, 128], sizes = [8, 128], strides = [1, 1]} : vector<8x512xf32> to vector<8x128xf32>
    %109 = arith.negf %108 : vector<8x128xf32>
    %110 = math.exp %109 : vector<8x128xf32>
    %cst_58 = arith.constant 1.000000e+00 : f32
    %111 = vector.broadcast %cst_58 : f32 to vector<8x128xf32>
    %112 = arith.addf %111, %110 : vector<8x128xf32>
    %113 = arith.divf %111, %112 : vector<8x128xf32>
    %114 = vector.extract_strided_slice %101 {offsets = [0, 256], sizes = [8, 128], strides = [1, 1]} : vector<8x512xf32> to vector<8x128xf32>
    %115 = math.tanh %114 : vector<8x128xf32>
    %116 = vector.extract_strided_slice %101 {offsets = [0, 384], sizes = [8, 128], strides = [1, 1]} : vector<8x512xf32> to vector<8x128xf32>
    %117 = arith.negf %116 : vector<8x128xf32>
    %118 = math.exp %117 : vector<8x128xf32>
    %cst_59 = arith.constant 1.000000e+00 : f32
    %119 = vector.broadcast %cst_59 : f32 to vector<8x128xf32>
    %120 = arith.addf %119, %118 : vector<8x128xf32>
    %121 = arith.divf %119, %120 : vector<8x128xf32>
    %c0_60 = arith.constant 0 : index
    %c0_61 = arith.constant 0 : index
    %122 = vector.load %arg13[%c0_60, %c0_61] : memref<8x128xf32, #tpu.memory_space<vmem>>, vector<8x128xf32>
    %123 = arith.mulf %113, %122 : vector<8x128xf32>
    %124 = arith.mulf %107, %115 : vector<8x128xf32>
    %125 = arith.addf %123, %124 : vector<8x128xf32>
    %126 = math.tanh %125 : vector<8x128xf32>
    %127 = arith.mulf %121, %126 : vector<8x128xf32>
    %c0_62 = arith.constant 0 : index
    %c0_63 = arith.constant 0 : index
    %128 = vector.load %arg13[%c0_62, %c0_63] : memref<8x128xf32, #tpu.memory_space<vmem>>, vector<8x128xf32>
    tpu.vector_store %arg13[%c0_62, %c0_63], %125 {strides = array<i32>} : memref<8x128xf32, #tpu.memory_space<vmem>>, vector<8x128xf32>,
    %c0_64 = arith.constant 0 : index
    %c0_65 = arith.constant 0 : index
    %129 = vector.load %arg12[%c0_64, %c0_65] : memref<8x128xf32, #tpu.memory_space<vmem>>, vector<8x128xf32>
    tpu.vector_store %arg12[%c0_64, %c0_65], %127 {strides = array<i32>} : memref<8x128xf32, #tpu.memory_space<vmem>>, vector<8x128xf32>,
    %130 = arith.index_cast %93 : i32 to index
    %c0_66 = arith.constant 0 : index
    %131 = vector.load %arg11[%130, %c0_66] : memref<64x128xf32, #tpu.memory_space<vmem>>, vector<8x128xf32>
    tpu.vector_store %arg11[%130, %c0_66], %127 {strides = array<i32>} : memref<64x128xf32, #tpu.memory_space<vmem>>, vector<8x128xf32>,
    %c3_i32 = arith.constant 3 : i32
    %c8_i32_67 = arith.constant 8 : i32
    %132 = arith.muli %c3_i32, %c8_i32_67 : i32
    %133 = tpu.assume_multiple %132, 8 : i32
    %134 = arith.index_cast %133 : i32 to index
    %c0_68 = arith.constant 0 : index
    %135 = vector.load %arg10[%134, %c0_68] : memref<64x512xf32, #tpu.memory_space<vmem>>, vector<8x512xf32>
    %c0_69 = arith.constant 0 : index
    %c0_70 = arith.constant 0 : index
    %136 = vector.load %arg12[%c0_69, %c0_70] : memref<8x128xf32, #tpu.memory_space<vmem>>, vector<8x128xf32>
    %137 = arith.truncf %136 : vector<8x128xf32> to vector<8x128xbf16>
    %c0_71 = arith.constant 0 : index
    %c0_72 = arith.constant 0 : index
    %c0_73 = arith.constant 0 : index
    %138 = vector.load %arg3[%c0_71, %c0_72, %c0_73] : memref<2x128x512xbf16, #tpu.memory_space<vmem>>, vector<1x128x512xbf16>
    %139 = vector.shape_cast %138 : vector<1x128x512xbf16> to vector<128x512xbf16>
    %cst_74 = arith.constant dense<0.000000e+00> : vector<8x512xf32>
    %140 = tpu.matmul %137, %139, %cst_74 {dimension_numbers = #tpu.dot_dimension_numbers<[1], [0], [0], [1], [0, 0, 1, 1], [], []>} : vector<8x128xbf16>, vector<128x512xbf16>, vector<8x512xf32> -> vector<8x512xf32>
    %141 = arith.addf %135, %140 : vector<8x512xf32>
    %142 = vector.extract_strided_slice %141 {offsets = [0, 0], sizes = [8, 128], strides = [1, 1]} : vector<8x512xf32> to vector<8x128xf32>
    %143 = arith.negf %142 : vector<8x128xf32>
    %144 = math.exp %143 : vector<8x128xf32>
    %cst_75 = arith.constant 1.000000e+00 : f32
    %145 = vector.broadcast %cst_75 : f32 to vector<8x128xf32>
    %146 = arith.addf %145, %144 : vector<8x128xf32>
    %147 = arith.divf %145, %146 : vector<8x128xf32>
    %148 = vector.extract_strided_slice %141 {offsets = [0, 128], sizes = [8, 128], strides = [1, 1]} : vector<8x512xf32> to vector<8x128xf32>
    %149 = arith.negf %148 : vector<8x128xf32>
    %150 = math.exp %149 : vector<8x128xf32>
    %cst_76 = arith.constant 1.000000e+00 : f32
    %151 = vector.broadcast %cst_76 : f32 to vector<8x128xf32>
    %152 = arith.addf %151, %150 : vector<8x128xf32>
    %153 = arith.divf %151, %152 : vector<8x128xf32>
    %154 = vector.extract_strided_slice %141 {offsets = [0, 256], sizes = [8, 128], strides = [1, 1]} : vector<8x512xf32> to vector<8x128xf32>
    %155 = math.tanh %154 : vector<8x128xf32>
    %156 = vector.extract_strided_slice %141 {offsets = [0, 384], sizes = [8, 128], strides = [1, 1]} : vector<8x512xf32> to vector<8x128xf32>
    %157 = arith.negf %156 : vector<8x128xf32>
    %158 = math.exp %157 : vector<8x128xf32>
    %cst_77 = arith.constant 1.000000e+00 : f32
    %159 = vector.broadcast %cst_77 : f32 to vector<8x128xf32>
    %160 = arith.addf %159, %158 : vector<8x128xf32>
    %161 = arith.divf %159, %160 : vector<8x128xf32>
    %c0_78 = arith.constant 0 : index
    %c0_79 = arith.constant 0 : index
    %162 = vector.load %arg13[%c0_78, %c0_79] : memref<8x128xf32, #tpu.memory_space<vmem>>, vector<8x128xf32>
    %163 = arith.mulf %153, %162 : vector<8x128xf32>
    %164 = arith.mulf %147, %155 : vector<8x128xf32>
    %165 = arith.addf %163, %164 : vector<8x128xf32>
    %166 = math.tanh %165 : vector<8x128xf32>
    %167 = arith.mulf %161, %166 : vector<8x128xf32>
    %c0_80 = arith.constant 0 : index
    %c0_81 = arith.constant 0 : index
    %168 = vector.load %arg13[%c0_80, %c0_81] : memref<8x128xf32, #tpu.memory_space<vmem>>, vector<8x128xf32>
    tpu.vector_store %arg13[%c0_80, %c0_81], %165 {strides = array<i32>} : memref<8x128xf32, #tpu.memory_space<vmem>>, vector<8x128xf32>,
    %c0_82 = arith.constant 0 : index
    %c0_83 = arith.constant 0 : index
    %169 = vector.load %arg12[%c0_82, %c0_83] : memref<8x128xf32, #tpu.memory_space<vmem>>, vector<8x128xf32>
    tpu.vector_store %arg12[%c0_82, %c0_83], %167 {strides = array<i32>} : memref<8x128xf32, #tpu.memory_space<vmem>>, vector<8x128xf32>,
    %170 = arith.index_cast %133 : i32 to index
    %c0_84 = arith.constant 0 : index
    %171 = vector.load %arg11[%170, %c0_84] : memref<64x128xf32, #tpu.memory_space<vmem>>, vector<8x128xf32>
    tpu.vector_store %arg11[%170, %c0_84], %167 {strides = array<i32>} : memref<64x128xf32, #tpu.memory_space<vmem>>, vector<8x128xf32>,
    %c4_i32 = arith.constant 4 : i32
    %c8_i32_85 = arith.constant 8 : i32
    %172 = arith.muli %c4_i32, %c8_i32_85 : i32
    %173 = tpu.assume_multiple %172, 8 : i32
    %174 = arith.index_cast %173 : i32 to index
    %c0_86 = arith.constant 0 : index
    %175 = vector.load %arg10[%174, %c0_86] : memref<64x512xf32, #tpu.memory_space<vmem>>, vector<8x512xf32>
    %c0_87 = arith.constant 0 : index
    %c0_88 = arith.constant 0 : index
    %176 = vector.load %arg12[%c0_87, %c0_88] : memref<8x128xf32, #tpu.memory_space<vmem>>, vector<8x128xf32>
    %177 = arith.truncf %176 : vector<8x128xf32> to vector<8x128xbf16>
    %c0_89 = arith.constant 0 : index
    %c0_90 = arith.constant 0 : index
    %c0_91 = arith.constant 0 : index
    %178 = vector.load %arg3[%c0_89, %c0_90, %c0_91] : memref<2x128x512xbf16, #tpu.memory_space<vmem>>, vector<1x128x512xbf16>
    %179 = vector.shape_cast %178 : vector<1x128x512xbf16> to vector<128x512xbf16>
    %cst_92 = arith.constant dense<0.000000e+00> : vector<8x512xf32>
    %180 = tpu.matmul %177, %179, %cst_92 {dimension_numbers = #tpu.dot_dimension_numbers<[1], [0], [0], [1], [0, 0, 1, 1], [], []>} : vector<8x128xbf16>, vector<128x512xbf16>, vector<8x512xf32> -> vector<8x512xf32>
    %181 = arith.addf %175, %180 : vector<8x512xf32>
    %182 = vector.extract_strided_slice %181 {offsets = [0, 0], sizes = [8, 128], strides = [1, 1]} : vector<8x512xf32> to vector<8x128xf32>
    %183 = arith.negf %182 : vector<8x128xf32>
    %184 = math.exp %183 : vector<8x128xf32>
    %cst_93 = arith.constant 1.000000e+00 : f32
    %185 = vector.broadcast %cst_93 : f32 to vector<8x128xf32>
    %186 = arith.addf %185, %184 : vector<8x128xf32>
    %187 = arith.divf %185, %186 : vector<8x128xf32>
    %188 = vector.extract_strided_slice %181 {offsets = [0, 128], sizes = [8, 128], strides = [1, 1]} : vector<8x512xf32> to vector<8x128xf32>
    %189 = arith.negf %188 : vector<8x128xf32>
    %190 = math.exp %189 : vector<8x128xf32>
    %cst_94 = arith.constant 1.000000e+00 : f32
    %191 = vector.broadcast %cst_94 : f32 to vector<8x128xf32>
    %192 = arith.addf %191, %190 : vector<8x128xf32>
    %193 = arith.divf %191, %192 : vector<8x128xf32>
    %194 = vector.extract_strided_slice %181 {offsets = [0, 256], sizes = [8, 128], strides = [1, 1]} : vector<8x512xf32> to vector<8x128xf32>
    %195 = math.tanh %194 : vector<8x128xf32>
    %196 = vector.extract_strided_slice %181 {offsets = [0, 384], sizes = [8, 128], strides = [1, 1]} : vector<8x512xf32> to vector<8x128xf32>
    %197 = arith.negf %196 : vector<8x128xf32>
    %198 = math.exp %197 : vector<8x128xf32>
    %cst_95 = arith.constant 1.000000e+00 : f32
    %199 = vector.broadcast %cst_95 : f32 to vector<8x128xf32>
    %200 = arith.addf %199, %198 : vector<8x128xf32>
    %201 = arith.divf %199, %200 : vector<8x128xf32>
    %c0_96 = arith.constant 0 : index
    %c0_97 = arith.constant 0 : index
    %202 = vector.load %arg13[%c0_96, %c0_97] : memref<8x128xf32, #tpu.memory_space<vmem>>, vector<8x128xf32>
    %203 = arith.mulf %193, %202 : vector<8x128xf32>
    %204 = arith.mulf %187, %195 : vector<8x128xf32>
    %205 = arith.addf %203, %204 : vector<8x128xf32>
    %206 = math.tanh %205 : vector<8x128xf32>
    %207 = arith.mulf %201, %206 : vector<8x128xf32>
    %c0_98 = arith.constant 0 : index
    %c0_99 = arith.constant 0 : index
    %208 = vector.load %arg13[%c0_98, %c0_99] : memref<8x128xf32, #tpu.memory_space<vmem>>, vector<8x128xf32>
    tpu.vector_store %arg13[%c0_98, %c0_99], %205 {strides = array<i32>} : memref<8x128xf32, #tpu.memory_space<vmem>>, vector<8x128xf32>,
    %c0_100 = arith.constant 0 : index
    %c0_101 = arith.constant 0 : index
    %209 = vector.load %arg12[%c0_100, %c0_101] : memref<8x128xf32, #tpu.memory_space<vmem>>, vector<8x128xf32>
    tpu.vector_store %arg12[%c0_100, %c0_101], %207 {strides = array<i32>} : memref<8x128xf32, #tpu.memory_space<vmem>>, vector<8x128xf32>,
    %210 = arith.index_cast %173 : i32 to index
    %c0_102 = arith.constant 0 : index
    %211 = vector.load %arg11[%210, %c0_102] : memref<64x128xf32, #tpu.memory_space<vmem>>, vector<8x128xf32>
    tpu.vector_store %arg11[%210, %c0_102], %207 {strides = array<i32>} : memref<64x128xf32, #tpu.memory_space<vmem>>, vector<8x128xf32>,
    %c5_i32 = arith.constant 5 : i32
    %c8_i32_103 = arith.constant 8 : i32
    %212 = arith.muli %c5_i32, %c8_i32_103 : i32
    %213 = tpu.assume_multiple %212, 8 : i32
    %214 = arith.index_cast %213 : i32 to index
    %c0_104 = arith.constant 0 : index
    %215 = vector.load %arg10[%214, %c0_104] : memref<64x512xf32, #tpu.memory_space<vmem>>, vector<8x512xf32>
    %c0_105 = arith.constant 0 : index
    %c0_106 = arith.constant 0 : index
    %216 = vector.load %arg12[%c0_105, %c0_106] : memref<8x128xf32, #tpu.memory_space<vmem>>, vector<8x128xf32>
    %217 = arith.truncf %216 : vector<8x128xf32> to vector<8x128xbf16>
    %c0_107 = arith.constant 0 : index
    %c0_108 = arith.constant 0 : index
    %c0_109 = arith.constant 0 : index
    %218 = vector.load %arg3[%c0_107, %c0_108, %c0_109] : memref<2x128x512xbf16, #tpu.memory_space<vmem>>, vector<1x128x512xbf16>
    %219 = vector.shape_cast %218 : vector<1x128x512xbf16> to vector<128x512xbf16>
    %cst_110 = arith.constant dense<0.000000e+00> : vector<8x512xf32>
    %220 = tpu.matmul %217, %219, %cst_110 {dimension_numbers = #tpu.dot_dimension_numbers<[1], [0], [0], [1], [0, 0, 1, 1], [], []>} : vector<8x128xbf16>, vector<128x512xbf16>, vector<8x512xf32> -> vector<8x512xf32>
    %221 = arith.addf %215, %220 : vector<8x512xf32>
    %222 = vector.extract_strided_slice %221 {offsets = [0, 0], sizes = [8, 128], strides = [1, 1]} : vector<8x512xf32> to vector<8x128xf32>
    %223 = arith.negf %222 : vector<8x128xf32>
    %224 = math.exp %223 : vector<8x128xf32>
    %cst_111 = arith.constant 1.000000e+00 : f32
    %225 = vector.broadcast %cst_111 : f32 to vector<8x128xf32>
    %226 = arith.addf %225, %224 : vector<8x128xf32>
    %227 = arith.divf %225, %226 : vector<8x128xf32>
    %228 = vector.extract_strided_slice %221 {offsets = [0, 128], sizes = [8, 128], strides = [1, 1]} : vector<8x512xf32> to vector<8x128xf32>
    %229 = arith.negf %228 : vector<8x128xf32>
    %230 = math.exp %229 : vector<8x128xf32>
    %cst_112 = arith.constant 1.000000e+00 : f32
    %231 = vector.broadcast %cst_112 : f32 to vector<8x128xf32>
    %232 = arith.addf %231, %230 : vector<8x128xf32>
    %233 = arith.divf %231, %232 : vector<8x128xf32>
    %234 = vector.extract_strided_slice %221 {offsets = [0, 256], sizes = [8, 128], strides = [1, 1]} : vector<8x512xf32> to vector<8x128xf32>
    %235 = math.tanh %234 : vector<8x128xf32>
    %236 = vector.extract_strided_slice %221 {offsets = [0, 384], sizes = [8, 128], strides = [1, 1]} : vector<8x512xf32> to vector<8x128xf32>
    %237 = arith.negf %236 : vector<8x128xf32>
    %238 = math.exp %237 : vector<8x128xf32>
    %cst_113 = arith.constant 1.000000e+00 : f32
    %239 = vector.broadcast %cst_113 : f32 to vector<8x128xf32>
    %240 = arith.addf %239, %238 : vector<8x128xf32>
    %241 = arith.divf %239, %240 : vector<8x128xf32>
    %c0_114 = arith.constant 0 : index
    %c0_115 = arith.constant 0 : index
    %242 = vector.load %arg13[%c0_114, %c0_115] : memref<8x128xf32, #tpu.memory_space<vmem>>, vector<8x128xf32>
    %243 = arith.mulf %233, %242 : vector<8x128xf32>
    %244 = arith.mulf %227, %235 : vector<8x128xf32>
    %245 = arith.addf %243, %244 : vector<8x128xf32>
    %246 = math.tanh %245 : vector<8x128xf32>
    %247 = arith.mulf %241, %246 : vector<8x128xf32>
    %c0_116 = arith.constant 0 : index
    %c0_117 = arith.constant 0 : index
    %248 = vector.load %arg13[%c0_116, %c0_117] : memref<8x128xf32, #tpu.memory_space<vmem>>, vector<8x128xf32>
    tpu.vector_store %arg13[%c0_116, %c0_117], %245 {strides = array<i32>} : memref<8x128xf32, #tpu.memory_space<vmem>>, vector<8x128xf32>,
    %c0_118 = arith.constant 0 : index
    %c0_119 = arith.constant 0 : index
    %249 = vector.load %arg12[%c0_118, %c0_119] : memref<8x128xf32, #tpu.memory_space<vmem>>, vector<8x128xf32>
    tpu.vector_store %arg12[%c0_118, %c0_119], %247 {strides = array<i32>} : memref<8x128xf32, #tpu.memory_space<vmem>>, vector<8x128xf32>,
    %250 = arith.index_cast %213 : i32 to index
    %c0_120 = arith.constant 0 : index
    %251 = vector.load %arg11[%250, %c0_120] : memref<64x128xf32, #tpu.memory_space<vmem>>, vector<8x128xf32>
    tpu.vector_store %arg11[%250, %c0_120], %247 {strides = array<i32>} : memref<64x128xf32, #tpu.memory_space<vmem>>, vector<8x128xf32>,
    %c6_i32 = arith.constant 6 : i32
    %c8_i32_121 = arith.constant 8 : i32
    %252 = arith.muli %c6_i32, %c8_i32_121 : i32
    %253 = tpu.assume_multiple %252, 8 : i32
    %254 = arith.index_cast %253 : i32 to index
    %c0_122 = arith.constant 0 : index
    %255 = vector.load %arg10[%254, %c0_122] : memref<64x512xf32, #tpu.memory_space<vmem>>, vector<8x512xf32>
    %c0_123 = arith.constant 0 : index
    %c0_124 = arith.constant 0 : index
    %256 = vector.load %arg12[%c0_123, %c0_124] : memref<8x128xf32, #tpu.memory_space<vmem>>, vector<8x128xf32>
    %257 = arith.truncf %256 : vector<8x128xf32> to vector<8x128xbf16>
    %c0_125 = arith.constant 0 : index
    %c0_126 = arith.constant 0 : index
    %c0_127 = arith.constant 0 : index
    %258 = vector.load %arg3[%c0_125, %c0_126, %c0_127] : memref<2x128x512xbf16, #tpu.memory_space<vmem>>, vector<1x128x512xbf16>
    %259 = vector.shape_cast %258 : vector<1x128x512xbf16> to vector<128x512xbf16>
    %cst_128 = arith.constant dense<0.000000e+00> : vector<8x512xf32>
    %260 = tpu.matmul %257, %259, %cst_128 {dimension_numbers = #tpu.dot_dimension_numbers<[1], [0], [0], [1], [0, 0, 1, 1], [], []>} : vector<8x128xbf16>, vector<128x512xbf16>, vector<8x512xf32> -> vector<8x512xf32>
    %261 = arith.addf %255, %260 : vector<8x512xf32>
    %262 = vector.extract_strided_slice %261 {offsets = [0, 0], sizes = [8, 128], strides = [1, 1]} : vector<8x512xf32> to vector<8x128xf32>
    %263 = arith.negf %262 : vector<8x128xf32>
    %264 = math.exp %263 : vector<8x128xf32>
    %cst_129 = arith.constant 1.000000e+00 : f32
    %265 = vector.broadcast %cst_129 : f32 to vector<8x128xf32>
    %266 = arith.addf %265, %264 : vector<8x128xf32>
    %267 = arith.divf %265, %266 : vector<8x128xf32>
    %268 = vector.extract_strided_slice %261 {offsets = [0, 128], sizes = [8, 128], strides = [1, 1]} : vector<8x512xf32> to vector<8x128xf32>
    %269 = arith.negf %268 : vector<8x128xf32>
    %270 = math.exp %269 : vector<8x128xf32>
    %cst_130 = arith.constant 1.000000e+00 : f32
    %271 = vector.broadcast %cst_130 : f32 to vector<8x128xf32>
    %272 = arith.addf %271, %270 : vector<8x128xf32>
    %273 = arith.divf %271, %272 : vector<8x128xf32>
    %274 = vector.extract_strided_slice %261 {offsets = [0, 256], sizes = [8, 128], strides = [1, 1]} : vector<8x512xf32> to vector<8x128xf32>
    %275 = math.tanh %274 : vector<8x128xf32>
    %276 = vector.extract_strided_slice %261 {offsets = [0, 384], sizes = [8, 128], strides = [1, 1]} : vector<8x512xf32> to vector<8x128xf32>
    %277 = arith.negf %276 : vector<8x128xf32>
    %278 = math.exp %277 : vector<8x128xf32>
    %cst_131 = arith.constant 1.000000e+00 : f32
    %279 = vector.broadcast %cst_131 : f32 to vector<8x128xf32>
    %280 = arith.addf %279, %278 : vector<8x128xf32>
    %281 = arith.divf %279, %280 : vector<8x128xf32>
    %c0_132 = arith.constant 0 : index
    %c0_133 = arith.constant 0 : index
    %282 = vector.load %arg13[%c0_132, %c0_133] : memref<8x128xf32, #tpu.memory_space<vmem>>, vector<8x128xf32>
    %283 = arith.mulf %273, %282 : vector<8x128xf32>
    %284 = arith.mulf %267, %275 : vector<8x128xf32>
    %285 = arith.addf %283, %284 : vector<8x128xf32>
    %286 = math.tanh %285 : vector<8x128xf32>
    %287 = arith.mulf %281, %286 : vector<8x128xf32>
    %c0_134 = arith.constant 0 : index
    %c0_135 = arith.constant 0 : index
    %288 = vector.load %arg13[%c0_134, %c0_135] : memref<8x128xf32, #tpu.memory_space<vmem>>, vector<8x128xf32>
    tpu.vector_store %arg13[%c0_134, %c0_135], %285 {strides = array<i32>} : memref<8x128xf32, #tpu.memory_space<vmem>>, vector<8x128xf32>,
    %c0_136 = arith.constant 0 : index
    %c0_137 = arith.constant 0 : index
    %289 = vector.load %arg12[%c0_136, %c0_137] : memref<8x128xf32, #tpu.memory_space<vmem>>, vector<8x128xf32>
    tpu.vector_store %arg12[%c0_136, %c0_137], %287 {strides = array<i32>} : memref<8x128xf32, #tpu.memory_space<vmem>>, vector<8x128xf32>,
    %290 = arith.index_cast %253 : i32 to index
    %c0_138 = arith.constant 0 : index
    %291 = vector.load %arg11[%290, %c0_138] : memref<64x128xf32, #tpu.memory_space<vmem>>, vector<8x128xf32>
    tpu.vector_store %arg11[%290, %c0_138], %287 {strides = array<i32>} : memref<64x128xf32, #tpu.memory_space<vmem>>, vector<8x128xf32>,
    %c7_i32 = arith.constant 7 : i32
    %c8_i32_139 = arith.constant 8 : i32
    %292 = arith.muli %c7_i32, %c8_i32_139 : i32
    %293 = tpu.assume_multiple %292, 8 : i32
    %294 = arith.index_cast %293 : i32 to index
    %c0_140 = arith.constant 0 : index
    %295 = vector.load %arg10[%294, %c0_140] : memref<64x512xf32, #tpu.memory_space<vmem>>, vector<8x512xf32>
    %c0_141 = arith.constant 0 : index
    %c0_142 = arith.constant 0 : index
    %296 = vector.load %arg12[%c0_141, %c0_142] : memref<8x128xf32, #tpu.memory_space<vmem>>, vector<8x128xf32>
    %297 = arith.truncf %296 : vector<8x128xf32> to vector<8x128xbf16>
    %c0_143 = arith.constant 0 : index
    %c0_144 = arith.constant 0 : index
    %c0_145 = arith.constant 0 : index
    %298 = vector.load %arg3[%c0_143, %c0_144, %c0_145] : memref<2x128x512xbf16, #tpu.memory_space<vmem>>, vector<1x128x512xbf16>
    %299 = vector.shape_cast %298 : vector<1x128x512xbf16> to vector<128x512xbf16>
    %cst_146 = arith.constant dense<0.000000e+00> : vector<8x512xf32>
    %300 = tpu.matmul %297, %299, %cst_146 {dimension_numbers = #tpu.dot_dimension_numbers<[1], [0], [0], [1], [0, 0, 1, 1], [], []>} : vector<8x128xbf16>, vector<128x512xbf16>, vector<8x512xf32> -> vector<8x512xf32>
    %301 = arith.addf %295, %300 : vector<8x512xf32>
    %302 = vector.extract_strided_slice %301 {offsets = [0, 0], sizes = [8, 128], strides = [1, 1]} : vector<8x512xf32> to vector<8x128xf32>
    %303 = arith.negf %302 : vector<8x128xf32>
    %304 = math.exp %303 : vector<8x128xf32>
    %cst_147 = arith.constant 1.000000e+00 : f32
    %305 = vector.broadcast %cst_147 : f32 to vector<8x128xf32>
    %306 = arith.addf %305, %304 : vector<8x128xf32>
    %307 = arith.divf %305, %306 : vector<8x128xf32>
    %308 = vector.extract_strided_slice %301 {offsets = [0, 128], sizes = [8, 128], strides = [1, 1]} : vector<8x512xf32> to vector<8x128xf32>
    %309 = arith.negf %308 : vector<8x128xf32>
    %310 = math.exp %309 : vector<8x128xf32>
    %cst_148 = arith.constant 1.000000e+00 : f32
    %311 = vector.broadcast %cst_148 : f32 to vector<8x128xf32>
    %312 = arith.addf %311, %310 : vector<8x128xf32>
    %313 = arith.divf %311, %312 : vector<8x128xf32>
    %314 = vector.extract_strided_slice %301 {offsets = [0, 256], sizes = [8, 128], strides = [1, 1]} : vector<8x512xf32> to vector<8x128xf32>
    %315 = math.tanh %314 : vector<8x128xf32>
    %316 = vector.extract_strided_slice %301 {offsets = [0, 384], sizes = [8, 128], strides = [1, 1]} : vector<8x512xf32> to vector<8x128xf32>
    %317 = arith.negf %316 : vector<8x128xf32>
    %318 = math.exp %317 : vector<8x128xf32>
    %cst_149 = arith.constant 1.000000e+00 : f32
    %319 = vector.broadcast %cst_149 : f32 to vector<8x128xf32>
    %320 = arith.addf %319, %318 : vector<8x128xf32>
    %321 = arith.divf %319, %320 : vector<8x128xf32>
    %c0_150 = arith.constant 0 : index
    %c0_151 = arith.constant 0 : index
    %322 = vector.load %arg13[%c0_150, %c0_151] : memref<8x128xf32, #tpu.memory_space<vmem>>, vector<8x128xf32>
    %323 = arith.mulf %313, %322 : vector<8x128xf32>
    %324 = arith.mulf %307, %315 : vector<8x128xf32>
    %325 = arith.addf %323, %324 : vector<8x128xf32>
    %326 = math.tanh %325 : vector<8x128xf32>
    %327 = arith.mulf %321, %326 : vector<8x128xf32>
    %c0_152 = arith.constant 0 : index
    %c0_153 = arith.constant 0 : index
    %328 = vector.load %arg13[%c0_152, %c0_153] : memref<8x128xf32, #tpu.memory_space<vmem>>, vector<8x128xf32>
    tpu.vector_store %arg13[%c0_152, %c0_153], %325 {strides = array<i32>} : memref<8x128xf32, #tpu.memory_space<vmem>>, vector<8x128xf32>,
    %c0_154 = arith.constant 0 : index
    %c0_155 = arith.constant 0 : index
    %329 = vector.load %arg12[%c0_154, %c0_155] : memref<8x128xf32, #tpu.memory_space<vmem>>, vector<8x128xf32>
    tpu.vector_store %arg12[%c0_154, %c0_155], %327 {strides = array<i32>} : memref<8x128xf32, #tpu.memory_space<vmem>>, vector<8x128xf32>,
    %330 = arith.index_cast %293 : i32 to index
    %c0_156 = arith.constant 0 : index
    %331 = vector.load %arg11[%330, %c0_156] : memref<64x128xf32, #tpu.memory_space<vmem>>, vector<8x128xf32>
    tpu.vector_store %arg11[%330, %c0_156], %327 {strides = array<i32>} : memref<64x128xf32, #tpu.memory_space<vmem>>, vector<8x128xf32>,
    %c8_i32_157 = arith.constant 8 : i32
    %c0_158 = arith.constant 0 : index
    %c0_159 = arith.constant 0 : index
    %332 = vector.load %arg12[%c0_158, %c0_159] : memref<8x128xf32, #tpu.memory_space<vmem>>, vector<8x128xf32>
    %c0_160 = arith.constant 0 : index
    %c0_161 = arith.constant 0 : index
    %c0_162 = arith.constant 0 : index
    %333 = vector.load %arg8[%c0_160, %c0_161, %c0_162] : memref<2x8x128xf32, #tpu.memory_space<vmem>>, vector<1x8x128xf32>
    %334 = vector.shape_cast %333 : vector<1x8x128xf32> to vector<8x128xf32>
    %335 = vector.shape_cast %332 : vector<8x128xf32> to vector<1x8x128xf32>
    tpu.vector_store %arg8[%c0_160, %c0_161, %c0_162], %335 {strides = array<i32>} : memref<2x8x128xf32, #tpu.memory_space<vmem>>, vector<1x8x128xf32>,
    %c0_163 = arith.constant 0 : index
    %c0_164 = arith.constant 0 : index
    %336 = vector.load %arg13[%c0_163, %c0_164] : memref<8x128xf32, #tpu.memory_space<vmem>>, vector<8x128xf32>
    %c0_165 = arith.constant 0 : index
    %c0_166 = arith.constant 0 : index
    %c0_167 = arith.constant 0 : index
    %337 = vector.load %arg9[%c0_165, %c0_166, %c0_167] : memref<2x8x128xf32, #tpu.memory_space<vmem>>, vector<1x8x128xf32>
    %338 = vector.shape_cast %337 : vector<1x8x128xf32> to vector<8x128xf32>
    %339 = vector.shape_cast %336 : vector<8x128xf32> to vector<1x8x128xf32>
    tpu.vector_store %arg9[%c0_165, %c0_166, %c0_167], %339 {strides = array<i32>} : memref<2x8x128xf32, #tpu.memory_space<vmem>>, vector<1x8x128xf32>,
    %c0_168 = arith.constant 0 : index
    %c0_169 = arith.constant 0 : index
    %340 = vector.load %arg11[%c0_168, %c0_169] : memref<64x128xf32, #tpu.memory_space<vmem>>, vector<64x128xf32>
    %341 = arith.truncf %340 : vector<64x128xf32> to vector<64x128xbf16>
    %c0_170 = arith.constant 0 : index
    %c0_171 = arith.constant 0 : index
    %c0_172 = arith.constant 0 : index
    %342 = vector.load %arg2[%c0_170, %c0_171, %c0_172] : memref<1x128x512xbf16, #tpu.memory_space<vmem>>, vector<1x128x512xbf16>
    %343 = vector.shape_cast %342 : vector<1x128x512xbf16> to vector<128x512xbf16>
    %cst_173 = arith.constant dense<0.000000e+00> : vector<64x512xf32>
    %344 = tpu.matmul %341, %343, %cst_173 {dimension_numbers = #tpu.dot_dimension_numbers<[1], [0], [0], [1], [0, 0, 1, 1], [], []>} : vector<64x128xbf16>, vector<128x512xbf16>, vector<64x512xf32> -> vector<64x512xf32>
    %c1 = arith.constant 1 : index
    %c0_174 = arith.constant 0 : index
    %c0_175 = arith.constant 0 : index
    %345 = vector.load %arg4[%c1, %c0_174, %c0_175] : memref<2x1x512xf32, #tpu.memory_space<vmem>>, vector<1x1x512xf32>
    %346 = vector.shape_cast %345 : vector<1x1x512xf32> to vector<1x512xf32>
    %347 = vector.broadcast %346 : vector<1x512xf32> to vector<64x512xf32>
    %348 = arith.addf %344, %347 : vector<64x512xf32>
    %c0_176 = arith.constant 0 : index
    %c0_177 = arith.constant 0 : index
    %349 = vector.load %arg10[%c0_176, %c0_177] : memref<64x512xf32, #tpu.memory_space<vmem>>, vector<64x512xf32>
    tpu.vector_store %arg10[%c0_176, %c0_177], %348 {strides = array<i32>} : memref<64x512xf32, #tpu.memory_space<vmem>>, vector<64x512xf32>,
    %cst_178 = arith.constant 0.000000e+00 : f32
    %350 = vector.broadcast %cst_178 : f32 to vector<8x128xf32>
    %c0_179 = arith.constant 0 : index
    %c0_180 = arith.constant 0 : index
    %351 = vector.load %arg12[%c0_179, %c0_180] : memref<8x128xf32, #tpu.memory_space<vmem>>, vector<8x128xf32>
    tpu.vector_store %arg12[%c0_179, %c0_180], %350 {strides = array<i32>} : memref<8x128xf32, #tpu.memory_space<vmem>>, vector<8x128xf32>,
    %cst_181 = arith.constant 0.000000e+00 : f32
    %352 = vector.broadcast %cst_181 : f32 to vector<8x128xf32>
    %c0_182 = arith.constant 0 : index
    %c0_183 = arith.constant 0 : index
    %353 = vector.load %arg13[%c0_182, %c0_183] : memref<8x128xf32, #tpu.memory_space<vmem>>, vector<8x128xf32>
    tpu.vector_store %arg13[%c0_182, %c0_183], %352 {strides = array<i32>} : memref<8x128xf32, #tpu.memory_space<vmem>>, vector<8x128xf32>,
    %c0_i32_184 = arith.constant 0 : i32
    %c8_i32_185 = arith.constant 8 : i32
    %354 = arith.muli %c0_i32_184, %c8_i32_185 : i32
    %355 = tpu.assume_multiple %354, 8 : i32
    %356 = arith.index_cast %355 : i32 to index
    %c0_186 = arith.constant 0 : index
    %357 = vector.load %arg10[%356, %c0_186] : memref<64x512xf32, #tpu.memory_space<vmem>>, vector<8x512xf32>
    %c0_187 = arith.constant 0 : index
    %c0_188 = arith.constant 0 : index
    %358 = vector.load %arg12[%c0_187, %c0_188] : memref<8x128xf32, #tpu.memory_space<vmem>>, vector<8x128xf32>
    %359 = arith.truncf %358 : vector<8x128xf32> to vector<8x128xbf16>
    %c1_189 = arith.constant 1 : index
    %c0_190 = arith.constant 0 : index
    %c0_191 = arith.constant 0 : index
    %360 = vector.load %arg3[%c1_189, %c0_190, %c0_191] : memref<2x128x512xbf16, #tpu.memory_space<vmem>>, vector<1x128x512xbf16>
    %361 = vector.shape_cast %360 : vector<1x128x512xbf16> to vector<128x512xbf16>
    %cst_192 = arith.constant dense<0.000000e+00> : vector<8x512xf32>
    %362 = tpu.matmul %359, %361, %cst_192 {dimension_numbers = #tpu.dot_dimension_numbers<[1], [0], [0], [1], [0, 0, 1, 1], [], []>} : vector<8x128xbf16>, vector<128x512xbf16>, vector<8x512xf32> -> vector<8x512xf32>
    %363 = arith.addf %357, %362 : vector<8x512xf32>
    %364 = vector.extract_strided_slice %363 {offsets = [0, 0], sizes = [8, 128], strides = [1, 1]} : vector<8x512xf32> to vector<8x128xf32>
    %365 = arith.negf %364 : vector<8x128xf32>
    %366 = math.exp %365 : vector<8x128xf32>
    %cst_193 = arith.constant 1.000000e+00 : f32
    %367 = vector.broadcast %cst_193 : f32 to vector<8x128xf32>
    %368 = arith.addf %367, %366 : vector<8x128xf32>
    %369 = arith.divf %367, %368 : vector<8x128xf32>
    %370 = vector.extract_strided_slice %363 {offsets = [0, 128], sizes = [8, 128], strides = [1, 1]} : vector<8x512xf32> to vector<8x128xf32>
    %371 = arith.negf %370 : vector<8x128xf32>
    %372 = math.exp %371 : vector<8x128xf32>
    %cst_194 = arith.constant 1.000000e+00 : f32
    %373 = vector.broadcast %cst_194 : f32 to vector<8x128xf32>
    %374 = arith.addf %373, %372 : vector<8x128xf32>
    %375 = arith.divf %373, %374 : vector<8x128xf32>
    %376 = vector.extract_strided_slice %363 {offsets = [0, 256], sizes = [8, 128], strides = [1, 1]} : vector<8x512xf32> to vector<8x128xf32>
    %377 = math.tanh %376 : vector<8x128xf32>
    %378 = vector.extract_strided_slice %363 {offsets = [0, 384], sizes = [8, 128], strides = [1, 1]} : vector<8x512xf32> to vector<8x128xf32>
    %379 = arith.negf %378 : vector<8x128xf32>
    %380 = math.exp %379 : vector<8x128xf32>
    %cst_195 = arith.constant 1.000000e+00 : f32
    %381 = vector.broadcast %cst_195 : f32 to vector<8x128xf32>
    %382 = arith.addf %381, %380 : vector<8x128xf32>
    %383 = arith.divf %381, %382 : vector<8x128xf32>
    %c0_196 = arith.constant 0 : index
    %c0_197 = arith.constant 0 : index
    %384 = vector.load %arg13[%c0_196, %c0_197] : memref<8x128xf32, #tpu.memory_space<vmem>>, vector<8x128xf32>
    %385 = arith.mulf %375, %384 : vector<8x128xf32>
    %386 = arith.mulf %369, %377 : vector<8x128xf32>
    %387 = arith.addf %385, %386 : vector<8x128xf32>
    %388 = math.tanh %387 : vector<8x128xf32>
    %389 = arith.mulf %383, %388 : vector<8x128xf32>
    %c0_198 = arith.constant 0 : index
    %c0_199 = arith.constant 0 : index
    %390 = vector.load %arg13[%c0_198, %c0_199] : memref<8x128xf32, #tpu.memory_space<vmem>>, vector<8x128xf32>
    tpu.vector_store %arg13[%c0_198, %c0_199], %387 {strides = array<i32>} : memref<8x128xf32, #tpu.memory_space<vmem>>, vector<8x128xf32>,
    %c0_200 = arith.constant 0 : index
    %c0_201 = arith.constant 0 : index
    %391 = vector.load %arg12[%c0_200, %c0_201] : memref<8x128xf32, #tpu.memory_space<vmem>>, vector<8x128xf32>
    tpu.vector_store %arg12[%c0_200, %c0_201], %389 {strides = array<i32>} : memref<8x128xf32, #tpu.memory_space<vmem>>, vector<8x128xf32>,
    %392 = arith.index_cast %355 : i32 to index
    %c0_202 = arith.constant 0 : index
    %393 = vector.load %arg11[%392, %c0_202] : memref<64x128xf32, #tpu.memory_space<vmem>>, vector<8x128xf32>
    tpu.vector_store %arg11[%392, %c0_202], %389 {strides = array<i32>} : memref<64x128xf32, #tpu.memory_space<vmem>>, vector<8x128xf32>,
    %c1_i32_203 = arith.constant 1 : i32
    %c8_i32_204 = arith.constant 8 : i32
    %394 = arith.muli %c1_i32_203, %c8_i32_204 : i32
    %395 = tpu.assume_multiple %394, 8 : i32
    %396 = arith.index_cast %395 : i32 to index
    %c0_205 = arith.constant 0 : index
    %397 = vector.load %arg10[%396, %c0_205] : memref<64x512xf32, #tpu.memory_space<vmem>>, vector<8x512xf32>
    %c0_206 = arith.constant 0 : index
    %c0_207 = arith.constant 0 : index
    %398 = vector.load %arg12[%c0_206, %c0_207] : memref<8x128xf32, #tpu.memory_space<vmem>>, vector<8x128xf32>
    %399 = arith.truncf %398 : vector<8x128xf32> to vector<8x128xbf16>
    %c1_208 = arith.constant 1 : index
    %c0_209 = arith.constant 0 : index
    %c0_210 = arith.constant 0 : index
    %400 = vector.load %arg3[%c1_208, %c0_209, %c0_210] : memref<2x128x512xbf16, #tpu.memory_space<vmem>>, vector<1x128x512xbf16>
    %401 = vector.shape_cast %400 : vector<1x128x512xbf16> to vector<128x512xbf16>
    %cst_211 = arith.constant dense<0.000000e+00> : vector<8x512xf32>
    %402 = tpu.matmul %399, %401, %cst_211 {dimension_numbers = #tpu.dot_dimension_numbers<[1], [0], [0], [1], [0, 0, 1, 1], [], []>} : vector<8x128xbf16>, vector<128x512xbf16>, vector<8x512xf32> -> vector<8x512xf32>
    %403 = arith.addf %397, %402 : vector<8x512xf32>
    %404 = vector.extract_strided_slice %403 {offsets = [0, 0], sizes = [8, 128], strides = [1, 1]} : vector<8x512xf32> to vector<8x128xf32>
    %405 = arith.negf %404 : vector<8x128xf32>
    %406 = math.exp %405 : vector<8x128xf32>
    %cst_212 = arith.constant 1.000000e+00 : f32
    %407 = vector.broadcast %cst_212 : f32 to vector<8x128xf32>
    %408 = arith.addf %407, %406 : vector<8x128xf32>
    %409 = arith.divf %407, %408 : vector<8x128xf32>
    %410 = vector.extract_strided_slice %403 {offsets = [0, 128], sizes = [8, 128], strides = [1, 1]} : vector<8x512xf32> to vector<8x128xf32>
    %411 = arith.negf %410 : vector<8x128xf32>
    %412 = math.exp %411 : vector<8x128xf32>
    %cst_213 = arith.constant 1.000000e+00 : f32
    %413 = vector.broadcast %cst_213 : f32 to vector<8x128xf32>
    %414 = arith.addf %413, %412 : vector<8x128xf32>
    %415 = arith.divf %413, %414 : vector<8x128xf32>
    %416 = vector.extract_strided_slice %403 {offsets = [0, 256], sizes = [8, 128], strides = [1, 1]} : vector<8x512xf32> to vector<8x128xf32>
    %417 = math.tanh %416 : vector<8x128xf32>
    %418 = vector.extract_strided_slice %403 {offsets = [0, 384], sizes = [8, 128], strides = [1, 1]} : vector<8x512xf32> to vector<8x128xf32>
    %419 = arith.negf %418 : vector<8x128xf32>
    %420 = math.exp %419 : vector<8x128xf32>
    %cst_214 = arith.constant 1.000000e+00 : f32
    %421 = vector.broadcast %cst_214 : f32 to vector<8x128xf32>
    %422 = arith.addf %421, %420 : vector<8x128xf32>
    %423 = arith.divf %421, %422 : vector<8x128xf32>
    %c0_215 = arith.constant 0 : index
    %c0_216 = arith.constant 0 : index
    %424 = vector.load %arg13[%c0_215, %c0_216] : memref<8x128xf32, #tpu.memory_space<vmem>>, vector<8x128xf32>
    %425 = arith.mulf %415, %424 : vector<8x128xf32>
    %426 = arith.mulf %409, %417 : vector<8x128xf32>
    %427 = arith.addf %425, %426 : vector<8x128xf32>
    %428 = math.tanh %427 : vector<8x128xf32>
    %429 = arith.mulf %423, %428 : vector<8x128xf32>
    %c0_217 = arith.constant 0 : index
    %c0_218 = arith.constant 0 : index
    %430 = vector.load %arg13[%c0_217, %c0_218] : memref<8x128xf32, #tpu.memory_space<vmem>>, vector<8x128xf32>
    tpu.vector_store %arg13[%c0_217, %c0_218], %427 {strides = array<i32>} : memref<8x128xf32, #tpu.memory_space<vmem>>, vector<8x128xf32>,
    %c0_219 = arith.constant 0 : index
    %c0_220 = arith.constant 0 : index
    %431 = vector.load %arg12[%c0_219, %c0_220] : memref<8x128xf32, #tpu.memory_space<vmem>>, vector<8x128xf32>
    tpu.vector_store %arg12[%c0_219, %c0_220], %429 {strides = array<i32>} : memref<8x128xf32, #tpu.memory_space<vmem>>, vector<8x128xf32>,
    %432 = arith.index_cast %395 : i32 to index
    %c0_221 = arith.constant 0 : index
    %433 = vector.load %arg11[%432, %c0_221] : memref<64x128xf32, #tpu.memory_space<vmem>>, vector<8x128xf32>
    tpu.vector_store %arg11[%432, %c0_221], %429 {strides = array<i32>} : memref<64x128xf32, #tpu.memory_space<vmem>>, vector<8x128xf32>,
    %c2_i32_222 = arith.constant 2 : i32
    %c8_i32_223 = arith.constant 8 : i32
    %434 = arith.muli %c2_i32_222, %c8_i32_223 : i32
    %435 = tpu.assume_multiple %434, 8 : i32
    %436 = arith.index_cast %435 : i32 to index
    %c0_224 = arith.constant 0 : index
    %437 = vector.load %arg10[%436, %c0_224] : memref<64x512xf32, #tpu.memory_space<vmem>>, vector<8x512xf32>
    %c0_225 = arith.constant 0 : index
    %c0_226 = arith.constant 0 : index
    %438 = vector.load %arg12[%c0_225, %c0_226] : memref<8x128xf32, #tpu.memory_space<vmem>>, vector<8x128xf32>
    %439 = arith.truncf %438 : vector<8x128xf32> to vector<8x128xbf16>
    %c1_227 = arith.constant 1 : index
    %c0_228 = arith.constant 0 : index
    %c0_229 = arith.constant 0 : index
    %440 = vector.load %arg3[%c1_227, %c0_228, %c0_229] : memref<2x128x512xbf16, #tpu.memory_space<vmem>>, vector<1x128x512xbf16>
    %441 = vector.shape_cast %440 : vector<1x128x512xbf16> to vector<128x512xbf16>
    %cst_230 = arith.constant dense<0.000000e+00> : vector<8x512xf32>
    %442 = tpu.matmul %439, %441, %cst_230 {dimension_numbers = #tpu.dot_dimension_numbers<[1], [0], [0], [1], [0, 0, 1, 1], [], []>} : vector<8x128xbf16>, vector<128x512xbf16>, vector<8x512xf32> -> vector<8x512xf32>
    %443 = arith.addf %437, %442 : vector<8x512xf32>
    %444 = vector.extract_strided_slice %443 {offsets = [0, 0], sizes = [8, 128], strides = [1, 1]} : vector<8x512xf32> to vector<8x128xf32>
    %445 = arith.negf %444 : vector<8x128xf32>
    %446 = math.exp %445 : vector<8x128xf32>
    %cst_231 = arith.constant 1.000000e+00 : f32
    %447 = vector.broadcast %cst_231 : f32 to vector<8x128xf32>
    %448 = arith.addf %447, %446 : vector<8x128xf32>
    %449 = arith.divf %447, %448 : vector<8x128xf32>
    %450 = vector.extract_strided_slice %443 {offsets = [0, 128], sizes = [8, 128], strides = [1, 1]} : vector<8x512xf32> to vector<8x128xf32>
    %451 = arith.negf %450 : vector<8x128xf32>
    %452 = math.exp %451 : vector<8x128xf32>
    %cst_232 = arith.constant 1.000000e+00 : f32
    %453 = vector.broadcast %cst_232 : f32 to vector<8x128xf32>
    %454 = arith.addf %453, %452 : vector<8x128xf32>
    %455 = arith.divf %453, %454 : vector<8x128xf32>
    %456 = vector.extract_strided_slice %443 {offsets = [0, 256], sizes = [8, 128], strides = [1, 1]} : vector<8x512xf32> to vector<8x128xf32>
    %457 = math.tanh %456 : vector<8x128xf32>
    %458 = vector.extract_strided_slice %443 {offsets = [0, 384], sizes = [8, 128], strides = [1, 1]} : vector<8x512xf32> to vector<8x128xf32>
    %459 = arith.negf %458 : vector<8x128xf32>
    %460 = math.exp %459 : vector<8x128xf32>
    %cst_233 = arith.constant 1.000000e+00 : f32
    %461 = vector.broadcast %cst_233 : f32 to vector<8x128xf32>
    %462 = arith.addf %461, %460 : vector<8x128xf32>
    %463 = arith.divf %461, %462 : vector<8x128xf32>
    %c0_234 = arith.constant 0 : index
    %c0_235 = arith.constant 0 : index
    %464 = vector.load %arg13[%c0_234, %c0_235] : memref<8x128xf32, #tpu.memory_space<vmem>>, vector<8x128xf32>
    %465 = arith.mulf %455, %464 : vector<8x128xf32>
    %466 = arith.mulf %449, %457 : vector<8x128xf32>
    %467 = arith.addf %465, %466 : vector<8x128xf32>
    %468 = math.tanh %467 : vector<8x128xf32>
    %469 = arith.mulf %463, %468 : vector<8x128xf32>
    %c0_236 = arith.constant 0 : index
    %c0_237 = arith.constant 0 : index
    %470 = vector.load %arg13[%c0_236, %c0_237] : memref<8x128xf32, #tpu.memory_space<vmem>>, vector<8x128xf32>
    tpu.vector_store %arg13[%c0_236, %c0_237], %467 {strides = array<i32>} : memref<8x128xf32, #tpu.memory_space<vmem>>, vector<8x128xf32>,
    %c0_238 = arith.constant 0 : index
    %c0_239 = arith.constant 0 : index
    %471 = vector.load %arg12[%c0_238, %c0_239] : memref<8x128xf32, #tpu.memory_space<vmem>>, vector<8x128xf32>
    tpu.vector_store %arg12[%c0_238, %c0_239], %469 {strides = array<i32>} : memref<8x128xf32, #tpu.memory_space<vmem>>, vector<8x128xf32>,
    %472 = arith.index_cast %435 : i32 to index
    %c0_240 = arith.constant 0 : index
    %473 = vector.load %arg11[%472, %c0_240] : memref<64x128xf32, #tpu.memory_space<vmem>>, vector<8x128xf32>
    tpu.vector_store %arg11[%472, %c0_240], %469 {strides = array<i32>} : memref<64x128xf32, #tpu.memory_space<vmem>>, vector<8x128xf32>,
    %c3_i32_241 = arith.constant 3 : i32
    %c8_i32_242 = arith.constant 8 : i32
    %474 = arith.muli %c3_i32_241, %c8_i32_242 : i32
    %475 = tpu.assume_multiple %474, 8 : i32
    %476 = arith.index_cast %475 : i32 to index
    %c0_243 = arith.constant 0 : index
    %477 = vector.load %arg10[%476, %c0_243] : memref<64x512xf32, #tpu.memory_space<vmem>>, vector<8x512xf32>
    %c0_244 = arith.constant 0 : index
    %c0_245 = arith.constant 0 : index
    %478 = vector.load %arg12[%c0_244, %c0_245] : memref<8x128xf32, #tpu.memory_space<vmem>>, vector<8x128xf32>
    %479 = arith.truncf %478 : vector<8x128xf32> to vector<8x128xbf16>
    %c1_246 = arith.constant 1 : index
    %c0_247 = arith.constant 0 : index
    %c0_248 = arith.constant 0 : index
    %480 = vector.load %arg3[%c1_246, %c0_247, %c0_248] : memref<2x128x512xbf16, #tpu.memory_space<vmem>>, vector<1x128x512xbf16>
    %481 = vector.shape_cast %480 : vector<1x128x512xbf16> to vector<128x512xbf16>
    %cst_249 = arith.constant dense<0.000000e+00> : vector<8x512xf32>
    %482 = tpu.matmul %479, %481, %cst_249 {dimension_numbers = #tpu.dot_dimension_numbers<[1], [0], [0], [1], [0, 0, 1, 1], [], []>} : vector<8x128xbf16>, vector<128x512xbf16>, vector<8x512xf32> -> vector<8x512xf32>
    %483 = arith.addf %477, %482 : vector<8x512xf32>
    %484 = vector.extract_strided_slice %483 {offsets = [0, 0], sizes = [8, 128], strides = [1, 1]} : vector<8x512xf32> to vector<8x128xf32>
    %485 = arith.negf %484 : vector<8x128xf32>
    %486 = math.exp %485 : vector<8x128xf32>
    %cst_250 = arith.constant 1.000000e+00 : f32
    %487 = vector.broadcast %cst_250 : f32 to vector<8x128xf32>
    %488 = arith.addf %487, %486 : vector<8x128xf32>
    %489 = arith.divf %487, %488 : vector<8x128xf32>
    %490 = vector.extract_strided_slice %483 {offsets = [0, 128], sizes = [8, 128], strides = [1, 1]} : vector<8x512xf32> to vector<8x128xf32>
    %491 = arith.negf %490 : vector<8x128xf32>
    %492 = math.exp %491 : vector<8x128xf32>
    %cst_251 = arith.constant 1.000000e+00 : f32
    %493 = vector.broadcast %cst_251 : f32 to vector<8x128xf32>
    %494 = arith.addf %493, %492 : vector<8x128xf32>
    %495 = arith.divf %493, %494 : vector<8x128xf32>
    %496 = vector.extract_strided_slice %483 {offsets = [0, 256], sizes = [8, 128], strides = [1, 1]} : vector<8x512xf32> to vector<8x128xf32>
    %497 = math.tanh %496 : vector<8x128xf32>
    %498 = vector.extract_strided_slice %483 {offsets = [0, 384], sizes = [8, 128], strides = [1, 1]} : vector<8x512xf32> to vector<8x128xf32>
    %499 = arith.negf %498 : vector<8x128xf32>
    %500 = math.exp %499 : vector<8x128xf32>
    %cst_252 = arith.constant 1.000000e+00 : f32
    %501 = vector.broadcast %cst_252 : f32 to vector<8x128xf32>
    %502 = arith.addf %501, %500 : vector<8x128xf32>
    %503 = arith.divf %501, %502 : vector<8x128xf32>
    %c0_253 = arith.constant 0 : index
    %c0_254 = arith.constant 0 : index
    %504 = vector.load %arg13[%c0_253, %c0_254] : memref<8x128xf32, #tpu.memory_space<vmem>>, vector<8x128xf32>
    %505 = arith.mulf %495, %504 : vector<8x128xf32>
    %506 = arith.mulf %489, %497 : vector<8x128xf32>
    %507 = arith.addf %505, %506 : vector<8x128xf32>
    %508 = math.tanh %507 : vector<8x128xf32>
    %509 = arith.mulf %503, %508 : vector<8x128xf32>
    %c0_255 = arith.constant 0 : index
    %c0_256 = arith.constant 0 : index
    %510 = vector.load %arg13[%c0_255, %c0_256] : memref<8x128xf32, #tpu.memory_space<vmem>>, vector<8x128xf32>
    tpu.vector_store %arg13[%c0_255, %c0_256], %507 {strides = array<i32>} : memref<8x128xf32, #tpu.memory_space<vmem>>, vector<8x128xf32>,
    %c0_257 = arith.constant 0 : index
    %c0_258 = arith.constant 0 : index
    %511 = vector.load %arg12[%c0_257, %c0_258] : memref<8x128xf32, #tpu.memory_space<vmem>>, vector<8x128xf32>
    tpu.vector_store %arg12[%c0_257, %c0_258], %509 {strides = array<i32>} : memref<8x128xf32, #tpu.memory_space<vmem>>, vector<8x128xf32>,
    %512 = arith.index_cast %475 : i32 to index
    %c0_259 = arith.constant 0 : index
    %513 = vector.load %arg11[%512, %c0_259] : memref<64x128xf32, #tpu.memory_space<vmem>>, vector<8x128xf32>
    tpu.vector_store %arg11[%512, %c0_259], %509 {strides = array<i32>} : memref<64x128xf32, #tpu.memory_space<vmem>>, vector<8x128xf32>,
    %c4_i32_260 = arith.constant 4 : i32
    %c8_i32_261 = arith.constant 8 : i32
    %514 = arith.muli %c4_i32_260, %c8_i32_261 : i32
    %515 = tpu.assume_multiple %514, 8 : i32
    %516 = arith.index_cast %515 : i32 to index
    %c0_262 = arith.constant 0 : index
    %517 = vector.load %arg10[%516, %c0_262] : memref<64x512xf32, #tpu.memory_space<vmem>>, vector<8x512xf32>
    %c0_263 = arith.constant 0 : index
    %c0_264 = arith.constant 0 : index
    %518 = vector.load %arg12[%c0_263, %c0_264] : memref<8x128xf32, #tpu.memory_space<vmem>>, vector<8x128xf32>
    %519 = arith.truncf %518 : vector<8x128xf32> to vector<8x128xbf16>
    %c1_265 = arith.constant 1 : index
    %c0_266 = arith.constant 0 : index
    %c0_267 = arith.constant 0 : index
    %520 = vector.load %arg3[%c1_265, %c0_266, %c0_267] : memref<2x128x512xbf16, #tpu.memory_space<vmem>>, vector<1x128x512xbf16>
    %521 = vector.shape_cast %520 : vector<1x128x512xbf16> to vector<128x512xbf16>
    %cst_268 = arith.constant dense<0.000000e+00> : vector<8x512xf32>
    %522 = tpu.matmul %519, %521, %cst_268 {dimension_numbers = #tpu.dot_dimension_numbers<[1], [0], [0], [1], [0, 0, 1, 1], [], []>} : vector<8x128xbf16>, vector<128x512xbf16>, vector<8x512xf32> -> vector<8x512xf32>
    %523 = arith.addf %517, %522 : vector<8x512xf32>
    %524 = vector.extract_strided_slice %523 {offsets = [0, 0], sizes = [8, 128], strides = [1, 1]} : vector<8x512xf32> to vector<8x128xf32>
    %525 = arith.negf %524 : vector<8x128xf32>
    %526 = math.exp %525 : vector<8x128xf32>
    %cst_269 = arith.constant 1.000000e+00 : f32
    %527 = vector.broadcast %cst_269 : f32 to vector<8x128xf32>
    %528 = arith.addf %527, %526 : vector<8x128xf32>
    %529 = arith.divf %527, %528 : vector<8x128xf32>
    %530 = vector.extract_strided_slice %523 {offsets = [0, 128], sizes = [8, 128], strides = [1, 1]} : vector<8x512xf32> to vector<8x128xf32>
    %531 = arith.negf %530 : vector<8x128xf32>
    %532 = math.exp %531 : vector<8x128xf32>
    %cst_270 = arith.constant 1.000000e+00 : f32
    %533 = vector.broadcast %cst_270 : f32 to vector<8x128xf32>
    %534 = arith.addf %533, %532 : vector<8x128xf32>
    %535 = arith.divf %533, %534 : vector<8x128xf32>
    %536 = vector.extract_strided_slice %523 {offsets = [0, 256], sizes = [8, 128], strides = [1, 1]} : vector<8x512xf32> to vector<8x128xf32>
    %537 = math.tanh %536 : vector<8x128xf32>
    %538 = vector.extract_strided_slice %523 {offsets = [0, 384], sizes = [8, 128], strides = [1, 1]} : vector<8x512xf32> to vector<8x128xf32>
    %539 = arith.negf %538 : vector<8x128xf32>
    %540 = math.exp %539 : vector<8x128xf32>
    %cst_271 = arith.constant 1.000000e+00 : f32
    %541 = vector.broadcast %cst_271 : f32 to vector<8x128xf32>
    %542 = arith.addf %541, %540 : vector<8x128xf32>
    %543 = arith.divf %541, %542 : vector<8x128xf32>
    %c0_272 = arith.constant 0 : index
    %c0_273 = arith.constant 0 : index
    %544 = vector.load %arg13[%c0_272, %c0_273] : memref<8x128xf32, #tpu.memory_space<vmem>>, vector<8x128xf32>
    %545 = arith.mulf %535, %544 : vector<8x128xf32>
    %546 = arith.mulf %529, %537 : vector<8x128xf32>
    %547 = arith.addf %545, %546 : vector<8x128xf32>
    %548 = math.tanh %547 : vector<8x128xf32>
    %549 = arith.mulf %543, %548 : vector<8x128xf32>
    %c0_274 = arith.constant 0 : index
    %c0_275 = arith.constant 0 : index
    %550 = vector.load %arg13[%c0_274, %c0_275] : memref<8x128xf32, #tpu.memory_space<vmem>>, vector<8x128xf32>
    tpu.vector_store %arg13[%c0_274, %c0_275], %547 {strides = array<i32>} : memref<8x128xf32, #tpu.memory_space<vmem>>, vector<8x128xf32>,
    %c0_276 = arith.constant 0 : index
    %c0_277 = arith.constant 0 : index
    %551 = vector.load %arg12[%c0_276, %c0_277] : memref<8x128xf32, #tpu.memory_space<vmem>>, vector<8x128xf32>
    tpu.vector_store %arg12[%c0_276, %c0_277], %549 {strides = array<i32>} : memref<8x128xf32, #tpu.memory_space<vmem>>, vector<8x128xf32>,
    %552 = arith.index_cast %515 : i32 to index
    %c0_278 = arith.constant 0 : index
    %553 = vector.load %arg11[%552, %c0_278] : memref<64x128xf32, #tpu.memory_space<vmem>>, vector<8x128xf32>
    tpu.vector_store %arg11[%552, %c0_278], %549 {strides = array<i32>} : memref<64x128xf32, #tpu.memory_space<vmem>>, vector<8x128xf32>,
    %c5_i32_279 = arith.constant 5 : i32
    %c8_i32_280 = arith.constant 8 : i32
    %554 = arith.muli %c5_i32_279, %c8_i32_280 : i32
    %555 = tpu.assume_multiple %554, 8 : i32
    %556 = arith.index_cast %555 : i32 to index
    %c0_281 = arith.constant 0 : index
    %557 = vector.load %arg10[%556, %c0_281] : memref<64x512xf32, #tpu.memory_space<vmem>>, vector<8x512xf32>
    %c0_282 = arith.constant 0 : index
    %c0_283 = arith.constant 0 : index
    %558 = vector.load %arg12[%c0_282, %c0_283] : memref<8x128xf32, #tpu.memory_space<vmem>>, vector<8x128xf32>
    %559 = arith.truncf %558 : vector<8x128xf32> to vector<8x128xbf16>
    %c1_284 = arith.constant 1 : index
    %c0_285 = arith.constant 0 : index
    %c0_286 = arith.constant 0 : index
    %560 = vector.load %arg3[%c1_284, %c0_285, %c0_286] : memref<2x128x512xbf16, #tpu.memory_space<vmem>>, vector<1x128x512xbf16>
    %561 = vector.shape_cast %560 : vector<1x128x512xbf16> to vector<128x512xbf16>
    %cst_287 = arith.constant dense<0.000000e+00> : vector<8x512xf32>
    %562 = tpu.matmul %559, %561, %cst_287 {dimension_numbers = #tpu.dot_dimension_numbers<[1], [0], [0], [1], [0, 0, 1, 1], [], []>} : vector<8x128xbf16>, vector<128x512xbf16>, vector<8x512xf32> -> vector<8x512xf32>
    %563 = arith.addf %557, %562 : vector<8x512xf32>
    %564 = vector.extract_strided_slice %563 {offsets = [0, 0], sizes = [8, 128], strides = [1, 1]} : vector<8x512xf32> to vector<8x128xf32>
    %565 = arith.negf %564 : vector<8x128xf32>
    %566 = math.exp %565 : vector<8x128xf32>
    %cst_288 = arith.constant 1.000000e+00 : f32
    %567 = vector.broadcast %cst_288 : f32 to vector<8x128xf32>
    %568 = arith.addf %567, %566 : vector<8x128xf32>
    %569 = arith.divf %567, %568 : vector<8x128xf32>
    %570 = vector.extract_strided_slice %563 {offsets = [0, 128], sizes = [8, 128], strides = [1, 1]} : vector<8x512xf32> to vector<8x128xf32>
    %571 = arith.negf %570 : vector<8x128xf32>
    %572 = math.exp %571 : vector<8x128xf32>
    %cst_289 = arith.constant 1.000000e+00 : f32
    %573 = vector.broadcast %cst_289 : f32 to vector<8x128xf32>
    %574 = arith.addf %573, %572 : vector<8x128xf32>
    %575 = arith.divf %573, %574 : vector<8x128xf32>
    %576 = vector.extract_strided_slice %563 {offsets = [0, 256], sizes = [8, 128], strides = [1, 1]} : vector<8x512xf32> to vector<8x128xf32>
    %577 = math.tanh %576 : vector<8x128xf32>
    %578 = vector.extract_strided_slice %563 {offsets = [0, 384], sizes = [8, 128], strides = [1, 1]} : vector<8x512xf32> to vector<8x128xf32>
    %579 = arith.negf %578 : vector<8x128xf32>
    %580 = math.exp %579 : vector<8x128xf32>
    %cst_290 = arith.constant 1.000000e+00 : f32
    %581 = vector.broadcast %cst_290 : f32 to vector<8x128xf32>
    %582 = arith.addf %581, %580 : vector<8x128xf32>
    %583 = arith.divf %581, %582 : vector<8x128xf32>
    %c0_291 = arith.constant 0 : index
    %c0_292 = arith.constant 0 : index
    %584 = vector.load %arg13[%c0_291, %c0_292] : memref<8x128xf32, #tpu.memory_space<vmem>>, vector<8x128xf32>
    %585 = arith.mulf %575, %584 : vector<8x128xf32>
    %586 = arith.mulf %569, %577 : vector<8x128xf32>
    %587 = arith.addf %585, %586 : vector<8x128xf32>
    %588 = math.tanh %587 : vector<8x128xf32>
    %589 = arith.mulf %583, %588 : vector<8x128xf32>
    %c0_293 = arith.constant 0 : index
    %c0_294 = arith.constant 0 : index
    %590 = vector.load %arg13[%c0_293, %c0_294] : memref<8x128xf32, #tpu.memory_space<vmem>>, vector<8x128xf32>
    tpu.vector_store %arg13[%c0_293, %c0_294], %587 {strides = array<i32>} : memref<8x128xf32, #tpu.memory_space<vmem>>, vector<8x128xf32>,
    %c0_295 = arith.constant 0 : index
    %c0_296 = arith.constant 0 : index
    %591 = vector.load %arg12[%c0_295, %c0_296] : memref<8x128xf32, #tpu.memory_space<vmem>>, vector<8x128xf32>
    tpu.vector_store %arg12[%c0_295, %c0_296], %589 {strides = array<i32>} : memref<8x128xf32, #tpu.memory_space<vmem>>, vector<8x128xf32>,
    %592 = arith.index_cast %555 : i32 to index
    %c0_297 = arith.constant 0 : index
    %593 = vector.load %arg11[%592, %c0_297] : memref<64x128xf32, #tpu.memory_space<vmem>>, vector<8x128xf32>
    tpu.vector_store %arg11[%592, %c0_297], %589 {strides = array<i32>} : memref<64x128xf32, #tpu.memory_space<vmem>>, vector<8x128xf32>,
    %c6_i32_298 = arith.constant 6 : i32
    %c8_i32_299 = arith.constant 8 : i32
    %594 = arith.muli %c6_i32_298, %c8_i32_299 : i32
    %595 = tpu.assume_multiple %594, 8 : i32
    %596 = arith.index_cast %595 : i32 to index
    %c0_300 = arith.constant 0 : index
    %597 = vector.load %arg10[%596, %c0_300] : memref<64x512xf32, #tpu.memory_space<vmem>>, vector<8x512xf32>
    %c0_301 = arith.constant 0 : index
    %c0_302 = arith.constant 0 : index
    %598 = vector.load %arg12[%c0_301, %c0_302] : memref<8x128xf32, #tpu.memory_space<vmem>>, vector<8x128xf32>
    %599 = arith.truncf %598 : vector<8x128xf32> to vector<8x128xbf16>
    %c1_303 = arith.constant 1 : index
    %c0_304 = arith.constant 0 : index
    %c0_305 = arith.constant 0 : index
    %600 = vector.load %arg3[%c1_303, %c0_304, %c0_305] : memref<2x128x512xbf16, #tpu.memory_space<vmem>>, vector<1x128x512xbf16>
    %601 = vector.shape_cast %600 : vector<1x128x512xbf16> to vector<128x512xbf16>
    %cst_306 = arith.constant dense<0.000000e+00> : vector<8x512xf32>
    %602 = tpu.matmul %599, %601, %cst_306 {dimension_numbers = #tpu.dot_dimension_numbers<[1], [0], [0], [1], [0, 0, 1, 1], [], []>} : vector<8x128xbf16>, vector<128x512xbf16>, vector<8x512xf32> -> vector<8x512xf32>
    %603 = arith.addf %597, %602 : vector<8x512xf32>
    %604 = vector.extract_strided_slice %603 {offsets = [0, 0], sizes = [8, 128], strides = [1, 1]} : vector<8x512xf32> to vector<8x128xf32>
    %605 = arith.negf %604 : vector<8x128xf32>
    %606 = math.exp %605 : vector<8x128xf32>
    %cst_307 = arith.constant 1.000000e+00 : f32
    %607 = vector.broadcast %cst_307 : f32 to vector<8x128xf32>
    %608 = arith.addf %607, %606 : vector<8x128xf32>
    %609 = arith.divf %607, %608 : vector<8x128xf32>
    %610 = vector.extract_strided_slice %603 {offsets = [0, 128], sizes = [8, 128], strides = [1, 1]} : vector<8x512xf32> to vector<8x128xf32>
    %611 = arith.negf %610 : vector<8x128xf32>
    %612 = math.exp %611 : vector<8x128xf32>
    %cst_308 = arith.constant 1.000000e+00 : f32
    %613 = vector.broadcast %cst_308 : f32 to vector<8x128xf32>
    %614 = arith.addf %613, %612 : vector<8x128xf32>
    %615 = arith.divf %613, %614 : vector<8x128xf32>
    %616 = vector.extract_strided_slice %603 {offsets = [0, 256], sizes = [8, 128], strides = [1, 1]} : vector<8x512xf32> to vector<8x128xf32>
    %617 = math.tanh %616 : vector<8x128xf32>
    %618 = vector.extract_strided_slice %603 {offsets = [0, 384], sizes = [8, 128], strides = [1, 1]} : vector<8x512xf32> to vector<8x128xf32>
    %619 = arith.negf %618 : vector<8x128xf32>
    %620 = math.exp %619 : vector<8x128xf32>
    %cst_309 = arith.constant 1.000000e+00 : f32
    %621 = vector.broadcast %cst_309 : f32 to vector<8x128xf32>
    %622 = arith.addf %621, %620 : vector<8x128xf32>
    %623 = arith.divf %621, %622 : vector<8x128xf32>
    %c0_310 = arith.constant 0 : index
    %c0_311 = arith.constant 0 : index
    %624 = vector.load %arg13[%c0_310, %c0_311] : memref<8x128xf32, #tpu.memory_space<vmem>>, vector<8x128xf32>
    %625 = arith.mulf %615, %624 : vector<8x128xf32>
    %626 = arith.mulf %609, %617 : vector<8x128xf32>
    %627 = arith.addf %625, %626 : vector<8x128xf32>
    %628 = math.tanh %627 : vector<8x128xf32>
    %629 = arith.mulf %623, %628 : vector<8x128xf32>
    %c0_312 = arith.constant 0 : index
    %c0_313 = arith.constant 0 : index
    %630 = vector.load %arg13[%c0_312, %c0_313] : memref<8x128xf32, #tpu.memory_space<vmem>>, vector<8x128xf32>
    tpu.vector_store %arg13[%c0_312, %c0_313], %627 {strides = array<i32>} : memref<8x128xf32, #tpu.memory_space<vmem>>, vector<8x128xf32>,
    %c0_314 = arith.constant 0 : index
    %c0_315 = arith.constant 0 : index
    %631 = vector.load %arg12[%c0_314, %c0_315] : memref<8x128xf32, #tpu.memory_space<vmem>>, vector<8x128xf32>
    tpu.vector_store %arg12[%c0_314, %c0_315], %629 {strides = array<i32>} : memref<8x128xf32, #tpu.memory_space<vmem>>, vector<8x128xf32>,
    %632 = arith.index_cast %595 : i32 to index
    %c0_316 = arith.constant 0 : index
    %633 = vector.load %arg11[%632, %c0_316] : memref<64x128xf32, #tpu.memory_space<vmem>>, vector<8x128xf32>
    tpu.vector_store %arg11[%632, %c0_316], %629 {strides = array<i32>} : memref<64x128xf32, #tpu.memory_space<vmem>>, vector<8x128xf32>,
    %c7_i32_317 = arith.constant 7 : i32
    %c8_i32_318 = arith.constant 8 : i32
    %634 = arith.muli %c7_i32_317, %c8_i32_318 : i32
    %635 = tpu.assume_multiple %634, 8 : i32
    %636 = arith.index_cast %635 : i32 to index
    %c0_319 = arith.constant 0 : index
    %637 = vector.load %arg10[%636, %c0_319] : memref<64x512xf32, #tpu.memory_space<vmem>>, vector<8x512xf32>
    %c0_320 = arith.constant 0 : index
    %c0_321 = arith.constant 0 : index
    %638 = vector.load %arg12[%c0_320, %c0_321] : memref<8x128xf32, #tpu.memory_space<vmem>>, vector<8x128xf32>
    %639 = arith.truncf %638 : vector<8x128xf32> to vector<8x128xbf16>
    %c1_322 = arith.constant 1 : index
    %c0_323 = arith.constant 0 : index
    %c0_324 = arith.constant 0 : index
    %640 = vector.load %arg3[%c1_322, %c0_323, %c0_324] : memref<2x128x512xbf16, #tpu.memory_space<vmem>>, vector<1x128x512xbf16>
    %641 = vector.shape_cast %640 : vector<1x128x512xbf16> to vector<128x512xbf16>
    %cst_325 = arith.constant dense<0.000000e+00> : vector<8x512xf32>
    %642 = tpu.matmul %639, %641, %cst_325 {dimension_numbers = #tpu.dot_dimension_numbers<[1], [0], [0], [1], [0, 0, 1, 1], [], []>} : vector<8x128xbf16>, vector<128x512xbf16>, vector<8x512xf32> -> vector<8x512xf32>
    %643 = arith.addf %637, %642 : vector<8x512xf32>
    %644 = vector.extract_strided_slice %643 {offsets = [0, 0], sizes = [8, 128], strides = [1, 1]} : vector<8x512xf32> to vector<8x128xf32>
    %645 = arith.negf %644 : vector<8x128xf32>
    %646 = math.exp %645 : vector<8x128xf32>
    %cst_326 = arith.constant 1.000000e+00 : f32
    %647 = vector.broadcast %cst_326 : f32 to vector<8x128xf32>
    %648 = arith.addf %647, %646 : vector<8x128xf32>
    %649 = arith.divf %647, %648 : vector<8x128xf32>
    %650 = vector.extract_strided_slice %643 {offsets = [0, 128], sizes = [8, 128], strides = [1, 1]} : vector<8x512xf32> to vector<8x128xf32>
    %651 = arith.negf %650 : vector<8x128xf32>
    %652 = math.exp %651 : vector<8x128xf32>
    %cst_327 = arith.constant 1.000000e+00 : f32
    %653 = vector.broadcast %cst_327 : f32 to vector<8x128xf32>
    %654 = arith.addf %653, %652 : vector<8x128xf32>
    %655 = arith.divf %653, %654 : vector<8x128xf32>
    %656 = vector.extract_strided_slice %643 {offsets = [0, 256], sizes = [8, 128], strides = [1, 1]} : vector<8x512xf32> to vector<8x128xf32>
    %657 = math.tanh %656 : vector<8x128xf32>
    %658 = vector.extract_strided_slice %643 {offsets = [0, 384], sizes = [8, 128], strides = [1, 1]} : vector<8x512xf32> to vector<8x128xf32>
    %659 = arith.negf %658 : vector<8x128xf32>
    %660 = math.exp %659 : vector<8x128xf32>
    %cst_328 = arith.constant 1.000000e+00 : f32
    %661 = vector.broadcast %cst_328 : f32 to vector<8x128xf32>
    %662 = arith.addf %661, %660 : vector<8x128xf32>
    %663 = arith.divf %661, %662 : vector<8x128xf32>
    %c0_329 = arith.constant 0 : index
    %c0_330 = arith.constant 0 : index
    %664 = vector.load %arg13[%c0_329, %c0_330] : memref<8x128xf32, #tpu.memory_space<vmem>>, vector<8x128xf32>
    %665 = arith.mulf %655, %664 : vector<8x128xf32>
    %666 = arith.mulf %649, %657 : vector<8x128xf32>
    %667 = arith.addf %665, %666 : vector<8x128xf32>
    %668 = math.tanh %667 : vector<8x128xf32>
    %669 = arith.mulf %663, %668 : vector<8x128xf32>
    %c0_331 = arith.constant 0 : index
    %c0_332 = arith.constant 0 : index
    %670 = vector.load %arg13[%c0_331, %c0_332] : memref<8x128xf32, #tpu.memory_space<vmem>>, vector<8x128xf32>
    tpu.vector_store %arg13[%c0_331, %c0_332], %667 {strides = array<i32>} : memref<8x128xf32, #tpu.memory_space<vmem>>, vector<8x128xf32>,
    %c0_333 = arith.constant 0 : index
    %c0_334 = arith.constant 0 : index
    %671 = vector.load %arg12[%c0_333, %c0_334] : memref<8x128xf32, #tpu.memory_space<vmem>>, vector<8x128xf32>
    tpu.vector_store %arg12[%c0_333, %c0_334], %669 {strides = array<i32>} : memref<8x128xf32, #tpu.memory_space<vmem>>, vector<8x128xf32>,
    %672 = arith.index_cast %635 : i32 to index
    %c0_335 = arith.constant 0 : index
    %673 = vector.load %arg11[%672, %c0_335] : memref<64x128xf32, #tpu.memory_space<vmem>>, vector<8x128xf32>
    tpu.vector_store %arg11[%672, %c0_335], %669 {strides = array<i32>} : memref<64x128xf32, #tpu.memory_space<vmem>>, vector<8x128xf32>,
    %c8_i32_336 = arith.constant 8 : i32
    %c0_337 = arith.constant 0 : index
    %c0_338 = arith.constant 0 : index
    %674 = vector.load %arg12[%c0_337, %c0_338] : memref<8x128xf32, #tpu.memory_space<vmem>>, vector<8x128xf32>
    %c1_339 = arith.constant 1 : index
    %c0_340 = arith.constant 0 : index
    %c0_341 = arith.constant 0 : index
    %675 = vector.load %arg8[%c1_339, %c0_340, %c0_341] : memref<2x8x128xf32, #tpu.memory_space<vmem>>, vector<1x8x128xf32>
    %676 = vector.shape_cast %675 : vector<1x8x128xf32> to vector<8x128xf32>
    %677 = vector.shape_cast %674 : vector<8x128xf32> to vector<1x8x128xf32>
    tpu.vector_store %arg8[%c1_339, %c0_340, %c0_341], %677 {strides = array<i32>} : memref<2x8x128xf32, #tpu.memory_space<vmem>>, vector<1x8x128xf32>,
    %c0_342 = arith.constant 0 : index
    %c0_343 = arith.constant 0 : index
    %678 = vector.load %arg13[%c0_342, %c0_343] : memref<8x128xf32, #tpu.memory_space<vmem>>, vector<8x128xf32>
    %c1_344 = arith.constant 1 : index
    %c0_345 = arith.constant 0 : index
    %c0_346 = arith.constant 0 : index
    %679 = vector.load %arg9[%c1_344, %c0_345, %c0_346] : memref<2x8x128xf32, #tpu.memory_space<vmem>>, vector<1x8x128xf32>
    %680 = vector.shape_cast %679 : vector<1x8x128xf32> to vector<8x128xf32>
    %681 = vector.shape_cast %678 : vector<8x128xf32> to vector<1x8x128xf32>
    tpu.vector_store %arg9[%c1_344, %c0_345, %c0_346], %681 {strides = array<i32>} : memref<2x8x128xf32, #tpu.memory_space<vmem>>, vector<1x8x128xf32>,
    %c0_347 = arith.constant 0 : index
    %c0_348 = arith.constant 0 : index
    %682 = vector.load %arg11[%c0_347, %c0_348] : memref<64x128xf32, #tpu.memory_space<vmem>>, vector<64x128xf32>
    %683 = arith.truncf %682 : vector<64x128xf32> to vector<64x128xbf16>
    %c0_349 = arith.constant 0 : index
    %c0_350 = arith.constant 0 : index
    %684 = vector.load %arg5[%c0_349, %c0_350] : memref<128x128xbf16, #tpu.memory_space<vmem>>, vector<128x128xbf16>
    %cst_351 = arith.constant dense<0.000000e+00> : vector<64x128xf32>
    %685 = tpu.matmul %683, %684, %cst_351 {dimension_numbers = #tpu.dot_dimension_numbers<[1], [0], [0], [1], [0, 0, 1, 1], [], []>} : vector<64x128xbf16>, vector<128x128xbf16>, vector<64x128xf32> -> vector<64x128xf32>
    %c0_352 = arith.constant 0 : index
    %c0_353 = arith.constant 0 : index
    %686 = vector.load %arg6[%c0_352, %c0_353] : memref<1x128xf32, #tpu.memory_space<vmem>>, vector<1x128xf32>
    %687 = vector.broadcast %686 : vector<1x128xf32> to vector<64x128xf32>
    %688 = arith.addf %685, %687 : vector<64x128xf32>
    %c0_354 = arith.constant 0 : index
    %c0_355 = arith.constant 0 : index
    %689 = vector.load %arg7[%c0_354, %c0_355] : memref<64x128xf32, #tpu.memory_space<vmem>>, vector<64x128xf32>
    tpu.vector_store %arg7[%c0_354, %c0_355], %688 {strides = array<i32>} : memref<64x128xf32, #tpu.memory_space<vmem>>, vector<64x128xf32>,
    return
  }
}

</mosaic_0001>

<bundles_post_ra>
// kernel: tpu_custom_call.1
= control target key start
LH: loop header
LB: loop body
LE: loop exit
PB: predicated region body
PF: predicated region fallthrough
CT: control target
= control target key end

     0   :  { %15 = vsyncpa [#allocation7], 0  ;;  %s8955_s0 = inlined_call_operand.hbm [shape: bf16[64,128], index: 0, kind: input, shape index: {}]   ;;  %s8956_s1 = inlined_call_operand.hbm [shape: bf16[128,512], index: 1, kind: input, shape index: {}]   ;;  %s8957_s2 = inlined_call_operand.hbm [shape: bf16[1,128,512], index: 2, kind: input, shape index: {}]   ;;  %s8958_s3 = inlined_call_operand.hbm [shape: bf16[2,128,512], index: 3, kind: input, shape index: {}]   ;;  %s8959_s4 = inlined_call_operand.hbm [shape: f32[2,1,512], index: 4, kind: input, shape index: {}]   ;;  %s8960_s5 = inlined_call_operand.hbm [shape: bf16[128,128], index: 5, kind: input, shape index: {}]   ;;  %s8961_s6 = inlined_call_operand.vmem [shape: f32[1,128], index: 6, kind: input, shape index: {}]   ;;  %s8962_s7 = inlined_call_operand.hbm [shape: f32[64,128], index: 7, kind: output, shape index: {0}]   ;;  %s8963_s8 = inlined_call_operand.hbm [shape: f32[2,8,128], index: 8, kind: output, shape index: {1}]   ;;  %s8964_s9 = inlined_call_operand.hbm [shape: f32[2,8,128], index: 9, kind: output, shape index: {2}]  }
   0x1   :  { %16 = vsyncpa [#allocation10], 0 }
   0x2   :  { %17 = vsyncpa [#allocation13], 0 }
   0x3   :  { %18 = vsyncpa [#allocation16], 0 }
   0x4   :  { %19 = vsyncpa [#allocation8], 0 }
   0x5   :  { %20 = vsyncpa [#allocation19], 0  ;;  %s7661_s30 = smov [#allocation9]  }
   0x6   :  { %s38_s10 = sshll.u32 %s7661_s30, 4  ;;  %s39_s10 = int_to_ptr.vmem [resolvable:$true] %s38_s10 }
   0x7   :  { %s7477_s11 = scalar_lea.vmem %s39_s10, 4096  ;;  %p7482_p1 = scmp.lt.s32.totalorder %s39_s10, %s39_s10 }
   0x8   :  { %p7478_p0 = scmp.ne.s32.totalorder %s39_s10, %s7477_s11  ;;  %p7483_p2 = scmp.lt.s32.totalorder %s7477_s11, %s7477_s11 }
   0xa   :  { %p7484_p3 = por %p7483_p2, %p7482_p1 }
   0xc   :  { %p7485_p4 = pnand %p7484_p3, %p7478_p0 }
   0xe   :  { %7488 = shalt.err (!%p7485_p4)
}
   0xf   :  { %s7662_s12 = smov 256   ;;  %s7663_s13 = smov 16  }
  0x10   :  { %44 = dma.hbm_to_vmem [thread:$0]  %s8956_s1, 4096, %s39_s10, [#allocation10], %s7662_s12, %s7662_s12, %s7663_s13  }
  0x11   :  { %s7664_s16 = smov [#allocation12]   ;;  %s7665_s18 = smov [#allocation6]  }
  0x12   :  { %s62_s17 = sshll.u32 %s7664_s16, 4  ;;  %s26_s19 = sshll.u32 %s7665_s18, 4  ;;  %s63_s17 = int_to_ptr.vmem [resolvable:$true] %s62_s17  ;;  %s27_s19 = int_to_ptr.vmem [resolvable:$true] %s26_s19 }
  0x13   :  { %s7497_s20 = scalar_lea.vmem %s63_s17, 8192  ;;  %p7502_p6 = scmp.lt.s32.totalorder %s63_s17, %s63_s17 }
  0x14   :  { %p7498_p5 = scmp.ne.s32.totalorder %s63_s17, %s7497_s20  ;;  %p7503_p7 = scmp.lt.s32.totalorder %s7497_s20, %s7497_s20 }
  0x16   :  { %p7504_p8 = por %p7503_p7, %p7502_p6 }
  0x18   :  { %p7505_p9 = pnand %p7504_p8, %p7498_p5 }
  0x1a   :  { %7508 = shalt.err (!%p7505_p9)
}
  0x1b   :  { %68 = dma.hbm_to_vmem [thread:$0]  %s8958_s3, 8192, %s63_s17, [#allocation13], %s7662_s12, %s7662_s12, %s7663_s13  }
  0x1c   :  { %s7517_s1 = scalar_lea.vmem %s27_s19, 512  ;;  %p7522_p11 = scmp.lt.s32.totalorder %s27_s19, %s27_s19 }
  0x1d   :  { %p7518_p10 = scmp.ne.s32.totalorder %s27_s19, %s7517_s1  ;;  %p7523_p12 = scmp.lt.s32.totalorder %s7517_s1, %s7517_s1 }
  0x1f   :  { %p7524_p13 = por %p7523_p12, %p7522_p11 }
  0x21   :  { %p7525_p0 = pnand %p7524_p13, %p7518_p10 }
  0x23   :  { %7528 = shalt.err (!%p7525_p0)
}
  0x24   :  { %s7666_s23 = smov 64   ;;  %s7667_s24 = smov 4  }
  0x25   :  { %32 = dma.hbm_to_vmem [thread:$0]  %s8955_s0, 512, %s27_s19, [#allocation7], %s7666_s23, %s7666_s23, %s7667_s24  }
  0x26   :  { %s7668_s27 = smov [#allocation11]   ;;  %s7669_s3 = smov [#allocation14]  }
  0x27   :  { %s50_s28 = sshll.u32 %s7668_s27, 4  ;;  %s74_s29 = sshll.u32 %s7669_s3, 4  ;;  %s51_s28 = int_to_ptr.vmem [resolvable:$true] %s50_s28  ;;  %s75_s29 = int_to_ptr.vmem [resolvable:$true] %s74_s29 }
  0x28   :  { %s7537_s30 = scalar_lea.vmem %s51_s28, 4096  ;;  %p7542_p2 = scmp.lt.s32.totalorder %s51_s28, %s51_s28 }
  0x29   :  { %p7538_p1 = scmp.ne.s32.totalorder %s51_s28, %s7537_s30  ;;  %p7543_p3 = scmp.lt.s32.totalorder %s7537_s30, %s7537_s30 }
  0x2b   :  { %p7544_p4 = por %p7543_p3, %p7542_p2 }
  0x2d   :  { %p7545_p5 = pnand %p7544_p4, %p7538_p1 }
  0x2f   :  { %7548 = shalt.err (!%p7545_p5)
}
  0x30   :  { %56 = dma.hbm_to_vmem [thread:$0]  %s8957_s2, 4096, %s51_s28, [#allocation10], %s7662_s12, %s7662_s12, %s7663_s13  }
  0x31   :  { %s7557_s0 = scalar_lea.vmem %s75_s29, 128  ;;  %p7562_p7 = scmp.lt.s32.totalorder %s75_s29, %s75_s29 }
  0x32   :  { %p7558_p6 = scmp.ne.s32.totalorder %s75_s29, %s7557_s0  ;;  %p7563_p8 = scmp.lt.s32.totalorder %s7557_s0, %s7557_s0 }
  0x34   :  { %p7564_p9 = por %p7563_p8, %p7562_p7 }
  0x36   :  { %p7565_p10 = pnand %p7564_p9, %p7558_p6 }
  0x38   :  { %7568 = shalt.err (!%p7565_p10)
}
  0x39   :  { %80 = dma.hbm_to_vmem [thread:$0]  %s8959_s4, 128, %s75_s29, [#allocation13], %s7666_s23, %s7666_s23, %s7667_s24  }
  0x3a   :  { %s7670_s16 = smov [#allocation15]  }
  0x3b   :  { %s86_s17 = sshll.u32 %s7670_s16, 4  ;;  %s87_s17 = int_to_ptr.vmem [resolvable:$true] %s86_s17 }
  0x3c   :  { %s7577_s18 = scalar_lea.vmem %s87_s17, 1024  ;;  %p7582_p12 = scmp.lt.s32.totalorder %s87_s17, %s87_s17 }
  0x3d   :  { %p7578_p11 = scmp.ne.s32.totalorder %s87_s17, %s7577_s18  ;;  %p7583_p13 = scmp.lt.s32.totalorder %s7577_s18, %s7577_s18 }
  0x3f   :  { %p7584_p0 = por %p7583_p13, %p7582_p12 }
  0x41   :  { %p7585_p1 = pnand %p7584_p0, %p7578_p11 }
  0x43   :  { %7588 = shalt.err (!%p7585_p1)
}
  0x44   :  { %92 = dma.hbm_to_vmem [thread:$0]  %s8960_s5, 1024, %s87_s17, [#allocation16], %s7666_s23, %s7666_s23, %s7667_s24  }
  0x45   :  { %7649 = dma.done.wait [#allocation7], 512  }
  0x46   :  { %7650 = vsyncadd [#allocation7], 4294966784 }
  0x47   :  { %7651 = dma.done.wait [#allocation10], 8192  }
  0x48   :  { %7652 = vsyncadd [#allocation10], 4294959104 }
  0x49   :  { %7653 = dma.done.wait [#allocation13], 8320  }
  0x4a   :  { %7654 = vsyncadd [#allocation13], 4294958976 }
  0x4b   :  { %7655 = dma.done.wait [#allocation16], 1024  }
  0x4c   :  { %7656 = vsyncadd [#allocation16], 4294966272  ;;  %v8969_v0 = vmov 0   ;;  %v6885_v1 = vld [vmem:[#allocation9 + $0xe4] ss:$16 sps:$4 sm:$0xff]   ;;  %v8967_v38 = vmov 0.0|0.0  }
  0x4d   :  { %392 = vmatprep.mubr.bf16.mxu1 %v8969_v0  ;;  %773 = vmatprep.mubr.bf16.mxu0 %v8969_v0  ;;  %v6887_v2 = vld [vmem:[#allocation9 + $0xe0] ss:$16 sps:$4 sm:$0xff]   ;;  %v7766_v3 = vld [vmem:[#allocation12 + $0xe4] ss:$16 sps:$4 sm:$0xff]   ;;  %v6936_v32 = vld [vmem:[#allocation9 + $0xec] ss:$16 sps:$4 sm:$0xff]  }
  0x4e   :  { %360 = vmatprep.subr.bf16.mxu1 %v6885_v1  ;;  %v7768_v4 = vld [vmem:[#allocation12 + $0xe0] ss:$16 sps:$4 sm:$0xff]   ;;  %v6891_v5 = vld [vmem:[#allocation9 + $0xc4] ss:$16 sps:$4 sm:$0xff]   ;;  %741 = vmatprep.subr.bf16.mxu0 %v7766_v3  ;;  %v6934_v35 = vld [vmem:[#allocation9 + $0xe8] ss:$16 sps:$4 sm:$0xff]  }
  0x4f   :  { %361 = vmatpush1.bf16.msra.mxu1 %v6887_v2  ;;  %v6893_v6 = vld [vmem:[#allocation9 + $0xc0] ss:$16 sps:$4 sm:$0xff]   ;;  %v7771_v7 = vld [vmem:[#allocation12 + $0xc4] ss:$16 sps:$4 sm:$0xff]   ;;  %742 = vmatpush1.bf16.msra.mxu0 %v7768_v4  ;;  %v6939_v36 = vld [vmem:[#allocation9 + $0xcc] ss:$16 sps:$4 sm:$0xff]  }
  0x50   :  { %362 = vmatprep.subr.bf16.mxu1 %v6891_v5  ;;  %v7774_v8 = vld [vmem:[#allocation12 + $0xc0] ss:$16 sps:$4 sm:$0xff]   ;;  %743 = vmatprep.subr.bf16.mxu0 %v7771_v7  ;;  %v6897_v9 = vld [vmem:[#allocation9 + $0xa4] ss:$16 sps:$4 sm:$0xff]   ;;  %v6937_v37 = vld [vmem:[#allocation9 + $0xc8] ss:$16 sps:$4 sm:$0xff]  }
  0x51   :  { %v6899_v10 = vld [vmem:[#allocation9 + $0xa0] ss:$16 sps:$4 sm:$0xff]   ;;  %v7777_v11 = vld [vmem:[#allocation12 + $0xa4] ss:$16 sps:$4 sm:$0xff]   ;;  %v6943_v39 = vld [vmem:[#allocation9 + $0xac] ss:$16 sps:$4 sm:$0xff]  }
  0x52   :  { %v6903_v12 = vld [vmem:[#allocation9 + $0x84] ss:$16 sps:$4 sm:$0xff]   ;;  %v7780_v13 = vld [vmem:[#allocation12 + $0xa0] ss:$16 sps:$4 sm:$0xff]   ;;  %v6940_v40 = vld [vmem:[#allocation6 + $0x8] sm:$0xff]  }
  0x53   :  { %363 = vmatpush1.bf16.msra.mxu1 %v6893_v6  ;;  %744 = vmatpush1.bf16.msra.mxu0 %v7774_v8  ;;  %v7783_v14 = vld [vmem:[#allocation12 + $0x84] ss:$16 sps:$4 sm:$0xff]   ;;  %v6905_v15 = vld [vmem:[#allocation9 + $0x80] ss:$16 sps:$4 sm:$0xff]   ;;  %v6941_v41 = vld [vmem:[#allocation9 + $0xa8] ss:$16 sps:$4 sm:$0xff]  }
  0x54   :  { %364 = vmatprep.subr.bf16.mxu1 %v6897_v9  ;;  %745 = vmatprep.subr.bf16.mxu0 %v7777_v11  ;;  %v6909_v16 = vld [vmem:[#allocation9 + $0x64] ss:$16 sps:$4 sm:$0xff]   ;;  %v7786_v17 = vld [vmem:[#allocation12 + $0x80] ss:$16 sps:$4 sm:$0xff]   ;;  %v6946_v42 = vld [vmem:[#allocation9 + $0x8c] ss:$16 sps:$4 sm:$0xff]  }
  0x55   :  { %v7789_v18 = vld [vmem:[#allocation12 + $0x64] ss:$16 sps:$4 sm:$0xff]   ;;  %v6911_v19 = vld [vmem:[#allocation9 + $0x60] ss:$16 sps:$4 sm:$0xff]   ;;  %v6944_v43 = vld [vmem:[#allocation9 + $0x88] ss:$16 sps:$4 sm:$0xff]  }
  0x56   :  { %v6915_v20 = vld [vmem:[#allocation9 + $0x44] ss:$16 sps:$4 sm:$0xff]   ;;  %v7792_v21 = vld [vmem:[#allocation12 + $0x60] ss:$16 sps:$4 sm:$0xff]   ;;  %v6950_v44 = vld [vmem:[#allocation9 + $0x6c] ss:$16 sps:$4 sm:$0xff]  }
  0x57   :  { %365 = vmatpush1.bf16.msra.mxu1 %v6899_v10  ;;  %746 = vmatpush1.bf16.msra.mxu0 %v7780_v13  ;;  %v7795_v22 = vld [vmem:[#allocation12 + $0x44] ss:$16 sps:$4 sm:$0xff]   ;;  %v6917_v23 = vld [vmem:[#allocation9 + $0x40] ss:$16 sps:$4 sm:$0xff]   ;;  %v6948_v46 = vld [vmem:[#allocation9 + $0x68] ss:$16 sps:$4 sm:$0xff]  }
  0x58   :  { %366 = vmatprep.subr.bf16.mxu1 %v6903_v12  ;;  %747 = vmatprep.subr.bf16.mxu0 %v7783_v14  ;;  %v6921_v24 = vld [vmem:[#allocation9 + $0x24] ss:$16 sps:$4 sm:$0xff]   ;;  %v7798_v25 = vld [vmem:[#allocation12 + $0x40] ss:$16 sps:$4 sm:$0xff]   ;;  %v6953_v47 = vld [vmem:[#allocation9 + $0x4c] ss:$16 sps:$4 sm:$0xff]  }
  0x59   :  { %v7801_v26 = vld [vmem:[#allocation12 + $0x24] ss:$16 sps:$4 sm:$0xff]   ;;  %v6923_v27 = vld [vmem:[#allocation9 + $0x20] ss:$16 sps:$4 sm:$0xff]   ;;  %v6951_v48 = vld [vmem:[#allocation9 + $0x48] ss:$16 sps:$4 sm:$0xff]  }
  0x5a   :  { %v6927_v28 = vld [vmem:[#allocation9 + $0x4] ss:$16 sps:$4 sm:$0xff]   ;;  %v7804_v29 = vld [vmem:[#allocation12 + $0x20] ss:$16 sps:$4 sm:$0xff]   ;;  %v6957_v49 = vld [vmem:[#allocation9 + $0x2c] ss:$16 sps:$4 sm:$0xff]  }
  0x5b   :  { %367 = vmatpush1.bf16.msra.mxu1 %v6905_v15  ;;  %748 = vmatpush1.bf16.msra.mxu0 %v7786_v17  ;;  %v7807_v30 = vld [vmem:[#allocation12 + $0x4] ss:$16 sps:$4 sm:$0xff]   ;;  %v6929_v31 = vld [vmem:[#allocation9] ss:$16 sps:$4 sm:$0xff]   ;;  %v6954_v50 = vld [vmem:[#allocation6 + $0x18] sm:$0xff]  }
  0x5c   :  { %368 = vmatprep.subr.bf16.mxu1 %v6909_v16  ;;  %749 = vmatprep.subr.bf16.mxu0 %v7789_v18  ;;  %v7810_v33 = vld [vmem:[#allocation12] ss:$16 sps:$4 sm:$0xff]   ;;  %v6955_v51 = vld [vmem:[#allocation9 + $0x28] ss:$16 sps:$4 sm:$0xff]   ;;  %v6960_v52 = vld [vmem:[#allocation9 + $0xc] ss:$16 sps:$4 sm:$0xff]  }
  0x5d   :  { %v7813_v34 = vld [vmem:[#allocation6] sm:$0xff]   ;;  %v6947_v45 = vld [vmem:[#allocation6 + $0x10] sm:$0xff]   ;;  %v6958_v53 = vld [vmem:[#allocation9 + $0x8] ss:$16 sps:$4 sm:$0xff]  }
  0x5e   :  { %v7834_v54 = vld [vmem:[#allocation12 + $0xec] ss:$16 sps:$4 sm:$0xff]   ;;  %v7838_v55 = vld [vmem:[#allocation12 + $0xe8] ss:$16 sps:$4 sm:$0xff]   ;;  %v154_v10 = vld [vmem:[#allocation14] sm:$0xf] }
  0x5f   :  { %369 = vmatpush1.bf16.msra.mxu1 %v6911_v19  ;;  %750 = vmatpush1.bf16.msra.mxu0 %v7792_v21  ;;  %v7841_v56 = vld [vmem:[#allocation12 + $0xcc] ss:$16 sps:$4 sm:$0xff]   ;;  %v7845_v57 = vld [vmem:[#allocation12 + $0xc8] ss:$16 sps:$4 sm:$0xff]  }
  0x60   :  { %370 = vmatprep.subr.bf16.mxu1 %v6915_v20  ;;  %751 = vmatprep.subr.bf16.mxu0 %v7795_v22  ;;  %v7849_v58 = vld [vmem:[#allocation12 + $0xac] ss:$16 sps:$4 sm:$0xff]   ;;  %v7855_v59 = vld [vmem:[#allocation12 + $0xa8] ss:$16 sps:$4 sm:$0xff]  }
  0x61   :  { %v7857_v60 = vld [vmem:[#allocation12 + $0x8c] ss:$16 sps:$4 sm:$0xff]   ;;  %v7861_v61 = vld [vmem:[#allocation12 + $0x88] ss:$16 sps:$4 sm:$0xff]  }
  0x62   :  { %v7863_v62 = vld [vmem:[#allocation12 + $0x6c] ss:$16 sps:$4 sm:$0xff]   ;;  %v7868_v63 = vld [vmem:[#allocation12 + $0x68] ss:$16 sps:$4 sm:$0xff]  }
  0x63   :  { %371 = vmatpush1.bf16.msra.mxu1 %v6917_v23  ;;  %752 = vmatpush1.bf16.msra.mxu0 %v7798_v25  ;;  %v7870_v1 = vld [vmem:[#allocation12 + $0x4c] ss:$16 sps:$4 sm:$0xff]   ;;  %v7874_v2 = vld [vmem:[#allocation12 + $0x48] ss:$16 sps:$4 sm:$0xff]  }
  0x64   :  { %372 = vmatprep.subr.bf16.mxu1 %v6921_v24  ;;  %753 = vmatprep.subr.bf16.mxu0 %v7801_v26  ;;  %v7883_v5 = vld [vmem:[#allocation12 + $0xc] ss:$16 sps:$4 sm:$0xff]   ;;  %v7887_v6 = vld [vmem:[#allocation12 + $0x8] ss:$16 sps:$4 sm:$0xff]  }
  0x67   :  { %373 = vmatpush1.bf16.msra.mxu1 %v6923_v27  ;;  %754 = vmatpush1.bf16.msra.mxu0 %v7804_v29 }
  0x68   :  { %374 = vmatprep.subr.bf16.mxu1 %v6927_v28  ;;  %755 = vmatprep.subr.bf16.mxu0 %v7807_v30 }
  0x6b   :  { %375 = vmatpush1.bf16.msra.mxu1 %v6929_v31  ;;  %756 = vmatpush1.bf16.msra.mxu0 %v7810_v33 }
  0x6c   :  { %433 = vmatprep.subr.bf16.mxu1 %v6936_v32  ;;  %1056 = vmatprep.subr.bf16.mxu0 %v7766_v3 }
  0x6e   :  { %393 = vmatmul.mubr.bf16.vlgmr.msra.gmra.mxu1 %v7813_v34  ;;  %774 = vmatmul.mubr.bf16.vlgmr.msra.gmra.mxu0 %v8967_v38 }
  0x6f   :  { %434 = vmatpush1.bf16.msra.mxu1 %v6934_v35  ;;  %402 = vmatprep.mubr.bf16.mxu1 %v8969_v0 }
  0x70   :  { %435 = vmatprep.subr.bf16.mxu1 %v6939_v36  ;;  %1057 = vmatpush1.bf16.msra.mxu0 %v7768_v4  ;;  %v7881_v4 = vld [vmem:[#allocation12 + $0x28] ss:$16 sps:$4 sm:$0xff]  }
  0x71   :  { %1088 = vmatprep.mubr.bf16.mxu0 %v8969_v0  ;;  %1058 = vmatprep.subr.bf16.mxu0 %v7771_v7  ;;  %v156_v7 = vlaneseq }
  0x73   :  { %436 = vmatpush1.bf16.msra.mxu1 %v6937_v37 }
  0x74   :  { %437 = vmatprep.subr.bf16.mxu1 %v6943_v39  ;;  %1059 = vmatpush1.bf16.msra.mxu0 %v7774_v8  ;;  %v7912_v8 = vshrl.u32 %v156_v7, 7 }
  0x75   :  { %1060 = vmatprep.subr.bf16.mxu0 %v7777_v11 }
  0x76   :  { %403 = vmatmul.mubr.bf16.gmra.mxu1 %v6940_v40  ;;  %8975 = vst [vmem:[#allocation27_spill] sm:$0xff] %v7912_v8  ;;  %v8966_v9 = vsub.s32 0, %v7912_v8  ;;  %v8965_v12 = vsub.s32 1, %v7912_v8 }
  0x77   :  { %438 = vmatpush1.bf16.msra.mxu1 %v6941_v41  ;;  %412 = vmatprep.mubr.bf16.mxu1 %v8969_v0 }
  0x78   :  { %439 = vmatprep.subr.bf16.mxu1 %v6946_v42  ;;  %1061 = vmatpush1.bf16.msra.mxu0 %v7780_v13  ;;  %v159_v19 = vrot.slane %v154_v10, %v8966_v9  ;;  %v163_v24 = vrot.slane %v154_v10, %v8965_v12 }
  0x79   :  { %1062 = vmatprep.subr.bf16.mxu0 %v7783_v14 }
  0x7b   :  { %440 = vmatpush1.bf16.msra.mxu1 %v6944_v43 }
  0x7c   :  { %441 = vmatprep.subr.bf16.mxu1 %v6950_v44  ;;  %1063 = vmatpush1.bf16.msra.mxu0 %v7786_v17 }
  0x7d   :  { %1064 = vmatprep.subr.bf16.mxu0 %v7789_v18 }
  0x7e   :  { %413 = vmatmul.mubr.bf16.gmra.mxu1 %v6947_v45 }
  0x7f   :  { %442 = vmatpush1.bf16.msra.mxu1 %v6948_v46  ;;  %422 = vmatprep.mubr.bf16.mxu1 %v8969_v0 }
  0x80   :  { %443 = vmatprep.subr.bf16.mxu1 %v6953_v47  ;;  %1065 = vmatpush1.bf16.msra.mxu0 %v7792_v21 }
  0x81   :  { %1066 = vmatprep.subr.bf16.mxu0 %v7795_v22 }
  0x83   :  { %444 = vmatpush1.bf16.msra.mxu1 %v6951_v48 }
  0x84   :  { %445 = vmatprep.subr.bf16.mxu1 %v6957_v49  ;;  %1067 = vmatpush1.bf16.msra.mxu0 %v7798_v25 }
  0x85   :  { %1068 = vmatprep.subr.bf16.mxu0 %v7801_v26 }
  0x86   :  { %423 = vmatmul.mubr.bf16.gmra.mxu1 %v6954_v50 }
  0x87   :  { %446 = vmatpush1.bf16.msra.mxu1 %v6955_v51  ;;  %465 = vmatprep.mubr.bf16.mxu1 %v8969_v0 }
  0x88   :  { %447 = vmatprep.subr.bf16.mxu1 %v6960_v52  ;;  %1069 = vmatpush1.bf16.msra.mxu0 %v7804_v29 }
  0x89   :  { %1070 = vmatprep.subr.bf16.mxu0 %v7807_v30 }
  0x8b   :  { %448 = vmatpush1.bf16.msra.mxu1 %v6958_v53 }
  0x8c   :  { %782 = vmatprep.subr.bf16.mxu1 %v7834_v54  ;;  %1071 = vmatpush1.bf16.msra.mxu0 %v7810_v33 }
  0x8d   :  { %1372 = vmatprep.subr.bf16.mxu0 %v7766_v3  ;;  %v7876_v3 = vld [vmem:[#allocation12 + $0x2c] ss:$16 sps:$4 sm:$0xff]  }
  0x8e   :  { %466 = vmatmul.mubr.bf16.vlgmr.msra.gmra.mxu1 %v7813_v34 }
  0x8f   :  { %783 = vmatpush1.bf16.msra.mxu1 %v7838_v55  ;;  %475 = vmatprep.mubr.bf16.mxu1 %v8969_v0 }
  0x90   :  { %784 = vmatprep.subr.bf16.mxu1 %v7841_v56 }
  0x93   :  { %785 = vmatpush1.bf16.msra.mxu1 %v7845_v57 }
  0x94   :  { %786 = vmatprep.subr.bf16.mxu1 %v7849_v58 }
  0x96   :  { %476 = vmatmul.mubr.bf16.gmra.mxu1 %v6940_v40 }
  0x97   :  { %787 = vmatpush1.bf16.msra.mxu1 %v7855_v59  ;;  %485 = vmatprep.mubr.bf16.mxu1 %v8969_v0 }
  0x98   :  { %788 = vmatprep.subr.bf16.mxu1 %v7857_v60 }
  0x9b   :  { %789 = vmatpush1.bf16.msra.mxu1 %v7861_v61 }
  0x9c   :  { %790 = vmatprep.subr.bf16.mxu1 %v7863_v62 }
  0x9e   :  { %486 = vmatmul.mubr.bf16.gmra.mxu1 %v6947_v45 }
  0x9f   :  { %791 = vmatpush1.bf16.msra.mxu1 %v7868_v63  ;;  %495 = vmatprep.mubr.bf16.mxu1 %v8969_v0 }
  0xa0   :  { %792 = vmatprep.subr.bf16.mxu1 %v7870_v1 }
  0xa3   :  { %793 = vmatpush1.bf16.msra.mxu1 %v7874_v2 }
  0xa4   :  { %794 = vmatprep.subr.bf16.mxu1 %v7876_v3 }
  0xa6   :  { %496 = vmatmul.mubr.bf16.gmra.mxu1 %v6954_v50 }
  0xa7   :  { %795 = vmatpush1.bf16.msra.mxu1 %v7881_v4  ;;  %814 = vmatprep.mubr.bf16.mxu1 %v8969_v0 }
  0xa8   :  { %796 = vmatprep.subr.bf16.mxu1 %v7883_v5 }
  0xab   :  { %797 = vmatpush1.bf16.msra.mxu1 %v7887_v6 }
  0xac   :  { %1097 = vmatprep.subr.bf16.mxu1 %v7834_v54 }
  0xae   :  { %815 = vmatmul.mubr.bf16.vlgmr.msra.gmra.mxu1 %v8967_v38 }
  0xaf   :  { %1098 = vmatpush1.bf16.msra.mxu1 %v7838_v55  ;;  %1129 = vmatprep.mubr.bf16.mxu1 %v8969_v0 }
  0xb0   :  { %1099 = vmatprep.subr.bf16.mxu1 %v7841_v56 }
  0xb3   :  { %1100 = vmatpush1.bf16.msra.mxu1 %v7845_v57 }
  0xb4   :  { %1101 = vmatprep.subr.bf16.mxu1 %v7849_v58 }
  0xb7   :  { %1102 = vmatpush1.bf16.msra.mxu1 %v7855_v59 }
  0xb8   :  { %1103 = vmatprep.subr.bf16.mxu1 %v7857_v60 }
  0xbb   :  { %1104 = vmatpush1.bf16.msra.mxu1 %v7861_v61 }
  0xbc   :  { %1105 = vmatprep.subr.bf16.mxu1 %v7863_v62 }
  0xbf   :  { %1106 = vmatpush1.bf16.msra.mxu1 %v7868_v63 }
  0xc0   :  { %1107 = vmatprep.subr.bf16.mxu1 %v7870_v1 }
  0xc3   :  { %1108 = vmatpush1.bf16.msra.mxu1 %v7874_v2 }
  0xc4   :  { %1109 = vmatprep.subr.bf16.mxu1 %v7876_v3 }
  0xc7   :  { %1110 = vmatpush1.bf16.msra.mxu1 %v7881_v4 }
  0xc8   :  { %1111 = vmatprep.subr.bf16.mxu1 %v7883_v5 }
  0xcb   :  { %1112 = vmatpush1.bf16.msra.mxu1 %v7887_v6 }
  0xcc   :  { %1413 = vmatprep.subr.bf16.mxu1 %v7834_v54 }
 0x12e   :  { %v394_v11 = vpop.f32.mrf.mxu1  ;;  %v775_v16 = vpop.f32.mrf.mxu0 }
 0x130   :  { %v396_v15 = vpop.f32.mrf.mxu1  ;;  %v777_v23 = vpop.f32.mrf.mxu0 }
 0x132   :  { %v398_v20 = vpop.f32.mrf.mxu1  ;;  %v779_v31 = vpop.f32.mrf.mxu0 }
 0x133   :  { %v7920_v27 = vadd.f32 %v398_v20, %v159_v19 }
 0x134   :  { %v400_v28 = vpop.f32.mrf.mxu1  ;;  %v780_v35 = vpop.f32.mrf.mxu0 }
 0x135   :  { %v7922_v32 = vadd.f32 %v400_v28, %v163_v24 }
 0x136   :  { %v404_v34 = vpop.f32.mrf.mxu1 }
 0x137   :  { %v7924_v36 = vadd.f32 %v404_v34, %v159_v19 }
 0x138   :  { %v406_v37 = vpop.f32.mrf.mxu1 }
 0x139   :  { %v7926_v39 = vadd.f32 %v406_v37, %v163_v24  ;;  %v8971_v37 = vsub.s32 2, %v7912_v8 }
 0x13a   :  { %v408_v40 = vpop.f32.mrf.mxu1 }
 0x13b   :  { %v7928_v41 = vadd.f32 %v408_v40, %v159_v19 }
 0x13c   :  { %v410_v42 = vpop.f32.mrf.mxu1 }
 0x13d   :  { %v7930_v43 = vadd.f32 %v410_v42, %v163_v24  ;;  %v397_v42 = vadd.f32 %v396_v15, %v163_v24 }
 0x13e   :  { %v414_v44 = vpop.f32.mrf.mxu1 }
 0x13f   :  { %v7932_v45 = vadd.f32 %v414_v44, %v159_v19  ;;  %v8972_v44 = vsub.s32 3, %v7912_v8 }
 0x140   :  { %v416_v46 = vpop.f32.mrf.mxu1 }
 0x141   :  { %v7934_v47 = vadd.f32 %v416_v46, %v163_v24  ;;  %v395_v46 = vadd.f32 %v394_v11, %v159_v19 }
 0x142   :  { %v418_v48 = vpop.f32.mrf.mxu1 }
 0x143   :  { %v7936_v49 = vadd.f32 %v418_v48, %v159_v19 }
 0x144   :  { %v420_v50 = vpop.f32.mrf.mxu1 }
 0x145   :  { %8976 = vst [vmem:[#allocation28_spill] sm:$0xff] %v7936_v49  ;;  %v7938_v51 = vadd.f32 %v420_v50, %v163_v24  ;;  %v167_v50 = vrot.slane %v154_v10, %v8971_v37 }
 0x146   :  { %v424_v52 = vpop.f32.mrf.mxu1 }
 0x147   :  { %8977 = vst [vmem:[#allocation29_spill] sm:$0xff] %v7938_v51  ;;  %v7940_v53 = vadd.f32 %v424_v52, %v159_v19 }
 0x148   :  { %v426_v7 = vpop.f32.mrf.mxu1 }
 0x149   :  { %8978 = vst [vmem:[#allocation30_spill] sm:$0xff] %v7940_v53  ;;  %v7942_v20 = vadd.f32 %v426_v7, %v163_v24  ;;  %v824_v7 = vadd.f32 %v777_v23, %v397_v42 }
 0x14a   :  { %v428_v28 = vpop.f32.mrf.mxu1 }
 0x14b   :  { %8979 = vst [vmem:[#allocation31_spill] sm:$0xff] %v7942_v20  ;;  %v7944_v31 = vadd.f32 %v428_v28, %v159_v19  ;;  %v171_v28 = vrot.slane %v154_v10, %v8972_v44  ;;  %v6264_v15 = vmul.f32 -1.442695, %v824_v7 }
 0x14c   :  { %v430_v34 = vpop.f32.mrf.mxu1 }
 0x14d   :  { %8980 = vst [vmem:[#allocation32_spill] sm:$0xff] %v7944_v31  ;;  %v7946_v35 = vadd.f32 %v430_v34, %v163_v24  ;;  %v823_v34 = vadd.f32 %v775_v16, %v395_v46  ;;  %7209 = vpow2.f32 %v6264_v15 }
 0x14e   :  { %v467_v40 = vpop.f32.mrf.mxu1 }
 0x14f   :  { %8981 = vst [vmem:[#allocation33_spill] sm:$0xff] %v7946_v35  ;;  %v6263_v11 = vmul.f32 -1.442695, %v823_v34  ;;  %v468_v51 = vadd.f32 %v467_v40, %v167_v50 }
 0x150   :  { %v469_v48 = vpop.f32.mrf.mxu1 }
 0x151   :  { %7211 = vpow2.f32 %v6263_v11 }
 0x152   :  { %v471_v52 = vpop.f32.mrf.mxu1 }
 0x153   :  { %v7954_v12 = vadd.f32 %v471_v52, %v167_v50 }
 0x154   :  { %v473_v9 = vpop.f32.mrf.mxu1 }
 0x155   :  { %v7956_v38 = vadd.f32 %v473_v9, %v171_v28 }
 0x156   :  { %v477_v0 = vpop.f32.mrf.mxu1 }
 0x157   :  { %v7958_v24 = vadd.f32 %v477_v0, %v167_v50 }
 0x158   :  { %v479_v19 = vpop.f32.mrf.mxu1 }
 0x159   :  { %v7960_v35 = vadd.f32 %v479_v19, %v171_v28 }
 0x15a   :  { %v481_v37 = vpop.f32.mrf.mxu1 }
 0x15b   :  { %v7962_v23 = vadd.f32 %v481_v37, %v167_v50  ;;  %v7210_v37 = vpop.eup %7209 }
 0x15c   :  { %v483_v10 = vpop.f32.mrf.mxu1 }
 0x15d   :  { %v7964_v42 = vadd.f32 %v483_v10, %v171_v28 }
 0x15e   :  { %v487_v16 = vpop.f32.mrf.mxu1  ;;  %v7212_v8 = vpop.eup %7211 }
 0x15f   :  { %v7966_v46 = vadd.f32 %v487_v16, %v167_v50  ;;  %v836_v16 = vadd.f32 1.0, %v7210_v37 }
 0x160   :  { %v489_v9 = vpop.f32.mrf.mxu1 }
 0x161   :  { %8982 = vst [vmem:[#allocation34_spill] sm:$0xff] %v7966_v46  ;;  %v7968_v52 = vadd.f32 %v489_v9, %v171_v28  ;;  %v830_v9 = vadd.f32 1.0, %v7212_v8  ;;  %7213 = vrcp.f32 %v836_v16 }
 0x162   :  { %v491_v0 = vpop.f32.mrf.mxu1 }
 0x163   :  { %v7970_v7 = vadd.f32 %v491_v0, %v167_v50  ;;  %7215 = vrcp.f32 %v830_v9 }
 0x164   :  { %v493_v34 = vpop.f32.mrf.mxu1 }
 0x165   :  { %8983 = vst [vmem:[#allocation35_spill] sm:$0xff] %v7970_v7  ;;  %v7972_v19 = vadd.f32 %v493_v34, %v171_v28  ;;  %v470_v34 = vadd.f32 %v469_v48, %v171_v28 }
 0x166   :  { %v497_v44 = vpop.f32.mrf.mxu1 }
 0x167   :  { %8984 = vst [vmem:[#allocation36_spill] sm:$0xff] %v7972_v19  ;;  %v7974_v15 = vadd.f32 %v497_v44, %v167_v50 }
 0x168   :  { %v499_v11 = vpop.f32.mrf.mxu1 }
 0x169   :  { %8985 = vst [vmem:[#allocation37_spill] sm:$0xff] %v7974_v15  ;;  %v7976_v10 = vadd.f32 %v499_v11, %v171_v28 }
 0x16a   :  { %v501_v31 = vpop.f32.mrf.mxu1 }
 0x16b   :  { %8986 = vst [vmem:[#allocation38_spill] sm:$0xff] %v7976_v10  ;;  %v7978_v20 = vadd.f32 %v501_v31, %v167_v50 }
 0x16c   :  { %v503_v53 = vpop.f32.mrf.mxu1 }
 0x16d   :  { %8987 = vst [vmem:[#allocation39_spill] sm:$0xff] %v7978_v20  ;;  %v7980_v0 = vadd.f32 %v503_v53, %v171_v28 }
 0x16e   :  { %v816_v7 = vpop.f32.mrf.mxu1  ;;  %v7214_v37 = vpop.eup %7213 }
 0x16f   :  { %v825_v19 = vadd.f32 %v816_v7, %v468_v51  ;;  %v847_v8 = vmul.f32 0.0, %v7214_v37  ;;  %v7465_v7 = vld [vmem:[#allocation12 + $0xe0] ss:$16 sps:$4 sm:$0xff]  }
 0x170   :  { %v818_v44 = vpop.f32.mrf.mxu1  ;;  %v7216_v31 = vpop.eup %7215 }
 0x171   :  { %7217 = vtanh.f32 %v825_v19  ;;  %v826_v15 = vadd.f32 %v818_v44, %v470_v34  ;;  %v7467_v19 = vld [vmem:[#allocation12 + $0xc0] ss:$16 sps:$4 sm:$0xff]  }
 0x172   :  { %v820_v49 = vpop.f32.mrf.mxu1 }
 0x173   :  { %v6265_v11 = vmul.f32 -1.442695, %v826_v15  ;;  %v7468_v15 = vld [vmem:[#allocation12 + $0xa4] ss:$16 sps:$4 sm:$0xff]  }
 0x174   :  { %v821_v10 = vpop.f32.mrf.mxu1 }
 0x175   :  { %7219 = vpow2.f32 %v6265_v11 }
 0x17e   :  { %v7218_v20 = vpop.eup %7217 }
 0x17f   :  { %v848_v46 = vmul.f32 %v7218_v20, %v7216_v31  ;;  %v7466_v20 = vld [vmem:[#allocation12 + $0xc4] ss:$16 sps:$4 sm:$0xff]  }
 0x181   :  { %v7982_v40 = vadd.f32 %v848_v46, %v847_v8  ;;  %v8988_v46 = vmov 0  }
 0x182   :  { %v7220_v53 = vpop.eup %7219 }
 0x183   :  { %v843_v50 = vadd.f32 1.0, %v7220_v53  ;;  %7221 = vtanh.f32 %v7982_v40 }
 0x185   :  { %7223 = vrcp.f32 %v843_v50 }
 0x190   :  { %v7222_v51 = vpop.eup %7221 }
 0x192   :  { %v7224_v48 = vpop.eup %7223 }
 0x193   :  { %v7985_v28 = vmul.f32 %v7224_v48, %v7222_v51 }
 0x195   :  { %v863_v49 = vpack.c.bf16 %v7985_v28, %v7985_v28 }
 0x197   :  { %1089 = vmatmul.mubr.bf16.vlgmr.msra.gmra.mxu0 %v863_v49  ;;  %1130 = vmatmul.mubr.bf16.vlgmr.msra.gmra.mxu1 %v863_v49 }
 0x198   :  { %1373 = vmatpush1.bf16.msra.mxu0 %v7465_v7  ;;  %1414 = vmatpush1.bf16.msra.mxu1 %v7838_v55 }
 0x199   :  { %1374 = vmatprep.subr.bf16.mxu0 %v7466_v20  ;;  %1415 = vmatprep.subr.bf16.mxu1 %v7841_v56 }
 0x19a   :  { %1404 = vmatprep.mubr.bf16.mxu0 %v8988_v46  ;;  %1445 = vmatprep.mubr.bf16.mxu1 %v8988_v46 }
 0x19c   :  { %1375 = vmatpush1.bf16.msra.mxu0 %v7467_v19  ;;  %1416 = vmatpush1.bf16.msra.mxu1 %v7845_v57 }
 0x19d   :  { %1376 = vmatprep.subr.bf16.mxu0 %v7468_v15  ;;  %1417 = vmatprep.subr.bf16.mxu1 %v7849_v58 }
 0x1a0   :  { %1377 = vmatpush1.bf16.msra.mxu0 %v7780_v13  ;;  %1418 = vmatpush1.bf16.msra.mxu1 %v7855_v59 }
 0x1a1   :  { %1378 = vmatprep.subr.bf16.mxu0 %v7783_v14  ;;  %1419 = vmatprep.subr.bf16.mxu1 %v7857_v60 }
 0x1a4   :  { %1379 = vmatpush1.bf16.msra.mxu0 %v7786_v17  ;;  %1420 = vmatpush1.bf16.msra.mxu1 %v7861_v61 }
 0x1a5   :  { %1380 = vmatprep.subr.bf16.mxu0 %v7789_v18  ;;  %1421 = vmatprep.subr.bf16.mxu1 %v7863_v62 }
 0x1a8   :  { %1381 = vmatpush1.bf16.msra.mxu0 %v7792_v21  ;;  %1422 = vmatpush1.bf16.msra.mxu1 %v7868_v63 }
 0x1a9   :  { %1382 = vmatprep.subr.bf16.mxu0 %v7795_v22  ;;  %1423 = vmatprep.subr.bf16.mxu1 %v7870_v1 }
 0x1ac   :  { %1383 = vmatpush1.bf16.msra.mxu0 %v7798_v25  ;;  %1424 = vmatpush1.bf16.msra.mxu1 %v7874_v2 }
 0x1ad   :  { %1384 = vmatprep.subr.bf16.mxu0 %v7801_v26  ;;  %1425 = vmatprep.subr.bf16.mxu1 %v7876_v3 }
 0x1b0   :  { %1385 = vmatpush1.bf16.msra.mxu0 %v7804_v29  ;;  %1426 = vmatpush1.bf16.msra.mxu1 %v7881_v4 }
 0x1b1   :  { %1386 = vmatprep.subr.bf16.mxu0 %v7807_v30  ;;  %1427 = vmatprep.subr.bf16.mxu1 %v7883_v5 }
 0x1b4   :  { %1387 = vmatpush1.bf16.msra.mxu0 %v7810_v33  ;;  %1428 = vmatpush1.bf16.msra.mxu1 %v7887_v6 }
 0x1b5   :  { %1729 = vmatprep.subr.bf16.mxu1 %v7834_v54 }
 0x257   :  { %v1090_v13 = vpop.f32.mrf.mxu0  ;;  %v1131_v14 = vpop.f32.mrf.mxu1 }
 0x258   :  { %v1138_v17 = vadd.f32 %v1090_v13, %v7920_v27  ;;  %v1140_v54 = vadd.f32 %v1131_v14, %v7954_v12 }
 0x259   :  { %v1092_v18 = vpop.f32.mrf.mxu0  ;;  %v1133_v21 = vpop.f32.mrf.mxu1 }
 0x25a   :  { %v6298_v22 = vmul.f32 -1.442695, %v1138_v17  ;;  %v1139_v25 = vadd.f32 %v1092_v18, %v7922_v32  ;;  %v1141_v33 = vadd.f32 %v1133_v21, %v7956_v38 }
 0x25b   :  { %v1094_v26 = vpop.f32.mrf.mxu0  ;;  %v1135_v29 = vpop.f32.mrf.mxu1 }
 0x25c   :  { %7225 = vpow2.f32 %v6298_v22  ;;  %v6299_v30 = vmul.f32 -1.442695, %v1139_v25  ;;  %v6300_v9 = vmul.f32 -1.442695, %v1141_v33 }
 0x25d   :  { %v1095_v10 = vpop.f32.mrf.mxu0  ;;  %v1136_v16 = vpop.f32.mrf.mxu1 }
 0x25e   :  { %7227 = vpow2.f32 %v6299_v30 }
 0x25f   :  { %7229 = vtanh.f32 %v1140_v54 }
 0x260   :  { %7231 = vpow2.f32 %v6300_v9 }
 0x269   :  { %v7226_v34 = vpop.eup %7225 }
 0x26a   :  { %v1145_v44 = vadd.f32 1.0, %v7226_v34 }
 0x26b   :  { %v7228_v27 = vpop.eup %7227 }
 0x26c   :  { %7233 = vrcp.f32 %v1145_v44  ;;  %v1151_v11 = vadd.f32 1.0, %v7228_v27  ;;  %v7230_v32 = vpop.eup %7229 }
 0x26d   :  { %v7232_v37 = vpop.eup %7231 }
 0x26e   :  { %7235 = vrcp.f32 %v1151_v11  ;;  %v1158_v50 = vadd.f32 1.0, %v7232_v37 }
 0x270   :  { %7237 = vrcp.f32 %v1158_v50  ;;  %v8126_v50 = vld [vmem:[#allocation12 + $0xec] ss:$16 sps:$4 sm:$0xff]  }
 0x279   :  { %v7234_v31 = vpop.eup %7233 }
 0x27a   :  { %v1163_v8 = vmul.f32 %v7234_v31, %v7230_v32 }
 0x27b   :  { %v7236_v53 = vpop.eup %7235 }
 0x27c   :  { %v1162_v51 = vmul.f32 %v7236_v53, %v7982_v40  ;;  %v8091_v40 = vld [vmem:[#allocation12] ss:$16 sps:$4 sm:$0xff]  }
 0x27d   :  { %v7238_v12 = vpop.eup %7237 }
 0x27e   :  { %v8023_v38 = vadd.f32 %v1163_v8, %v1162_v51  ;;  %v8128_v51 = vld [vmem:[#allocation12 + $0xe8] ss:$16 sps:$4 sm:$0xff]  }
 0x280   :  { %7239 = vtanh.f32 %v8023_v38 }
 0x28d   :  { %v7240_v48 = vpop.eup %7239 }
 0x28e   :  { %v8026_v49 = vmul.f32 %v7240_v48, %v7238_v12  ;;  %v8134_v12 = vld [vmem:[#allocation12 + $0xc8] ss:$16 sps:$4 sm:$0xff]   ;;  %v8138_v48 = vld [vmem:[#allocation12 + $0xac] ss:$16 sps:$4 sm:$0xff]  }
 0x290   :  { %v1179_v7 = vpack.c.bf16 %v8026_v49, %v8026_v49 }
 0x292   :  { %1405 = vmatmul.mubr.bf16.vlgmr.msra.gmra.mxu0 %v1179_v7  ;;  %1446 = vmatmul.mubr.bf16.vlgmr.msra.gmra.mxu1 %v1179_v7  ;;  %v8140_v7 = vld [vmem:[#allocation12 + $0xa8] ss:$16 sps:$4 sm:$0xff]  }
 0x293   :  { %1730 = vmatpush1.bf16.msra.mxu1 %v7838_v55  ;;  %1720 = vmatprep.mubr.bf16.mxu0 %v8988_v46  ;;  %v8047_v55 = vld [vmem:[#allocation12 + $0xe4] ss:$16 sps:$4 sm:$0xff]  }
 0x294   :  { %1731 = vmatprep.subr.bf16.mxu1 %v7841_v56  ;;  %1761 = vmatprep.mubr.bf16.mxu1 %v8988_v46  ;;  %v8049_v56 = vld [vmem:[#allocation12 + $0xe0] ss:$16 sps:$4 sm:$0xff]  }
 0x295   :  { %1688 = vmatprep.subr.bf16.mxu0 %v8047_v55 }
 0x296   :  { %1689 = vmatpush1.bf16.msra.mxu0 %v8049_v56 }
 0x297   :  { %1732 = vmatpush1.bf16.msra.mxu1 %v7845_v57  ;;  %v8053_v57 = vld [vmem:[#allocation12 + $0xc4] ss:$16 sps:$4 sm:$0xff]  }
 0x298   :  { %1733 = vmatprep.subr.bf16.mxu1 %v7849_v58  ;;  %v8055_v58 = vld [vmem:[#allocation12 + $0xc0] ss:$16 sps:$4 sm:$0xff]   ;;  %1690 = vmatprep.subr.bf16.mxu0 %v8053_v57 }
 0x29a   :  { %1691 = vmatpush1.bf16.msra.mxu0 %v8055_v58 }
 0x29b   :  { %1734 = vmatpush1.bf16.msra.mxu1 %v7855_v59  ;;  %v8059_v59 = vld [vmem:[#allocation12 + $0xa4] ss:$16 sps:$4 sm:$0xff]  }
 0x29c   :  { %1735 = vmatprep.subr.bf16.mxu1 %v7857_v60  ;;  %v8061_v60 = vld [vmem:[#allocation12 + $0xa0] ss:$16 sps:$4 sm:$0xff]   ;;  %1692 = vmatprep.subr.bf16.mxu0 %v8059_v59 }
 0x29e   :  { %1693 = vmatpush1.bf16.msra.mxu0 %v8061_v60 }
 0x29f   :  { %1736 = vmatpush1.bf16.msra.mxu1 %v7861_v61  ;;  %v8065_v61 = vld [vmem:[#allocation12 + $0x84] ss:$16 sps:$4 sm:$0xff]  }
 0x2a0   :  { %1737 = vmatprep.subr.bf16.mxu1 %v7863_v62  ;;  %v8067_v62 = vld [vmem:[#allocation12 + $0x80] ss:$16 sps:$4 sm:$0xff]   ;;  %1694 = vmatprep.subr.bf16.mxu0 %v8065_v61 }
 0x2a2   :  { %1695 = vmatpush1.bf16.msra.mxu0 %v8067_v62 }
 0x2a3   :  { %1738 = vmatpush1.bf16.msra.mxu1 %v7868_v63  ;;  %v8069_v63 = vld [vmem:[#allocation12 + $0x64] ss:$16 sps:$4 sm:$0xff]  }
 0x2a4   :  { %1739 = vmatprep.subr.bf16.mxu1 %v7870_v1  ;;  %v8073_v1 = vld [vmem:[#allocation12 + $0x60] ss:$16 sps:$4 sm:$0xff]   ;;  %1696 = vmatprep.subr.bf16.mxu0 %v8069_v63 }
 0x2a6   :  { %1697 = vmatpush1.bf16.msra.mxu0 %v8073_v1 }
 0x2a7   :  { %1740 = vmatpush1.bf16.msra.mxu1 %v7874_v2  ;;  %v8076_v2 = vld [vmem:[#allocation12 + $0x44] ss:$16 sps:$4 sm:$0xff]  }
 0x2a8   :  { %1741 = vmatprep.subr.bf16.mxu1 %v7876_v3  ;;  %v8079_v3 = vld [vmem:[#allocation12 + $0x40] ss:$16 sps:$4 sm:$0xff]   ;;  %1698 = vmatprep.subr.bf16.mxu0 %v8076_v2 }
 0x2aa   :  { %1699 = vmatpush1.bf16.msra.mxu0 %v8079_v3 }
 0x2ab   :  { %1742 = vmatpush1.bf16.msra.mxu1 %v7881_v4  ;;  %v8082_v4 = vld [vmem:[#allocation12 + $0x24] ss:$16 sps:$4 sm:$0xff]  }
 0x2ac   :  { %1743 = vmatprep.subr.bf16.mxu1 %v7883_v5  ;;  %v8085_v5 = vld [vmem:[#allocation12 + $0x20] ss:$16 sps:$4 sm:$0xff]   ;;  %1700 = vmatprep.subr.bf16.mxu0 %v8082_v4 }
 0x2ae   :  { %1701 = vmatpush1.bf16.msra.mxu0 %v8085_v5 }
 0x2af   :  { %1744 = vmatpush1.bf16.msra.mxu1 %v7887_v6  ;;  %v8088_v6 = vld [vmem:[#allocation12 + $0x4] ss:$16 sps:$4 sm:$0xff]  }
 0x2b0   :  { %1702 = vmatprep.subr.bf16.mxu0 %v8088_v6  ;;  %2045 = vmatprep.subr.bf16.mxu1 %v8126_v50 }
 0x2b2   :  { %1703 = vmatpush1.bf16.msra.mxu0 %v8091_v40 }
 0x2b3   :  { %2004 = vmatprep.subr.bf16.mxu0 %v8047_v55 }
 0x352   :  { %v1406_v20 = vpop.f32.mrf.mxu0  ;;  %v1447_v19 = vpop.f32.mrf.mxu1 }
 0x353   :  { %v1454_v15 = vadd.f32 %v1406_v20, %v7924_v36  ;;  %v1456_v10 = vadd.f32 %v1447_v19, %v7958_v24  ;;  %v8144_v20 = vld [vmem:[#allocation12 + $0x8c] ss:$16 sps:$4 sm:$0xff]   ;;  %v8146_v19 = vld [vmem:[#allocation12 + $0x88] ss:$16 sps:$4 sm:$0xff]  }
 0x354   :  { %v1408_v13 = vpop.f32.mrf.mxu0  ;;  %v1449_v14 = vpop.f32.mrf.mxu1 }
 0x355   :  { %v6333_v17 = vmul.f32 -1.442695, %v1454_v15  ;;  %v1455_v18 = vadd.f32 %v1408_v13, %v7926_v39  ;;  %v1457_v30 = vadd.f32 %v1449_v14, %v7960_v35  ;;  %v8148_v15 = vld [vmem:[#allocation12 + $0x6c] ss:$16 sps:$4 sm:$0xff]   ;;  %v8152_v13 = vld [vmem:[#allocation12 + $0x68] ss:$16 sps:$4 sm:$0xff]  }
 0x356   :  { %v1410_v21 = vpop.f32.mrf.mxu0  ;;  %v1451_v22 = vpop.f32.mrf.mxu1  ;;  %v8155_v14 = vld [vmem:[#allocation12 + $0x4c] ss:$16 sps:$4 sm:$0xff]  }
 0x357   :  { %7241 = vpow2.f32 %v6333_v17  ;;  %v6334_v25 = vmul.f32 -1.442695, %v1455_v18  ;;  %v6335_v16 = vmul.f32 -1.442695, %v1457_v30  ;;  %v8158_v17 = vld [vmem:[#allocation12 + $0x48] ss:$16 sps:$4 sm:$0xff]  }
 0x358   :  { %v1411_v26 = vpop.f32.mrf.mxu0  ;;  %v1452_v29 = vpop.f32.mrf.mxu1  ;;  %v8161_v18 = vld [vmem:[#allocation12 + $0x2c] ss:$16 sps:$4 sm:$0xff]   ;;  %v8164_v21 = vld [vmem:[#allocation12 + $0x28] ss:$16 sps:$4 sm:$0xff]  }
 0x359   :  { %7243 = vpow2.f32 %v6334_v25  ;;  %v8167_v22 = vld [vmem:[#allocation12 + $0xc] ss:$16 sps:$4 sm:$0xff]   ;;  %v8170_v25 = vld [vmem:[#allocation12 + $0x8] ss:$16 sps:$4 sm:$0xff]  }
 0x35a   :  { %7245 = vtanh.f32 %v1456_v10 }
 0x35b   :  { %7247 = vpow2.f32 %v6335_v16 }
 0x364   :  { %v7242_v33 = vpop.eup %7241 }
 0x365   :  { %v1461_v54 = vadd.f32 1.0, %v7242_v33 }
 0x366   :  { %v7244_v36 = vpop.eup %7243 }
 0x367   :  { %7249 = vrcp.f32 %v1461_v54  ;;  %v1467_v9 = vadd.f32 1.0, %v7244_v36  ;;  %v7246_v39 = vpop.eup %7245 }
 0x368   :  { %v7248_v34 = vpop.eup %7247 }
 0x369   :  { %7251 = vrcp.f32 %v1467_v9  ;;  %v1474_v32 = vadd.f32 1.0, %v7248_v34 }
 0x36b   :  { %7253 = vrcp.f32 %v1474_v32 }
 0x374   :  { %v7250_v44 = vpop.eup %7249 }
 0x375   :  { %v1479_v27 = vmul.f32 %v7250_v44, %v7246_v39 }
 0x376   :  { %v7252_v11 = vpop.eup %7251 }
 0x377   :  { %v1478_v37 = vmul.f32 %v7252_v11, %v8023_v38  ;;  %v8132_v38 = vld [vmem:[#allocation12 + $0xcc] ss:$16 sps:$4 sm:$0xff]  }
 0x378   :  { %v7254_v24 = vpop.eup %7253 }
 0x379   :  { %v8101_v35 = vadd.f32 %v1479_v27, %v1478_v37 }
 0x37b   :  { %7255 = vtanh.f32 %v8101_v35 }
 0x388   :  { %v7256_v31 = vpop.eup %7255 }
 0x389   :  { %v8104_v8 = vmul.f32 %v7256_v31, %v7254_v24 }
 0x38b   :  { %v1495_v53 = vpack.c.bf16 %v8104_v8, %v8104_v8 }
 0x38d   :  { %1721 = vmatmul.mubr.bf16.vlgmr.msra.gmra.mxu0 %v1495_v53  ;;  %1762 = vmatmul.mubr.bf16.vlgmr.msra.gmra.mxu1 %v1495_v53 }
 0x38e   :  { %2005 = vmatpush1.bf16.msra.mxu0 %v8049_v56  ;;  %2036 = vmatprep.mubr.bf16.mxu0 %v8988_v46 }
 0x38f   :  { %2006 = vmatprep.subr.bf16.mxu0 %v8053_v57  ;;  %2077 = vmatprep.mubr.bf16.mxu1 %v8988_v46 }
 0x390   :  { %2046 = vmatpush1.bf16.msra.mxu1 %v8128_v51 }
 0x391   :  { %2047 = vmatprep.subr.bf16.mxu1 %v8132_v38 }
 0x392   :  { %2007 = vmatpush1.bf16.msra.mxu0 %v8055_v58 }
 0x393   :  { %2008 = vmatprep.subr.bf16.mxu0 %v8059_v59 }
 0x394   :  { %2048 = vmatpush1.bf16.msra.mxu1 %v8134_v12 }
 0x395   :  { %2049 = vmatprep.subr.bf16.mxu1 %v8138_v48 }
 0x396   :  { %2009 = vmatpush1.bf16.msra.mxu0 %v8061_v60 }
 0x397   :  { %2010 = vmatprep.subr.bf16.mxu0 %v8065_v61 }
 0x398   :  { %2050 = vmatpush1.bf16.msra.mxu1 %v8140_v7 }
 0x399   :  { %2051 = vmatprep.subr.bf16.mxu1 %v8144_v20 }
 0x39a   :  { %2011 = vmatpush1.bf16.msra.mxu0 %v8067_v62 }
 0x39b   :  { %2012 = vmatprep.subr.bf16.mxu0 %v8069_v63 }
 0x39c   :  { %2052 = vmatpush1.bf16.msra.mxu1 %v8146_v19 }
 0x39d   :  { %2053 = vmatprep.subr.bf16.mxu1 %v8148_v15 }
 0x39e   :  { %2013 = vmatpush1.bf16.msra.mxu0 %v8073_v1 }
 0x39f   :  { %2014 = vmatprep.subr.bf16.mxu0 %v8076_v2 }
 0x3a0   :  { %2054 = vmatpush1.bf16.msra.mxu1 %v8152_v13 }
 0x3a1   :  { %2055 = vmatprep.subr.bf16.mxu1 %v8155_v14 }
 0x3a2   :  { %2015 = vmatpush1.bf16.msra.mxu0 %v8079_v3 }
 0x3a3   :  { %2016 = vmatprep.subr.bf16.mxu0 %v8082_v4 }
 0x3a4   :  { %2056 = vmatpush1.bf16.msra.mxu1 %v8158_v17 }
 0x3a5   :  { %2057 = vmatprep.subr.bf16.mxu1 %v8161_v18 }
 0x3a6   :  { %2017 = vmatpush1.bf16.msra.mxu0 %v8085_v5 }
 0x3a7   :  { %2018 = vmatprep.subr.bf16.mxu0 %v8088_v6 }
 0x3a8   :  { %2058 = vmatpush1.bf16.msra.mxu1 %v8164_v21 }
 0x3a9   :  { %2059 = vmatprep.subr.bf16.mxu1 %v8167_v22 }
 0x3aa   :  { %2019 = vmatpush1.bf16.msra.mxu0 %v8091_v40 }
 0x3ab   :  { %2320 = vmatprep.subr.bf16.mxu0 %v8047_v55 }
 0x3ac   :  { %2060 = vmatpush1.bf16.msra.mxu1 %v8170_v25 }
 0x3ad   :  { %2361 = vmatprep.subr.bf16.mxu1 %v8126_v50 }
 0x44d   :  { %v1722_v26 = vpop.f32.mrf.mxu0  ;;  %v1763_v29 = vpop.f32.mrf.mxu1 }
 0x44e   :  { %v1770_v30 = vadd.f32 %v1722_v26, %v7928_v41  ;;  %v1772_v11 = vadd.f32 %v1763_v29, %v7962_v23 }
 0x44f   :  { %v1724_v10 = vpop.f32.mrf.mxu0  ;;  %v1765_v16 = vpop.f32.mrf.mxu1 }
 0x450   :  { %v6368_v33 = vmul.f32 -1.442695, %v1770_v30  ;;  %v1771_v54 = vadd.f32 %v1724_v10, %v7930_v43  ;;  %v1773_v27 = vadd.f32 %v1765_v16, %v7964_v42 }
 0x451   :  { %v1726_v36 = vpop.f32.mrf.mxu0  ;;  %v1767_v9 = vpop.f32.mrf.mxu1 }
 0x452   :  { %7257 = vpow2.f32 %v6368_v33  ;;  %v6369_v39 = vmul.f32 -1.442695, %v1771_v54  ;;  %v6370_v32 = vmul.f32 -1.442695, %v1773_v27 }
 0x453   :  { %v1727_v34 = vpop.f32.mrf.mxu0  ;;  %v1768_v44 = vpop.f32.mrf.mxu1 }
 0x454   :  { %7259 = vpow2.f32 %v6369_v39 }
 0x455   :  { %7261 = vtanh.f32 %v1772_v11 }
 0x456   :  { %7263 = vpow2.f32 %v6370_v32 }
 0x45f   :  { %v7258_v37 = vpop.eup %7257 }
 0x460   :  { %v1777_v24 = vadd.f32 1.0, %v7258_v37 }
 0x461   :  { %v7260_v41 = vpop.eup %7259 }
 0x462   :  { %7265 = vrcp.f32 %v1777_v24  ;;  %v1783_v31 = vadd.f32 1.0, %v7260_v41  ;;  %v7262_v43 = vpop.eup %7261 }
 0x463   :  { %v7264_v53 = vpop.eup %7263 }
 0x464   :  { %7267 = vrcp.f32 %v1783_v31  ;;  %v1790_v33 = vadd.f32 1.0, %v7264_v53 }
 0x466   :  { %7269 = vrcp.f32 %v1790_v33 }
 0x46f   :  { %v7266_v26 = vpop.eup %7265 }
 0x470   :  { %v1795_v30 = vmul.f32 %v7266_v26, %v7262_v43  ;;  %v8989_v43 = vld [vmem:[#allocation34_spill] sm:$0xff] }
 0x471   :  { %v7268_v10 = vpop.eup %7267 }
 0x472   :  { %v1794_v54 = vmul.f32 %v7268_v10, %v8101_v35 }
 0x473   :  { %v7270_v23 = vpop.eup %7269 }
 0x474   :  { %v8180_v42 = vadd.f32 %v1795_v30, %v1794_v54 }
 0x476   :  { %7271 = vtanh.f32 %v8180_v42 }
 0x483   :  { %v7272_v29 = vpop.eup %7271 }
 0x484   :  { %v8183_v16 = vmul.f32 %v7272_v29, %v7270_v23 }
 0x486   :  { %v1811_v36 = vpack.c.bf16 %v8183_v16, %v8183_v16 }
 0x488   :  { %2037 = vmatmul.mubr.bf16.vlgmr.msra.gmra.mxu0 %v1811_v36  ;;  %2078 = vmatmul.mubr.bf16.vlgmr.msra.gmra.mxu1 %v1811_v36 }
 0x489   :  { %2321 = vmatpush1.bf16.msra.mxu0 %v8049_v56  ;;  %2362 = vmatpush1.bf16.msra.mxu1 %v8128_v51 }
 0x48a   :  { %2322 = vmatprep.subr.bf16.mxu0 %v8053_v57  ;;  %2363 = vmatprep.subr.bf16.mxu1 %v8132_v38 }
 0x48b   :  { %2352 = vmatprep.mubr.bf16.mxu0 %v8988_v46  ;;  %2393 = vmatprep.mubr.bf16.mxu1 %v8988_v46 }
 0x48d   :  { %2323 = vmatpush1.bf16.msra.mxu0 %v8055_v58  ;;  %2364 = vmatpush1.bf16.msra.mxu1 %v8134_v12 }
 0x48e   :  { %2324 = vmatprep.subr.bf16.mxu0 %v8059_v59  ;;  %2365 = vmatprep.subr.bf16.mxu1 %v8138_v48 }
 0x491   :  { %2325 = vmatpush1.bf16.msra.mxu0 %v8061_v60  ;;  %2366 = vmatpush1.bf16.msra.mxu1 %v8140_v7 }
 0x492   :  { %2326 = vmatprep.subr.bf16.mxu0 %v8065_v61  ;;  %2367 = vmatprep.subr.bf16.mxu1 %v8144_v20 }
 0x495   :  { %2327 = vmatpush1.bf16.msra.mxu0 %v8067_v62  ;;  %2368 = vmatpush1.bf16.msra.mxu1 %v8146_v19 }
 0x496   :  { %2328 = vmatprep.subr.bf16.mxu0 %v8069_v63  ;;  %2369 = vmatprep.subr.bf16.mxu1 %v8148_v15 }
 0x499   :  { %2329 = vmatpush1.bf16.msra.mxu0 %v8073_v1  ;;  %2370 = vmatpush1.bf16.msra.mxu1 %v8152_v13 }
 0x49a   :  { %2330 = vmatprep.subr.bf16.mxu0 %v8076_v2  ;;  %2371 = vmatprep.subr.bf16.mxu1 %v8155_v14 }
 0x49d   :  { %2331 = vmatpush1.bf16.msra.mxu0 %v8079_v3  ;;  %2372 = vmatpush1.bf16.msra.mxu1 %v8158_v17 }
 0x49e   :  { %2332 = vmatprep.subr.bf16.mxu0 %v8082_v4  ;;  %2373 = vmatprep.subr.bf16.mxu1 %v8161_v18 }
 0x4a1   :  { %2333 = vmatpush1.bf16.msra.mxu0 %v8085_v5  ;;  %2374 = vmatpush1.bf16.msra.mxu1 %v8164_v21 }
 0x4a2   :  { %2334 = vmatprep.subr.bf16.mxu0 %v8088_v6  ;;  %2375 = vmatprep.subr.bf16.mxu1 %v8167_v22 }
 0x4a5   :  { %2335 = vmatpush1.bf16.msra.mxu0 %v8091_v40  ;;  %2376 = vmatpush1.bf16.msra.mxu1 %v8170_v25 }
 0x4a6   :  { %2636 = vmatprep.subr.bf16.mxu0 %v8047_v55  ;;  %2677 = vmatprep.subr.bf16.mxu1 %v8126_v50 }
 0x548   :  { %v2038_v35 = vpop.f32.mrf.mxu0  ;;  %v2079_v9 = vpop.f32.mrf.mxu1 }
 0x549   :  { %v2086_v39 = vadd.f32 %v2038_v35, %v7932_v45  ;;  %v2088_v53 = vadd.f32 %v2079_v9, %v8989_v43 }
 0x54a   :  { %v2040_v34 = vpop.f32.mrf.mxu0  ;;  %v2081_v44 = vpop.f32.mrf.mxu1 }
 0x54b   :  { %v6403_v27 = vmul.f32 -1.442695, %v2086_v39  ;;  %v2087_v11 = vadd.f32 %v2040_v34, %v7934_v47  ;;  %v2089_v55 = vadd.f32 %v2081_v44, %v7968_v52 }
 0x54c   :  { %v2042_v32 = vpop.f32.mrf.mxu0  ;;  %v2083_v37 = vpop.f32.mrf.mxu1 }
 0x54d   :  { %7273 = vpow2.f32 %v6403_v27  ;;  %v6404_v24 = vmul.f32 -1.442695, %v2087_v11  ;;  %v6405_v26 = vmul.f32 -1.442695, %v2089_v55  ;;  %v8993_v11 = vld [vmem:[#allocation35_spill] sm:$0xff] }
 0x54e   :  { %v2043_v41 = vpop.f32.mrf.mxu0  ;;  %v2084_v31 = vpop.f32.mrf.mxu1 }
 0x54f   :  { %7275 = vpow2.f32 %v6404_v24 }
 0x550   :  { %7277 = vtanh.f32 %v2088_v53 }
 0x551   :  { %7279 = vpow2.f32 %v6405_v26 }
 0x55a   :  { %v7274_v30 = vpop.eup %7273 }
 0x55b   :  { %v2093_v10 = vadd.f32 1.0, %v7274_v30 }
 0x55c   :  { %v7276_v45 = vpop.eup %7275 }
 0x55d   :  { %7281 = vrcp.f32 %v2093_v10  ;;  %v2099_v33 = vadd.f32 1.0, %v7276_v45  ;;  %v7278_v47 = vpop.eup %7277 }
 0x55e   :  { %v7280_v54 = vpop.eup %7279 }
 0x55f   :  { %7283 = vrcp.f32 %v2099_v33  ;;  %v2106_v35 = vadd.f32 1.0, %v7280_v54 }
 0x561   :  { %7285 = vrcp.f32 %v2106_v35  ;;  %v7054_v35 = vld [vmem:[#allocation12] ss:$16 sps:$4 sm:$0xff]  }
 0x56a   :  { %v7282_v23 = vpop.eup %7281 }
 0x56b   :  { %v2111_v29 = vmul.f32 %v7282_v23, %v7278_v47 }
 0x56c   :  { %v7284_v36 = vpop.eup %7283 }
 0x56d   :  { %v2110_v39 = vmul.f32 %v7284_v36, %v8180_v42  ;;  %v7056_v36 = vld [vmem:[#allocation12 + $0x4] ss:$16 sps:$4 sm:$0xff]  }
 0x56e   :  { %v7286_v9 = vpop.eup %7285 }
 0x56f   :  { %v8226_v52 = vadd.f32 %v2111_v29, %v2110_v39  ;;  %v7059_v39 = vld [vmem:[#allocation11 + $0xe4] ss:$16 sps:$4 sm:$0xff]  }
 0x571   :  { %7287 = vtanh.f32 %v8226_v52 }
 0x57e   :  { %v7288_v34 = vpop.eup %7287 }
 0x57f   :  { %v8229_v44 = vmul.f32 %v7288_v34, %v7286_v9  ;;  %v8994_v34 = vld [vmem:[#allocation30_spill] sm:$0xff] }
 0x581   :  { %v2127_v27 = vpack.c.bf16 %v8229_v44, %v8229_v44 }
 0x583   :  { %2353 = vmatmul.mubr.bf16.vlgmr.msra.gmra.mxu0 %v2127_v27  ;;  %2394 = vmatmul.mubr.bf16.vlgmr.msra.gmra.mxu1 %v2127_v27 }
 0x584   :  { %2637 = vmatpush1.bf16.msra.mxu0 %v8049_v56  ;;  %2678 = vmatpush1.bf16.msra.mxu1 %v8128_v51 }
 0x585   :  { %2638 = vmatprep.subr.bf16.mxu0 %v8053_v57  ;;  %2679 = vmatprep.subr.bf16.mxu1 %v8132_v38 }
 0x586   :  { %2668 = vmatprep.mubr.bf16.mxu0 %v8988_v46  ;;  %2709 = vmatprep.mubr.bf16.mxu1 %v8988_v46 }
 0x588   :  { %2639 = vmatpush1.bf16.msra.mxu0 %v8055_v58  ;;  %2680 = vmatpush1.bf16.msra.mxu1 %v8134_v12  ;;  %v8990_v58 = vld [vmem:[#allocation28_spill] sm:$0xff] }
 0x589   :  { %2640 = vmatprep.subr.bf16.mxu0 %v8059_v59  ;;  %2681 = vmatprep.subr.bf16.mxu1 %v8138_v48 }
 0x58c   :  { %2641 = vmatpush1.bf16.msra.mxu0 %v8061_v60  ;;  %2682 = vmatpush1.bf16.msra.mxu1 %v8140_v7 }
 0x58d   :  { %2642 = vmatprep.subr.bf16.mxu0 %v8065_v61  ;;  %2683 = vmatprep.subr.bf16.mxu1 %v8144_v20 }
 0x590   :  { %2643 = vmatpush1.bf16.msra.mxu0 %v8067_v62  ;;  %2684 = vmatpush1.bf16.msra.mxu1 %v8146_v19 }
 0x591   :  { %2644 = vmatprep.subr.bf16.mxu0 %v8069_v63  ;;  %2685 = vmatprep.subr.bf16.mxu1 %v8148_v15  ;;  %v8991_v63 = vld [vmem:[#allocation29_spill] sm:$0xff] }
 0x594   :  { %2645 = vmatpush1.bf16.msra.mxu0 %v8073_v1  ;;  %2686 = vmatpush1.bf16.msra.mxu1 %v8152_v13 }
 0x595   :  { %2646 = vmatprep.subr.bf16.mxu0 %v8076_v2  ;;  %2687 = vmatprep.subr.bf16.mxu1 %v8155_v14 }
 0x598   :  { %2647 = vmatpush1.bf16.msra.mxu0 %v8079_v3  ;;  %2688 = vmatpush1.bf16.msra.mxu1 %v8158_v17 }
 0x599   :  { %2648 = vmatprep.subr.bf16.mxu0 %v8082_v4  ;;  %2689 = vmatprep.subr.bf16.mxu1 %v8161_v18 }
 0x59c   :  { %2649 = vmatpush1.bf16.msra.mxu0 %v8085_v5  ;;  %2690 = vmatpush1.bf16.msra.mxu1 %v8164_v21 }
 0x59d   :  { %2650 = vmatprep.subr.bf16.mxu0 %v8088_v6  ;;  %2691 = vmatprep.subr.bf16.mxu1 %v8167_v22 }
 0x5a0   :  { %2651 = vmatpush1.bf16.msra.mxu0 %v8091_v40  ;;  %2692 = vmatpush1.bf16.msra.mxu1 %v8170_v25  ;;  %v8992_v40 = vld [vmem:[#allocation36_spill] sm:$0xff] }
 0x5a1   :  { %2993 = vmatprep.subr.bf16.mxu1 %v8126_v50 }
 0x643   :  { %v2354_v56 = vpop.f32.mrf.mxu0  ;;  %v2395_v57 = vpop.f32.mrf.mxu1 }
 0x644   :  { %v2402_v59 = vadd.f32 %v2354_v56, %v8990_v58  ;;  %v2404_v50 = vadd.f32 %v2395_v57, %v8993_v11 }
 0x645   :  { %v2356_v60 = vpop.f32.mrf.mxu0  ;;  %v2397_v61 = vpop.f32.mrf.mxu1 }
 0x646   :  { %v6438_v62 = vmul.f32 -1.442695, %v2402_v59  ;;  %v2403_v1 = vadd.f32 %v2356_v60, %v8991_v63  ;;  %v2405_v42 = vadd.f32 %v2397_v61, %v8992_v40  ;;  %v8995_v59 = vld [vmem:[#allocation31_spill] sm:$0xff] }
 0x647   :  { %v2358_v2 = vpop.f32.mrf.mxu0  ;;  %v2399_v3 = vpop.f32.mrf.mxu1 }
 0x648   :  { %7289 = vpow2.f32 %v6438_v62  ;;  %v6439_v4 = vmul.f32 -1.442695, %v2403_v1  ;;  %v6440_v32 = vmul.f32 -1.442695, %v2405_v42  ;;  %v8996_v3 = vld [vmem:[#allocation38_spill] sm:$0xff] }
 0x649   :  { %v2359_v5 = vpop.f32.mrf.mxu0  ;;  %v2400_v6 = vpop.f32.mrf.mxu1 }
 0x64a   :  { %7291 = vpow2.f32 %v6439_v4  ;;  %v8997_v5 = vld [vmem:[#allocation37_spill] sm:$0xff] }
 0x64b   :  { %7293 = vtanh.f32 %v2404_v50 }
 0x64c   :  { %7295 = vpow2.f32 %v6440_v32 }
 0x655   :  { %v7290_v37 = vpop.eup %7289 }
 0x656   :  { %v2409_v24 = vadd.f32 1.0, %v7290_v37 }
 0x657   :  { %v7292_v41 = vpop.eup %7291 }
 0x658   :  { %7297 = vrcp.f32 %v2409_v24  ;;  %v2415_v31 = vadd.f32 1.0, %v7292_v41  ;;  %v7294_v55 = vpop.eup %7293 }
 0x659   :  { %v7296_v43 = vpop.eup %7295 }
 0x65a   :  { %7299 = vrcp.f32 %v2415_v31  ;;  %v2422_v10 = vadd.f32 1.0, %v7296_v43 }
 0x65c   :  { %7301 = vrcp.f32 %v2422_v10 }
 0x665   :  { %v7298_v53 = vpop.eup %7297 }
 0x666   :  { %v2427_v26 = vmul.f32 %v7298_v53, %v7294_v55 }
 0x667   :  { %v7300_v30 = vpop.eup %7299 }
 0x668   :  { %v2426_v45 = vmul.f32 %v7300_v30, %v8226_v52 }
 0x669   :  { %v7302_v47 = vpop.eup %7301 }
 0x66a   :  { %v8271_v33 = vadd.f32 %v2427_v26, %v2426_v45 }
 0x66c   :  { %7303 = vtanh.f32 %v8271_v33 }
 0x679   :  { %v7304_v54 = vpop.eup %7303 }
 0x67a   :  { %v8274_v23 = vmul.f32 %v7304_v54, %v7302_v47  ;;  %v7057_v47 = vld [vmem:[#allocation11 + $0xe0] ss:$16 sps:$4 sm:$0xff]   ;;  %v7060_v54 = vld [vmem:[#allocation11 + $0xe8] ss:$16 sps:$4 sm:$0xff]  }
 0x67c   :  { %v2443_v29 = vpack.c.bf16 %v8274_v23, %v8274_v23 }
 0x67e   :  { %2669 = vmatmul.mubr.bf16.vlgmr.msra.gmra.mxu0 %v2443_v29  ;;  %2710 = vmatmul.mubr.bf16.vlgmr.msra.gmra.mxu1 %v2443_v29 }
 0x67f   :  { %2994 = vmatpush1.bf16.msra.mxu1 %v8128_v51  ;;  %2984 = vmatprep.mubr.bf16.mxu0 %v8988_v46  ;;  %v7035_v51 = vld [vmem:[#allocation12 + $0xe4] ss:$16 sps:$4 sm:$0xff]  }
 0x680   :  { %2995 = vmatprep.subr.bf16.mxu1 %v8132_v38  ;;  %3025 = vmatprep.mubr.bf16.mxu1 %v8988_v46  ;;  %v7033_v38 = vld [vmem:[#allocation12 + $0xe0] ss:$16 sps:$4 sm:$0xff]  }
 0x681   :  { %2952 = vmatprep.subr.bf16.mxu0 %v7035_v51  ;;  %v7065_v51 = vld [vmem:[#allocation11 + $0xc4] ss:$16 sps:$4 sm:$0xff]  }
 0x682   :  { %2953 = vmatpush1.bf16.msra.mxu0 %v7033_v38  ;;  %v7068_v38 = vld [vmem:[#allocation11 + $0xcc] ss:$16 sps:$4 sm:$0xff]  }
 0x683   :  { %2996 = vmatpush1.bf16.msra.mxu1 %v8134_v12  ;;  %v7038_v12 = vld [vmem:[#allocation12 + $0xc4] ss:$16 sps:$4 sm:$0xff]  }
 0x684   :  { %2997 = vmatprep.subr.bf16.mxu1 %v8138_v48  ;;  %v7036_v48 = vld [vmem:[#allocation12 + $0xc0] ss:$16 sps:$4 sm:$0xff]   ;;  %2954 = vmatprep.subr.bf16.mxu0 %v7038_v12  ;;  %v7066_v12 = vld [vmem:[#allocation11 + $0xc8] ss:$16 sps:$4 sm:$0xff]  }
 0x686   :  { %2955 = vmatpush1.bf16.msra.mxu0 %v7036_v48  ;;  %v7071_v48 = vld [vmem:[#allocation11 + $0xa4] ss:$16 sps:$4 sm:$0xff]  }
 0x687   :  { %2998 = vmatpush1.bf16.msra.mxu1 %v8140_v7  ;;  %v7041_v7 = vld [vmem:[#allocation12 + $0xa4] ss:$16 sps:$4 sm:$0xff]  }
 0x688   :  { %2999 = vmatprep.subr.bf16.mxu1 %v8144_v20  ;;  %v7039_v20 = vld [vmem:[#allocation12 + $0xa0] ss:$16 sps:$4 sm:$0xff]   ;;  %2956 = vmatprep.subr.bf16.mxu0 %v7041_v7  ;;  %v7074_v7 = vld [vmem:[#allocation11 + $0xac] ss:$16 sps:$4 sm:$0xff]  }
 0x68a   :  { %2957 = vmatpush1.bf16.msra.mxu0 %v7039_v20  ;;  %v7069_v20 = vld [vmem:[#allocation11 + $0xa0] ss:$16 sps:$4 sm:$0xff]  }
 0x68b   :  { %3000 = vmatpush1.bf16.msra.mxu1 %v8146_v19  ;;  %v7044_v19 = vld [vmem:[#allocation12 + $0x84] ss:$16 sps:$4 sm:$0xff]  }
 0x68c   :  { %3001 = vmatprep.subr.bf16.mxu1 %v8148_v15  ;;  %v7042_v15 = vld [vmem:[#allocation12 + $0x80] ss:$16 sps:$4 sm:$0xff]   ;;  %2958 = vmatprep.subr.bf16.mxu0 %v7044_v19  ;;  %v7072_v19 = vld [vmem:[#allocation11 + $0xa8] ss:$16 sps:$4 sm:$0xff]  }
 0x68e   :  { %2959 = vmatpush1.bf16.msra.mxu0 %v7042_v15  ;;  %v7077_v15 = vld [vmem:[#allocation11 + $0x84] ss:$16 sps:$4 sm:$0xff]  }
 0x68f   :  { %3002 = vmatpush1.bf16.msra.mxu1 %v8152_v13  ;;  %v7047_v13 = vld [vmem:[#allocation12 + $0x64] ss:$16 sps:$4 sm:$0xff]  }
 0x690   :  { %3003 = vmatprep.subr.bf16.mxu1 %v8155_v14  ;;  %v7045_v14 = vld [vmem:[#allocation12 + $0x60] ss:$16 sps:$4 sm:$0xff]   ;;  %2960 = vmatprep.subr.bf16.mxu0 %v7047_v13  ;;  %v7080_v13 = vld [vmem:[#allocation11 + $0x8c] ss:$16 sps:$4 sm:$0xff]  }
 0x692   :  { %2961 = vmatpush1.bf16.msra.mxu0 %v7045_v14  ;;  %v7075_v14 = vld [vmem:[#allocation11 + $0x80] ss:$16 sps:$4 sm:$0xff]  }
 0x693   :  { %3004 = vmatpush1.bf16.msra.mxu1 %v8158_v17  ;;  %v7050_v17 = vld [vmem:[#allocation12 + $0x44] ss:$16 sps:$4 sm:$0xff]  }
 0x694   :  { %3005 = vmatprep.subr.bf16.mxu1 %v8161_v18  ;;  %v7062_v18 = vld [vmem:[#allocation11 + $0xec] ss:$16 sps:$4 sm:$0xff]   ;;  %2962 = vmatprep.subr.bf16.mxu0 %v7050_v17  ;;  %v7078_v17 = vld [vmem:[#allocation11 + $0x88] ss:$16 sps:$4 sm:$0xff]  }
 0x697   :  { %3006 = vmatpush1.bf16.msra.mxu1 %v8164_v21  ;;  %v7048_v21 = vld [vmem:[#allocation12 + $0x40] ss:$16 sps:$4 sm:$0xff]  }
 0x698   :  { %3007 = vmatprep.subr.bf16.mxu1 %v8167_v22  ;;  %v7053_v22 = vld [vmem:[#allocation12 + $0x24] ss:$16 sps:$4 sm:$0xff]   ;;  %2963 = vmatpush1.bf16.msra.mxu0 %v7048_v21  ;;  %v7086_v21 = vld [vmem:[#allocation11 + $0x6c] ss:$16 sps:$4 sm:$0xff]  }
 0x699   :  { %2964 = vmatprep.subr.bf16.mxu0 %v7053_v22  ;;  %v7081_v22 = vld [vmem:[#allocation11 + $0x60] ss:$16 sps:$4 sm:$0xff]  }
 0x69b   :  { %3008 = vmatpush1.bf16.msra.mxu1 %v8170_v25  ;;  %v7051_v25 = vld [vmem:[#allocation12 + $0x20] ss:$16 sps:$4 sm:$0xff]  }
 0x69c   :  { %3371 = vmatprep.subr.bf16.mxu1 %v7062_v18  ;;  %2965 = vmatpush1.bf16.msra.mxu0 %v7051_v25  ;;  %v7083_v18 = vld [vmem:[#allocation11 + $0x64] ss:$16 sps:$4 sm:$0xff]   ;;  %v7084_v25 = vld [vmem:[#allocation11 + $0x68] ss:$16 sps:$4 sm:$0xff]  }
 0x69d   :  { %2966 = vmatprep.subr.bf16.mxu0 %v7056_v36  ;;  %v7089_v36 = vld [vmem:[#allocation11 + $0x44] ss:$16 sps:$4 sm:$0xff]  }
 0x6a0   :  { %2967 = vmatpush1.bf16.msra.mxu0 %v7054_v35  ;;  %v7092_v35 = vld [vmem:[#allocation11 + $0x4c] ss:$16 sps:$4 sm:$0xff]  }
 0x6a1   :  { %3298 = vmatprep.subr.bf16.mxu0 %v7059_v39  ;;  %v7087_v39 = vld [vmem:[#allocation11 + $0x40] ss:$16 sps:$4 sm:$0xff]  }
 0x73e   :  { %v2670_v52 = vpop.f32.mrf.mxu0  ;;  %v2711_v9 = vpop.f32.mrf.mxu1 }
 0x73f   :  { %v2718_v27 = vadd.f32 %v2670_v52, %v8994_v34  ;;  %v2720_v6 = vadd.f32 %v2711_v9, %v8997_v5  ;;  %v7090_v52 = vld [vmem:[#allocation11 + $0x48] ss:$16 sps:$4 sm:$0xff]   ;;  %v7095_v9 = vld [vmem:[#allocation11 + $0x24] ss:$16 sps:$4 sm:$0xff]   ;;  %v7098_v34 = vld [vmem:[#allocation11 + $0x2c] ss:$16 sps:$4 sm:$0xff]  }
 0x740   :  { %v2672_v56 = vpop.f32.mrf.mxu0  ;;  %v2713_v57 = vpop.f32.mrf.mxu1  ;;  %v8349_v5 = vld [vmem:[#allocation12 + $0x1a0] ss:$16 sps:$4 sm:$0xff]  }
 0x741   :  { %v6473_v58 = vmul.f32 -1.442695, %v2718_v27  ;;  %v2719_v60 = vadd.f32 %v2672_v56, %v8995_v59  ;;  %v2721_v4 = vadd.f32 %v2713_v57, %v8996_v3  ;;  %v7093_v27 = vld [vmem:[#allocation11 + $0x20] ss:$16 sps:$4 sm:$0xff]   ;;  %v7096_v56 = vld [vmem:[#allocation11 + $0x28] ss:$16 sps:$4 sm:$0xff]  }
 0x742   :  { %v2674_v61 = vpop.f32.mrf.mxu0  ;;  %v2715_v62 = vpop.f32.mrf.mxu1  ;;  %v7101_v57 = vld [vmem:[#allocation11 + $0x4] ss:$16 sps:$4 sm:$0xff]   ;;  %v7099_v59 = vld [vmem:[#allocation11] ss:$16 sps:$4 sm:$0xff]  }
 0x743   :  { %7305 = vpow2.f32 %v6473_v58  ;;  %v6474_v63 = vmul.f32 -1.442695, %v2719_v60  ;;  %v6475_v40 = vmul.f32 -1.442695, %v2721_v4  ;;  %v7104_v58 = vld [vmem:[#allocation11 + $0xc] ss:$16 sps:$4 sm:$0xff]   ;;  %v3079_v61 = vpack.c.bf16 %v8026_v49, %v7985_v28 }
 0x744   :  { %v2675_v1 = vpop.f32.mrf.mxu0  ;;  %v2716_v2 = vpop.f32.mrf.mxu1  ;;  %v7102_v60 = vld [vmem:[#allocation11 + $0x8] ss:$16 sps:$4 sm:$0xff]   ;;  %v3080_v62 = vpack.c.bf16 %v8183_v16, %v8104_v8  ;;  %v8321_v28 = vld [vmem:[#allocation12 + $0x1e4] ss:$16 sps:$4 sm:$0xff]   ;;  %v8323_v49 = vld [vmem:[#allocation12 + $0x1ec] ss:$16 sps:$4 sm:$0xff]  }
 0x745   :  { %7307 = vpow2.f32 %v6474_v63  ;;  %v3081_v63 = vpack.c.bf16 %v8274_v23, %v8229_v44  ;;  %v8325_v8 = vld [vmem:[#allocation12 + $0x1e0] ss:$16 sps:$4 sm:$0xff]   ;;  %v8327_v16 = vld [vmem:[#allocation12 + $0x1e8] ss:$16 sps:$4 sm:$0xff]   ;;  %v8333_v44 = vld [vmem:[#allocation12 + $0x1c4] ss:$16 sps:$4 sm:$0xff]  }
 0x746   :  { %7309 = vtanh.f32 %v2720_v6  ;;  %v8335_v23 = vld [vmem:[#allocation12 + $0x1cc] ss:$16 sps:$4 sm:$0xff]   ;;  %v8337_v1 = vld [vmem:[#allocation12 + $0x1c0] ss:$16 sps:$4 sm:$0xff]   ;;  %v8339_v2 = vld [vmem:[#allocation12 + $0x1c8] ss:$16 sps:$4 sm:$0xff]  }
 0x747   :  { %7311 = vpow2.f32 %v6475_v40  ;;  %v8345_v3 = vld [vmem:[#allocation12 + $0x1a4] ss:$16 sps:$4 sm:$0xff]   ;;  %v8347_v4 = vld [vmem:[#allocation12 + $0x1ac] ss:$16 sps:$4 sm:$0xff]   ;;  %v8351_v6 = vld [vmem:[#allocation12 + $0x1a8] ss:$16 sps:$4 sm:$0xff]  }
 0x748   :  { %v8357_v40 = vld [vmem:[#allocation12 + $0x184] ss:$16 sps:$4 sm:$0xff]  }
 0x750   :  { %v7306_v42 = vpop.eup %7305 }
 0x751   :  { %v2725_v11 = vadd.f32 1.0, %v7306_v42  ;;  %v8359_v42 = vld [vmem:[#allocation12 + $0x18c] ss:$16 sps:$4 sm:$0xff]  }
 0x752   :  { %v7308_v50 = vpop.eup %7307 }
 0x753   :  { %7313 = vrcp.f32 %v2725_v11  ;;  %v2731_v32 = vadd.f32 1.0, %v7308_v50  ;;  %v7310_v37 = vpop.eup %7309  ;;  %v8361_v11 = vld [vmem:[#allocation12 + $0x180] ss:$16 sps:$4 sm:$0xff]   ;;  %v8363_v50 = vld [vmem:[#allocation12 + $0x188] ss:$16 sps:$4 sm:$0xff]  }
 0x754   :  { %v7312_v24 = vpop.eup %7311 }
 0x755   :  { %7315 = vrcp.f32 %v2731_v32  ;;  %v2738_v43 = vadd.f32 1.0, %v7312_v24  ;;  %v8369_v32 = vld [vmem:[#allocation12 + $0x164] ss:$16 sps:$4 sm:$0xff]   ;;  %v8373_v24 = vld [vmem:[#allocation12 + $0x160] ss:$16 sps:$4 sm:$0xff]  }
 0x757   :  { %7317 = vrcp.f32 %v2738_v43  ;;  %v8385_v43 = vld [vmem:[#allocation12 + $0x140] ss:$16 sps:$4 sm:$0xff]  }
 0x760   :  { %v7314_v41 = vpop.eup %7313 }
 0x761   :  { %v2743_v31 = vmul.f32 %v7314_v41, %v7310_v37  ;;  %v8371_v37 = vld [vmem:[#allocation12 + $0x16c] ss:$16 sps:$4 sm:$0xff]   ;;  %v8375_v41 = vld [vmem:[#allocation12 + $0x168] ss:$16 sps:$4 sm:$0xff]  }
 0x762   :  { %v7316_v55 = vpop.eup %7315 }
 0x763   :  { %v2742_v53 = vmul.f32 %v7316_v55, %v8271_v33  ;;  %v7063_v33 = vld [vmem:[#allocation11 + $0xc0] ss:$16 sps:$4 sm:$0xff]   ;;  %v8383_v55 = vld [vmem:[#allocation12 + $0x14c] ss:$16 sps:$4 sm:$0xff]  }
 0x764   :  { %v7318_v30 = vpop.eup %7317 }
 0x765   :  { %v8300_v26 = vadd.f32 %v2743_v31, %v2742_v53  ;;  %v8381_v31 = vld [vmem:[#allocation12 + $0x144] ss:$16 sps:$4 sm:$0xff]   ;;  %v8387_v53 = vld [vmem:[#allocation12 + $0x148] ss:$16 sps:$4 sm:$0xff]  }
 0x767   :  { %7319 = vtanh.f32 %v8300_v26 }
 0x774   :  { %v7320_v10 = vpop.eup %7319 }
 0x775   :  { %v8303_v45 = vmul.f32 %v7320_v10, %v7318_v30  ;;  %v8393_v30 = vld [vmem:[#allocation12 + $0x124] ss:$16 sps:$4 sm:$0xff]   ;;  %v8395_v10 = vld [vmem:[#allocation12 + $0x12c] ss:$16 sps:$4 sm:$0xff]  }
 0x777   :  { %v2759_v29 = vpack.c.bf16 %v8303_v45, %v8303_v45 }
 0x779   :  { %2985 = vmatmul.mubr.bf16.vlgmr.msra.gmra.mxu0 %v2759_v29  ;;  %3026 = vmatmul.mubr.bf16.vlgmr.msra.gmra.mxu1 %v2759_v29  ;;  %v8403_v29 = vld [vmem:[#allocation12 + $0x104] ss:$16 sps:$4 sm:$0xff]  }
 0x77a   :  { %3299 = vmatpush1.bf16.msra.mxu0 %v7057_v47  ;;  %3372 = vmatpush1.bf16.msra.mxu1 %v7060_v54  ;;  %v8397_v47 = vld [vmem:[#allocation12 + $0x120] ss:$16 sps:$4 sm:$0xff]   ;;  %v8399_v54 = vld [vmem:[#allocation12 + $0x128] ss:$16 sps:$4 sm:$0xff]  }
 0x77b   :  { %3300 = vmatprep.subr.bf16.mxu0 %v7065_v51  ;;  %3373 = vmatprep.subr.bf16.mxu1 %v7068_v38  ;;  %v8405_v51 = vld [vmem:[#allocation12 + $0x10c] ss:$16 sps:$4 sm:$0xff]   ;;  %v8409_v38 = vld [vmem:[#allocation12 + $0x100] ss:$16 sps:$4 sm:$0xff]  }
 0x77c   :  { %3330 = vmatprep.mubr.bf16.mxu0 %v8988_v46  ;;  %3403 = vmatprep.mubr.bf16.mxu1 %v8988_v46 }
 0x77e   :  { %3301 = vmatpush1.bf16.msra.mxu0 %v7063_v33  ;;  %3374 = vmatpush1.bf16.msra.mxu1 %v7066_v12  ;;  %v8411_v33 = vld [vmem:[#allocation12 + $0x108] ss:$16 sps:$4 sm:$0xff]  }
 0x77f   :  { %3302 = vmatprep.subr.bf16.mxu0 %v7071_v48  ;;  %3375 = vmatprep.subr.bf16.mxu1 %v7074_v7  ;;  %v8998_v7 = vld [vmem:[#allocation32_spill] sm:$0xff] }
 0x782   :  { %3303 = vmatpush1.bf16.msra.mxu0 %v7069_v20  ;;  %3376 = vmatpush1.bf16.msra.mxu1 %v7072_v19 }
 0x783   :  { %3304 = vmatprep.subr.bf16.mxu0 %v7077_v15  ;;  %3377 = vmatprep.subr.bf16.mxu1 %v7080_v13 }
 0x786   :  { %3305 = vmatpush1.bf16.msra.mxu0 %v7075_v14  ;;  %3378 = vmatpush1.bf16.msra.mxu1 %v7078_v17  ;;  %v8999_v14 = vld [vmem:[#allocation33_spill] sm:$0xff] }
 0x787   :  { %3306 = vmatprep.subr.bf16.mxu0 %v7083_v18  ;;  %3379 = vmatprep.subr.bf16.mxu1 %v7086_v21 }
 0x78a   :  { %3307 = vmatpush1.bf16.msra.mxu0 %v7081_v22  ;;  %3380 = vmatpush1.bf16.msra.mxu1 %v7084_v25 }
 0x78b   :  { %3308 = vmatprep.subr.bf16.mxu0 %v7089_v36  ;;  %3381 = vmatprep.subr.bf16.mxu1 %v7092_v35 }
 0x78e   :  { %3309 = vmatpush1.bf16.msra.mxu0 %v7087_v39  ;;  %3382 = vmatpush1.bf16.msra.mxu1 %v7090_v52  ;;  %v9000_v39 = vld [vmem:[#allocation39_spill] sm:$0xff] }
 0x78f   :  { %3310 = vmatprep.subr.bf16.mxu0 %v7095_v9  ;;  %3383 = vmatprep.subr.bf16.mxu1 %v7098_v34 }
 0x792   :  { %3311 = vmatpush1.bf16.msra.mxu0 %v7093_v27  ;;  %3384 = vmatpush1.bf16.msra.mxu1 %v7096_v56 }
 0x793   :  { %3312 = vmatprep.subr.bf16.mxu0 %v7101_v57  ;;  %3385 = vmatprep.subr.bf16.mxu1 %v7104_v58 }
 0x796   :  { %3313 = vmatpush1.bf16.msra.mxu0 %v7099_v59  ;;  %3386 = vmatpush1.bf16.msra.mxu1 %v7102_v60 }
 0x797   :  { %3677 = vmatprep.subr.bf16.mxu0 %v8321_v28  ;;  %3718 = vmatprep.subr.bf16.mxu1 %v8323_v49 }
 0x799   :  { %3331 = vmatmul.mubr.bf16.vlgmr.msra.gmra.mxu0 %v3079_v61  ;;  %3404 = vmatmul.mubr.bf16.vlgmr.msra.gmra.mxu1 %v3079_v61 }
 0x79a   :  { %3340 = vmatprep.mubr.bf16.mxu0 %v8988_v46  ;;  %3413 = vmatprep.mubr.bf16.mxu1 %v8988_v46 }
 0x79b   :  { %3678 = vmatpush1.bf16.msra.mxu0 %v8325_v8  ;;  %3719 = vmatpush1.bf16.msra.mxu1 %v8327_v16 }
 0x79c   :  { %3679 = vmatprep.subr.bf16.mxu0 %v8333_v44  ;;  %3720 = vmatprep.subr.bf16.mxu1 %v8335_v23 }
 0x79f   :  { %3680 = vmatpush1.bf16.msra.mxu0 %v8337_v1  ;;  %3721 = vmatpush1.bf16.msra.mxu1 %v8339_v2 }
 0x7a0   :  { %3681 = vmatprep.subr.bf16.mxu0 %v8345_v3  ;;  %3722 = vmatprep.subr.bf16.mxu1 %v8347_v4 }
 0x7a1   :  { %3341 = vmatmul.mubr.bf16.gmra.mxu0 %v3080_v62  ;;  %3414 = vmatmul.mubr.bf16.gmra.mxu1 %v3080_v62 }
 0x7a2   :  { %3350 = vmatprep.mubr.bf16.mxu0 %v8988_v46  ;;  %3423 = vmatprep.mubr.bf16.mxu1 %v8988_v46 }
 0x7a3   :  { %3682 = vmatpush1.bf16.msra.mxu0 %v8349_v5  ;;  %3723 = vmatpush1.bf16.msra.mxu1 %v8351_v6 }
 0x7a4   :  { %3683 = vmatprep.subr.bf16.mxu0 %v8357_v40  ;;  %3724 = vmatprep.subr.bf16.mxu1 %v8359_v42 }
 0x7a7   :  { %3684 = vmatpush1.bf16.msra.mxu0 %v8361_v11  ;;  %3725 = vmatpush1.bf16.msra.mxu1 %v8363_v50 }
 0x7a8   :  { %3685 = vmatprep.subr.bf16.mxu0 %v8369_v32  ;;  %3726 = vmatprep.subr.bf16.mxu1 %v8371_v37 }
 0x7a9   :  { %3351 = vmatmul.mubr.bf16.gmra.mxu0 %v3081_v63  ;;  %3424 = vmatmul.mubr.bf16.gmra.mxu1 %v3081_v63 }
 0x7aa   :  { %3360 = vmatprep.mubr.bf16.mxu0 %v8988_v46  ;;  %3433 = vmatprep.mubr.bf16.mxu1 %v8988_v46 }
 0x7ab   :  { %3686 = vmatpush1.bf16.msra.mxu0 %v8373_v24  ;;  %3727 = vmatpush1.bf16.msra.mxu1 %v8375_v41 }
 0x7ac   :  { %3687 = vmatprep.subr.bf16.mxu0 %v8381_v31  ;;  %3728 = vmatprep.subr.bf16.mxu1 %v8383_v55 }
 0x7af   :  { %3688 = vmatpush1.bf16.msra.mxu0 %v8385_v43  ;;  %3729 = vmatpush1.bf16.msra.mxu1 %v8387_v53 }
 0x7b0   :  { %3689 = vmatprep.subr.bf16.mxu0 %v8393_v30  ;;  %3730 = vmatprep.subr.bf16.mxu1 %v8395_v10 }
 0x7b3   :  { %3690 = vmatpush1.bf16.msra.mxu0 %v8397_v47  ;;  %3731 = vmatpush1.bf16.msra.mxu1 %v8399_v54 }
 0x7b4   :  { %3691 = vmatprep.subr.bf16.mxu0 %v8403_v29  ;;  %3732 = vmatprep.subr.bf16.mxu1 %v8405_v51 }
 0x7b7   :  { %3692 = vmatpush1.bf16.msra.mxu0 %v8409_v38  ;;  %3733 = vmatpush1.bf16.msra.mxu1 %v8411_v33 }
 0x7b8   :  { %3989 = vmatprep.subr.bf16.mxu0 %v8321_v28  ;;  %4030 = vmatprep.subr.bf16.mxu1 %v8323_v49 }
 0x839   :  { %v2986_v12 = vpop.f32.mrf.mxu0  ;;  %v3027_v48 = vpop.f32.mrf.mxu1 }
 0x83a   :  { %v3034_v20 = vadd.f32 %v2986_v12, %v8998_v7  ;;  %v3036_v52 = vadd.f32 %v3027_v48, %v9000_v39 }
 0x83b   :  { %v2988_v19 = vpop.f32.mrf.mxu0  ;;  %v3029_v15 = vpop.f32.mrf.mxu1 }
 0x83c   :  { %v6508_v13 = vmul.f32 -1.442695, %v3034_v20  ;;  %v3035_v17 = vadd.f32 %v2988_v19, %v8999_v14  ;;  %v3037_v35 = vadd.f32 %v3029_v15, %v7980_v0  ;;  %v9001_v15 = vmov 0.0|0.0  }
 0x83d   :  { %v2990_v18 = vpop.f32.mrf.mxu0  ;;  %v3031_v21 = vpop.f32.mrf.mxu1 }
 0x83e   :  { %7321 = vpow2.f32 %v6508_v13  ;;  %v6509_v22 = vmul.f32 -1.442695, %v3035_v17  ;;  %v6510_v9 = vmul.f32 -1.442695, %v3037_v35 }
 0x83f   :  { %v2991_v25 = vpop.f32.mrf.mxu0  ;;  %v3032_v36 = vpop.f32.mrf.mxu1 }
 0x840   :  { %7323 = vpow2.f32 %v6509_v22 }
 0x841   :  { %7325 = vtanh.f32 %v3036_v52 }
 0x842   :  { %7327 = vpow2.f32 %v6510_v9 }
 0x84b   :  { %v7322_v34 = vpop.eup %7321 }
 0x84c   :  { %v3041_v27 = vadd.f32 1.0, %v7322_v34 }
 0x84d   :  { %v7324_v56 = vpop.eup %7323 }
 0x84e   :  { %7329 = vrcp.f32 %v3041_v27  ;;  %v3047_v57 = vadd.f32 1.0, %v7324_v56  ;;  %v7326_v58 = vpop.eup %7325 }
 0x84f   :  { %v7328_v59 = vpop.eup %7327 }
 0x850   :  { %7331 = vrcp.f32 %v3047_v57  ;;  %v3054_v63 = vadd.f32 1.0, %v7328_v59 }
 0x852   :  { %7333 = vrcp.f32 %v3054_v63 }
 0x85b   :  { %v7330_v60 = vpop.eup %7329 }
 0x85c   :  { %v3059_v61 = vmul.f32 %v7330_v60, %v7326_v58 }
 0x85d   :  { %v7332_v62 = vpop.eup %7331 }
 0x85e   :  { %v3058_v12 = vmul.f32 %v7332_v62, %v8300_v26  ;;  %v3332_v26 = vpop.f32.mrf.mxu0 }
 0x85f   :  { %v7334_v48 = vpop.eup %7333 }
 0x860   :  { %v3060_v0 = vadd.f32 %v3059_v61, %v3058_v12  ;;  %v3334_v13 = vpop.f32.mrf.mxu0  ;;  %v3116_v12 = vld [vmem:[#allocation14 + $0x4] sm:$0xf] }
 0x862   :  { %3070 = vst [vmem:[#allocation20] sm:$0xff] %v3060_v0  ;;  %7335 = vtanh.f32 %v3060_v0  ;;  %v8463_v17 = vpop.f32.mrf.mxu0 }
 0x864   :  { %v8467_v21 = vpop.f32.mrf.mxu0 }
 0x866   :  { %v8471_v25 = vpop.f32.mrf.mxu0 }
 0x868   :  { %v8475_v35 = vpop.f32.mrf.mxu0 }
 0x86a   :  { %v8479_v52 = vpop.f32.mrf.mxu0 }
 0x86b   :  { %9003 = vst [vmem:[#allocation28_spill] sm:$0xff] %v8479_v52 }
 0x86c   :  { %v8483_v34 = vpop.f32.mrf.mxu0 }
 0x86d   :  { %9005 = vst [vmem:[#allocation36_spill] sm:$0xff] %v8483_v34 }
 0x86e   :  { %v8487_v56 = vpop.f32.mrf.mxu0 }
 0x86f   :  { %v7336_v7 = vpop.eup %7335  ;;  %9007 = vst [vmem:[#allocation30_spill] sm:$0xff] %v8487_v56 }
 0x870   :  { %v3062_v20 = vmul.f32 %v7336_v7, %v7334_v48  ;;  %v8491_v58 = vpop.f32.mrf.mxu0 }
 0x871   :  { %9009 = vst [vmem:[#allocation38_spill] sm:$0xff] %v8491_v58 }
 0x872   :  { %3068 = vst [vmem:[#allocation18] sm:$0xff] %v3062_v20  ;;  %v3082_v19 = vpack.c.bf16 %v3062_v20, %v8303_v45  ;;  %v3405_v45 = vpop.f32.mrf.mxu1  ;;  %v8495_v60 = vpop.f32.mrf.mxu0 }
 0x873   :  { %9011 = vst [vmem:[#allocation32_spill] sm:$0xff] %v8495_v60 }
 0x874   :  { %3361 = vmatmul.mubr.bf16.gmra.mxu0 %v3082_v19  ;;  %3434 = vmatmul.mubr.bf16.gmra.mxu1 %v3082_v19  ;;  %v3407_v14 = vpop.f32.mrf.mxu1  ;;  %v8499_v62 = vpop.f32.mrf.mxu0  ;;  %v9019_v19 = vld [vmem:[#allocation27_spill] sm:$0xff] }
 0x875   :  { %3709 = vmatprep.mubr.bf16.mxu0 %v8988_v46  ;;  %3750 = vmatprep.mubr.bf16.mxu1 %v8988_v46  ;;  %9013 = vst [vmem:[#allocation39_spill] sm:$0xff] %v8499_v62  ;;  %v9023_v62 = vsub.s32 1, %v9019_v19  ;;  %v9026_v52 = vsub.s32 3, %v9019_v19 }
 0x876   :  { %v8465_v18 = vpop.f32.mrf.mxu1 }
 0x878   :  { %v8469_v22 = vpop.f32.mrf.mxu1 }
 0x87a   :  { %v8473_v36 = vpop.f32.mrf.mxu1 }
 0x87b   :  { %9002 = vst [vmem:[#allocation34_spill] sm:$0xff] %v8473_v36 }
 0x87c   :  { %3710 = vmatmul.mubr.bf16.vlgmr.msra.gmra.mxu0 %v9001_v15  ;;  %3751 = vmatmul.mubr.bf16.vlgmr.msra.gmra.mxu1 %v9001_v15  ;;  %v8477_v39 = vpop.f32.mrf.mxu1  ;;  %v9020_v15 = vsub.s32 0, %v9019_v19 }
 0x87d   :  { %3990 = vmatpush1.bf16.msra.mxu0 %v8325_v8  ;;  %4031 = vmatpush1.bf16.msra.mxu1 %v8327_v16 }
 0x87e   :  { %3991 = vmatprep.subr.bf16.mxu0 %v8333_v44  ;;  %4032 = vmatprep.subr.bf16.mxu1 %v8335_v23  ;;  %v8481_v9 = vpop.f32.mrf.mxu1 }
 0x87f   :  { %4021 = vmatprep.mubr.bf16.mxu0 %v8988_v46  ;;  %4062 = vmatprep.mubr.bf16.mxu1 %v8988_v46  ;;  %9004 = vst [vmem:[#allocation29_spill] sm:$0xff] %v8481_v9 }
 0x880   :  { %v8485_v27 = vpop.f32.mrf.mxu1 }
 0x881   :  { %3992 = vmatpush1.bf16.msra.mxu0 %v8337_v1  ;;  %4033 = vmatpush1.bf16.msra.mxu1 %v8339_v2  ;;  %9006 = vst [vmem:[#allocation35_spill] sm:$0xff] %v8485_v27 }
 0x882   :  { %3993 = vmatprep.subr.bf16.mxu0 %v8345_v3  ;;  %4034 = vmatprep.subr.bf16.mxu1 %v8347_v4  ;;  %v8489_v57 = vpop.f32.mrf.mxu1 }
 0x883   :  { %9008 = vst [vmem:[#allocation31_spill] sm:$0xff] %v8489_v57  ;;  %v8513_v57 = vrot.slane %v3116_v12, %v9020_v15 }
 0x884   :  { %v8493_v59 = vpop.f32.mrf.mxu1 }
 0x885   :  { %3994 = vmatpush1.bf16.msra.mxu0 %v8349_v5  ;;  %4035 = vmatpush1.bf16.msra.mxu1 %v8351_v6  ;;  %9010 = vst [vmem:[#allocation37_spill] sm:$0xff] %v8493_v59 }
 0x886   :  { %3995 = vmatprep.subr.bf16.mxu0 %v8357_v40  ;;  %4036 = vmatprep.subr.bf16.mxu1 %v8359_v42  ;;  %v8497_v61 = vpop.f32.mrf.mxu1 }
 0x887   :  { %9012 = vst [vmem:[#allocation33_spill] sm:$0xff] %v8497_v61 }
 0x888   :  { %v8501_v63 = vpop.f32.mrf.mxu1 }
 0x889   :  { %3996 = vmatpush1.bf16.msra.mxu0 %v8361_v11  ;;  %4037 = vmatpush1.bf16.msra.mxu1 %v8363_v50  ;;  %9014 = vst [vmem:[#allocation40_spill] sm:$0xff] %v8501_v63  ;;  %v8521_v63 = vrot.slane %v3116_v12, %v9023_v62 }
 0x88a   :  { %3997 = vmatprep.subr.bf16.mxu0 %v8369_v32  ;;  %4038 = vmatprep.subr.bf16.mxu1 %v8371_v37 }
 0x88b   :  { %v3335_v58 = vadd.f32 %v3334_v13, %v8521_v63  ;;  %v9027_v13 = vsub.s32 2, %v9019_v19 }
 0x88d   :  { %3998 = vmatpush1.bf16.msra.mxu0 %v8373_v24  ;;  %4039 = vmatpush1.bf16.msra.mxu1 %v8375_v41 }
 0x88e   :  { %3999 = vmatprep.subr.bf16.mxu0 %v8381_v31  ;;  %4040 = vmatprep.subr.bf16.mxu1 %v8383_v55 }
 0x891   :  { %4000 = vmatpush1.bf16.msra.mxu0 %v8385_v43  ;;  %4041 = vmatpush1.bf16.msra.mxu1 %v8387_v53 }
 0x892   :  { %4001 = vmatprep.subr.bf16.mxu0 %v8393_v30  ;;  %4042 = vmatprep.subr.bf16.mxu1 %v8395_v10 }
 0x895   :  { %4002 = vmatpush1.bf16.msra.mxu0 %v8397_v47  ;;  %4043 = vmatpush1.bf16.msra.mxu1 %v8399_v54 }
 0x896   :  { %4003 = vmatprep.subr.bf16.mxu0 %v8403_v29  ;;  %4044 = vmatprep.subr.bf16.mxu1 %v8405_v51 }
 0x899   :  { %4004 = vmatpush1.bf16.msra.mxu0 %v8409_v38  ;;  %4045 = vmatpush1.bf16.msra.mxu1 %v8411_v33 }
 0x89a   :  { %4301 = vmatprep.subr.bf16.mxu0 %v8321_v28  ;;  %4342 = vmatprep.subr.bf16.mxu1 %v8323_v49 }
 0x934   :  { %v8503_v0 = vpop.f32.mrf.mxu0  ;;  %v8505_v48 = vpop.f32.mrf.mxu1 }
 0x935   :  { %9015 = vst [vmem:[#allocation41_spill] sm:$0xff] %v8503_v0  ;;  %9016 = vst [vmem:[#allocation42_spill] sm:$0xff] %v8505_v48  ;;  %v3333_v48 = vadd.f32 %v3332_v26, %v8513_v57 }
 0x936   :  { %v8507_v7 = vpop.f32.mrf.mxu0  ;;  %v8509_v20 = vpop.f32.mrf.mxu1 }
 0x937   :  { %9017 = vst [vmem:[#allocation43_spill] sm:$0xff] %v8507_v7  ;;  %9018 = vst [vmem:[#allocation44_spill] sm:$0xff] %v8509_v20 }
 0x938   :  { %v8515_v60 = vpop.f32.mrf.mxu0  ;;  %v8517_v61 = vpop.f32.mrf.mxu1 }
 0x939   :  { %9021 = vst [vmem:[#allocation27_spill] sm:$0xff] %v8515_v60  ;;  %9022 = vst [vmem:[#allocation45_spill] sm:$0xff] %v8517_v61 }
 0x93a   :  { %v8523_v59 = vpop.f32.mrf.mxu0  ;;  %v8525_v0 = vpop.f32.mrf.mxu1 }
 0x93b   :  { %9024 = vst [vmem:[#allocation46_spill] sm:$0xff] %v8523_v59  ;;  %9025 = vst [vmem:[#allocation47_spill] sm:$0xff] %v8525_v0  ;;  %v8531_v59 = vrot.slane %v3116_v12, %v9026_v52 }
 0x93c   :  { %v3711_v7 = vpop.f32.mrf.mxu0  ;;  %v3752_v20 = vpop.f32.mrf.mxu1 }
 0x93d   :  { %v3759_v15 = vadd.f32 %v3711_v7, %v3333_v48  ;;  %v3408_v26 = vadd.f32 %v3407_v14, %v8531_v59  ;;  %v8536_v48 = vrot.slane %v3116_v12, %v9027_v13 }
 0x93e   :  { %v3713_v56 = vpop.f32.mrf.mxu0  ;;  %v3754_v9 = vpop.f32.mrf.mxu1 }
 0x93f   :  { %v6575_v60 = vmul.f32 -1.442695, %v3759_v15  ;;  %v3760_v27 = vadd.f32 %v3713_v56, %v3335_v58  ;;  %v3762_v7 = vadd.f32 %v3754_v9, %v3408_v26  ;;  %v3406_v56 = vadd.f32 %v3405_v45, %v8536_v48 }
 0x940   :  { %v3715_v61 = vpop.f32.mrf.mxu0  ;;  %v3756_v34 = vpop.f32.mrf.mxu1 }
 0x941   :  { %7337 = vpow2.f32 %v6575_v60  ;;  %v6576_v62 = vmul.f32 -1.442695, %v3760_v27  ;;  %v6577_v58 = vmul.f32 -1.442695, %v3762_v7  ;;  %v3761_v60 = vadd.f32 %v3752_v20, %v3406_v56 }
 0x942   :  { %v3716_v0 = vpop.f32.mrf.mxu0  ;;  %v3757_v36 = vpop.f32.mrf.mxu1  ;;  %v3337_v7 = vadd.f32 %v8463_v17, %v8513_v57 }
 0x943   :  { %7339 = vpow2.f32 %v6576_v62 }
 0x944   :  { %7341 = vpow2.f32 %v6577_v58 }
 0x94e   :  { %v7338_v34 = vpop.eup %7337 }
 0x94f   :  { %v3766_v27 = vadd.f32 1.0, %v7338_v34  ;;  %v3339_v34 = vadd.f32 %v8467_v21, %v8521_v63 }
 0x950   :  { %v7340_v61 = vpop.eup %7339 }
 0x951   :  { %7343 = vrcp.f32 %v3766_v27  ;;  %v3772_v52 = vadd.f32 1.0, %v7340_v61  ;;  %v7342_v36 = vpop.eup %7341 }
 0x952   :  { %7345 = vtanh.f32 %v3761_v60  ;;  %v3779_v19 = vadd.f32 1.0, %v7342_v36 }
 0x953   :  { %7347 = vrcp.f32 %v3772_v52 }
 0x954   :  { %7349 = vrcp.f32 %v3779_v19 }
 0x95e   :  { %v7344_v0 = vpop.eup %7343 }
 0x95f   :  { %v7346_v14 = vpop.eup %7345 }
 0x960   :  { %v7348_v15 = vpop.eup %7347  ;;  %v3784_v62 = vmul.f32 %v7346_v14, %v7344_v0 }
 0x961   :  { %v3783_v12 = vmul.f32 0.0, %v7348_v15  ;;  %v7350_v45 = vpop.eup %7349 }
 0x963   :  { %v8539_v9 = vadd.f32 %v3784_v62, %v3783_v12  ;;  %v3410_v12 = vadd.f32 %v8465_v18, %v8536_v48 }
 0x965   :  { %7351 = vtanh.f32 %v8539_v9 }
 0x972   :  { %v7352_v20 = vpop.eup %7351 }
 0x973   :  { %v8542_v26 = vmul.f32 %v7352_v20, %v7350_v45 }
 0x975   :  { %v3796_v13 = vpack.c.bf16 %v8542_v26, %v8542_v26 }
 0x977   :  { %4022 = vmatmul.mubr.bf16.vlgmr.msra.gmra.mxu0 %v3796_v13  ;;  %4063 = vmatmul.mubr.bf16.vlgmr.msra.gmra.mxu1 %v3796_v13 }
 0x978   :  { %4302 = vmatpush1.bf16.msra.mxu0 %v8325_v8  ;;  %4343 = vmatpush1.bf16.msra.mxu1 %v8327_v16 }
 0x979   :  { %4303 = vmatprep.subr.bf16.mxu0 %v8333_v44  ;;  %4344 = vmatprep.subr.bf16.mxu1 %v8335_v23 }
 0x97a   :  { %4333 = vmatprep.mubr.bf16.mxu0 %v8988_v46  ;;  %4374 = vmatprep.mubr.bf16.mxu1 %v8988_v46 }
 0x97c   :  { %4304 = vmatpush1.bf16.msra.mxu0 %v8337_v1  ;;  %4345 = vmatpush1.bf16.msra.mxu1 %v8339_v2 }
 0x97d   :  { %4305 = vmatprep.subr.bf16.mxu0 %v8345_v3  ;;  %4346 = vmatprep.subr.bf16.mxu1 %v8347_v4 }
 0x980   :  { %4306 = vmatpush1.bf16.msra.mxu0 %v8349_v5  ;;  %4347 = vmatpush1.bf16.msra.mxu1 %v8351_v6 }
 0x981   :  { %4307 = vmatprep.subr.bf16.mxu0 %v8357_v40  ;;  %4348 = vmatprep.subr.bf16.mxu1 %v8359_v42 }
 0x984   :  { %4308 = vmatpush1.bf16.msra.mxu0 %v8361_v11  ;;  %4349 = vmatpush1.bf16.msra.mxu1 %v8363_v50 }
 0x985   :  { %4309 = vmatprep.subr.bf16.mxu0 %v8369_v32  ;;  %4350 = vmatprep.subr.bf16.mxu1 %v8371_v37 }
 0x988   :  { %4310 = vmatpush1.bf16.msra.mxu0 %v8373_v24  ;;  %4351 = vmatpush1.bf16.msra.mxu1 %v8375_v41 }
 0x989   :  { %4311 = vmatprep.subr.bf16.mxu0 %v8381_v31  ;;  %4352 = vmatprep.subr.bf16.mxu1 %v8383_v55 }
 0x98c   :  { %4312 = vmatpush1.bf16.msra.mxu0 %v8385_v43  ;;  %4353 = vmatpush1.bf16.msra.mxu1 %v8387_v53 }
 0x98d   :  { %4313 = vmatprep.subr.bf16.mxu0 %v8393_v30  ;;  %4354 = vmatprep.subr.bf16.mxu1 %v8395_v10 }
 0x990   :  { %4314 = vmatpush1.bf16.msra.mxu0 %v8397_v47  ;;  %4355 = vmatpush1.bf16.msra.mxu1 %v8399_v54 }
 0x991   :  { %4315 = vmatprep.subr.bf16.mxu0 %v8403_v29  ;;  %4356 = vmatprep.subr.bf16.mxu1 %v8405_v51 }
 0x994   :  { %4316 = vmatpush1.bf16.msra.mxu0 %v8409_v38  ;;  %4357 = vmatpush1.bf16.msra.mxu1 %v8411_v33 }
 0x995   :  { %4613 = vmatprep.subr.bf16.mxu0 %v8321_v28  ;;  %4654 = vmatprep.subr.bf16.mxu1 %v8323_v49  ;;  %v3412_v49 = vadd.f32 %v8469_v22, %v8531_v59 }
 0xa37   :  { %v4023_v56 = vpop.f32.mrf.mxu0  ;;  %v4064_v58 = vpop.f32.mrf.mxu1 }
 0xa38   :  { %v4071_v60 = vadd.f32 %v4023_v56, %v3337_v7  ;;  %v4073_v21 = vadd.f32 %v4064_v58, %v3410_v12  ;;  %v8652_v12 = vld [vmem:[#allocation12 + $0x1e8] ss:$16 sps:$4 sm:$0xff]  }
 0xa39   :  { %v4025_v27 = vpop.f32.mrf.mxu0  ;;  %v4066_v61 = vpop.f32.mrf.mxu1 }
 0xa3a   :  { %v6610_v52 = vmul.f32 -1.442695, %v4071_v60  ;;  %v4072_v36 = vadd.f32 %v4025_v27, %v3339_v34  ;;  %v4074_v17 = vadd.f32 %v4066_v61, %v3412_v49  ;;  %v8648_v49 = vld [vmem:[#allocation12 + $0x1ec] ss:$16 sps:$4 sm:$0xff]  }
 0xa3b   :  { %v4027_v0 = vpop.f32.mrf.mxu0  ;;  %v4068_v14 = vpop.f32.mrf.mxu1 }
 0xa3c   :  { %7353 = vpow2.f32 %v6610_v52  ;;  %v6611_v15 = vmul.f32 -1.442695, %v4072_v36  ;;  %v6612_v62 = vmul.f32 -1.442695, %v4074_v17  ;;  %v8650_v17 = vld [vmem:[#allocation12 + $0x1e0] ss:$16 sps:$4 sm:$0xff]  }
 0xa3d   :  { %v4028_v28 = vpop.f32.mrf.mxu0  ;;  %v4069_v19 = vpop.f32.mrf.mxu1 }
 0xa3e   :  { %7355 = vpow2.f32 %v6611_v15  ;;  %v8646_v19 = vld [vmem:[#allocation12 + $0x1e4] ss:$16 sps:$4 sm:$0xff]  }
 0xa3f   :  { %7357 = vtanh.f32 %v4073_v21  ;;  %v8658_v21 = vld [vmem:[#allocation12 + $0x1c4] ss:$16 sps:$4 sm:$0xff]  }
 0xa40   :  { %7359 = vpow2.f32 %v6612_v62  ;;  %v8660_v62 = vld [vmem:[#allocation12 + $0x1cc] ss:$16 sps:$4 sm:$0xff]  }
 0xa49   :  { %v7354_v45 = vpop.eup %7353 }
 0xa4a   :  { %v4078_v20 = vadd.f32 1.0, %v7354_v45  ;;  %v8662_v45 = vld [vmem:[#allocation12 + $0x1c0] ss:$16 sps:$4 sm:$0xff]  }
 0xa4b   :  { %v7356_v13 = vpop.eup %7355 }
 0xa4c   :  { %7361 = vrcp.f32 %v4078_v20  ;;  %v4084_v7 = vadd.f32 1.0, %v7356_v13  ;;  %v7358_v56 = vpop.eup %7357  ;;  %v8664_v20 = vld [vmem:[#allocation12 + $0x1c8] ss:$16 sps:$4 sm:$0xff]   ;;  %v8670_v13 = vld [vmem:[#allocation12 + $0x1a4] ss:$16 sps:$4 sm:$0xff]  }
 0xa4d   :  { %v7360_v34 = vpop.eup %7359 }
 0xa4e   :  { %7363 = vrcp.f32 %v4084_v7  ;;  %v4091_v22 = vadd.f32 1.0, %v7360_v34  ;;  %v8672_v7 = vld [vmem:[#allocation12 + $0x1ac] ss:$16 sps:$4 sm:$0xff]   ;;  %v8676_v34 = vld [vmem:[#allocation12 + $0x1a8] ss:$16 sps:$4 sm:$0xff]  }
 0xa50   :  { %7365 = vrcp.f32 %v4091_v22  ;;  %v8688_v22 = vld [vmem:[#allocation12 + $0x188] ss:$16 sps:$4 sm:$0xff]  }
 0xa59   :  { %v7362_v60 = vpop.eup %7361 }
 0xa5a   :  { %v4096_v27 = vmul.f32 %v7362_v60, %v7358_v56  ;;  %v8674_v56 = vld [vmem:[#allocation12 + $0x1a0] ss:$16 sps:$4 sm:$0xff]   ;;  %v8682_v60 = vld [vmem:[#allocation12 + $0x184] ss:$16 sps:$4 sm:$0xff]  }
 0xa5b   :  { %v7364_v52 = vpop.eup %7363 }
 0xa5c   :  { %v4095_v61 = vmul.f32 %v7364_v52, %v8539_v9  ;;  %v8686_v52 = vld [vmem:[#allocation12 + $0x180] ss:$16 sps:$4 sm:$0xff]  }
 0xa5d   :  { %v7366_v18 = vpop.eup %7365 }
 0xa5e   :  { %v8589_v36 = vadd.f32 %v4096_v27, %v4095_v61  ;;  %v8684_v27 = vld [vmem:[#allocation12 + $0x18c] ss:$16 sps:$4 sm:$0xff]   ;;  %v8692_v61 = vld [vmem:[#allocation12 + $0x164] ss:$16 sps:$4 sm:$0xff]  }
 0xa60   :  { %7367 = vtanh.f32 %v8589_v36 }
 0xa6d   :  { %v7368_v58 = vpop.eup %7367 }
 0xa6e   :  { %v8592_v0 = vmul.f32 %v7368_v58, %v7366_v18  ;;  %v8698_v18 = vld [vmem:[#allocation12 + $0x160] ss:$16 sps:$4 sm:$0xff]   ;;  %v8700_v58 = vld [vmem:[#allocation12 + $0x168] ss:$16 sps:$4 sm:$0xff]  }
 0xa70   :  { %v4108_v14 = vpack.c.bf16 %v8592_v0, %v8592_v0 }
 0xa72   :  { %4334 = vmatmul.mubr.bf16.vlgmr.msra.gmra.mxu0 %v4108_v14  ;;  %4375 = vmatmul.mubr.bf16.vlgmr.msra.gmra.mxu1 %v4108_v14  ;;  %v8704_v14 = vld [vmem:[#allocation12 + $0x144] ss:$16 sps:$4 sm:$0xff]  }
 0xa73   :  { %4614 = vmatpush1.bf16.msra.mxu0 %v8325_v8  ;;  %4655 = vmatpush1.bf16.msra.mxu1 %v8327_v16  ;;  %v3343_v8 = vadd.f32 %v8471_v25, %v8513_v57 }
 0xa74   :  { %4615 = vmatprep.subr.bf16.mxu0 %v8333_v44  ;;  %4656 = vmatprep.subr.bf16.mxu1 %v8335_v23  ;;  %v3345_v23 = vadd.f32 %v8475_v35, %v8521_v63 }
 0xa75   :  { %4645 = vmatprep.mubr.bf16.mxu0 %v8988_v46  ;;  %4686 = vmatprep.mubr.bf16.mxu1 %v8988_v46 }
 0xa77   :  { %4616 = vmatpush1.bf16.msra.mxu0 %v8337_v1  ;;  %4657 = vmatpush1.bf16.msra.mxu1 %v8339_v2 }
 0xa78   :  { %4617 = vmatprep.subr.bf16.mxu0 %v8345_v3  ;;  %4658 = vmatprep.subr.bf16.mxu1 %v8347_v4 }
 0xa7b   :  { %4618 = vmatpush1.bf16.msra.mxu0 %v8349_v5  ;;  %4659 = vmatpush1.bf16.msra.mxu1 %v8351_v6 }
 0xa7c   :  { %4619 = vmatprep.subr.bf16.mxu0 %v8357_v40  ;;  %4660 = vmatprep.subr.bf16.mxu1 %v8359_v42 }
 0xa7f   :  { %4620 = vmatpush1.bf16.msra.mxu0 %v8361_v11  ;;  %4661 = vmatpush1.bf16.msra.mxu1 %v8363_v50 }
 0xa80   :  { %4621 = vmatprep.subr.bf16.mxu0 %v8369_v32  ;;  %4662 = vmatprep.subr.bf16.mxu1 %v8371_v37  ;;  %v3418_v32 = vadd.f32 %v8477_v39, %v8531_v59 }
 0xa83   :  { %4622 = vmatpush1.bf16.msra.mxu0 %v8373_v24  ;;  %4663 = vmatpush1.bf16.msra.mxu1 %v8375_v41  ;;  %v9028_v24 = vld [vmem:[#allocation34_spill] sm:$0xff] }
 0xa84   :  { %4623 = vmatprep.subr.bf16.mxu0 %v8381_v31  ;;  %4664 = vmatprep.subr.bf16.mxu1 %v8383_v55  ;;  %v3416_v41 = vadd.f32 %v9028_v24, %v8536_v48 }
 0xa87   :  { %4624 = vmatpush1.bf16.msra.mxu0 %v8385_v43  ;;  %4665 = vmatpush1.bf16.msra.mxu1 %v8387_v53 }
 0xa88   :  { %4625 = vmatprep.subr.bf16.mxu0 %v8393_v30  ;;  %4666 = vmatprep.subr.bf16.mxu1 %v8395_v10 }
 0xa8b   :  { %4626 = vmatpush1.bf16.msra.mxu0 %v8397_v47  ;;  %4667 = vmatpush1.bf16.msra.mxu1 %v8399_v54 }
 0xa8c   :  { %4627 = vmatprep.subr.bf16.mxu0 %v8403_v29  ;;  %4668 = vmatprep.subr.bf16.mxu1 %v8405_v51 }
 0xa8f   :  { %4628 = vmatpush1.bf16.msra.mxu0 %v8409_v38  ;;  %4669 = vmatpush1.bf16.msra.mxu1 %v8411_v33 }
 0xa90   :  { %4925 = vmatprep.subr.bf16.mxu0 %v8646_v19  ;;  %4966 = vmatprep.subr.bf16.mxu1 %v8648_v49 }
 0xb32   :  { %v4335_v16 = vpop.f32.mrf.mxu0  ;;  %v4376_v44 = vpop.f32.mrf.mxu1 }
 0xb33   :  { %v4383_v1 = vadd.f32 %v4335_v16, %v3343_v8  ;;  %v4385_v31 = vadd.f32 %v4376_v44, %v3416_v41  ;;  %v8706_v8 = vld [vmem:[#allocation12 + $0x14c] ss:$16 sps:$4 sm:$0xff]   ;;  %v8710_v16 = vld [vmem:[#allocation12 + $0x140] ss:$16 sps:$4 sm:$0xff]   ;;  %v8712_v44 = vld [vmem:[#allocation12 + $0x148] ss:$16 sps:$4 sm:$0xff]  }
 0xb34   :  { %v4337_v2 = vpop.f32.mrf.mxu0  ;;  %v4378_v3 = vpop.f32.mrf.mxu1 }
 0xb35   :  { %v6645_v4 = vmul.f32 -1.442695, %v4383_v1  ;;  %v4384_v5 = vadd.f32 %v4337_v2, %v3345_v23  ;;  %v4386_v37 = vadd.f32 %v4378_v3, %v3418_v32  ;;  %v8716_v23 = vld [vmem:[#allocation12 + $0x124] ss:$16 sps:$4 sm:$0xff]   ;;  %v8718_v1 = vld [vmem:[#allocation12 + $0x12c] ss:$16 sps:$4 sm:$0xff]  }
 0xb36   :  { %v4339_v6 = vpop.f32.mrf.mxu0  ;;  %v4380_v40 = vpop.f32.mrf.mxu1  ;;  %v8722_v2 = vld [vmem:[#allocation12 + $0x120] ss:$16 sps:$4 sm:$0xff]   ;;  %v8724_v3 = vld [vmem:[#allocation12 + $0x128] ss:$16 sps:$4 sm:$0xff]  }
 0xb37   :  { %7369 = vpow2.f32 %v6645_v4  ;;  %v6646_v42 = vmul.f32 -1.442695, %v4384_v5  ;;  %v6647_v55 = vmul.f32 -1.442695, %v4386_v37  ;;  %v8728_v4 = vld [vmem:[#allocation12 + $0x104] ss:$16 sps:$4 sm:$0xff]  }
 0xb38   :  { %v4340_v11 = vpop.f32.mrf.mxu0  ;;  %v4381_v50 = vpop.f32.mrf.mxu1  ;;  %v8730_v5 = vld [vmem:[#allocation12 + $0x10c] ss:$16 sps:$4 sm:$0xff]   ;;  %v8734_v6 = vld [vmem:[#allocation12 + $0x100] ss:$16 sps:$4 sm:$0xff]   ;;  %v8736_v40 = vld [vmem:[#allocation12 + $0x108] ss:$16 sps:$4 sm:$0xff]  }
 0xb39   :  { %7371 = vpow2.f32 %v6646_v42  ;;  %v9029_v42 = vld [vmem:[#allocation28_spill] sm:$0xff] }
 0xb3a   :  { %7373 = vtanh.f32 %v4385_v31  ;;  %v3347_v11 = vadd.f32 %v9029_v42, %v8513_v57  ;;  %v9030_v37 = vld [vmem:[#allocation36_spill] sm:$0xff] }
 0xb3b   :  { %7375 = vpow2.f32 %v6647_v55  ;;  %v3349_v24 = vadd.f32 %v9030_v37, %v8521_v63 }
 0xb44   :  { %v7370_v43 = vpop.eup %7369 }
 0xb45   :  { %v4390_v53 = vadd.f32 1.0, %v7370_v43 }
 0xb46   :  { %v7372_v30 = vpop.eup %7371 }
 0xb47   :  { %7377 = vrcp.f32 %v4390_v53  ;;  %v4396_v10 = vadd.f32 1.0, %v7372_v30  ;;  %v7374_v47 = vpop.eup %7373 }
 0xb48   :  { %v7376_v54 = vpop.eup %7375 }
 0xb49   :  { %7379 = vrcp.f32 %v4396_v10  ;;  %v4403_v33 = vadd.f32 1.0, %v7376_v54 }
 0xb4b   :  { %7381 = vrcp.f32 %v4403_v33 }
 0xb54   :  { %v7378_v29 = vpop.eup %7377 }
 0xb55   :  { %v4408_v51 = vmul.f32 %v7378_v29, %v7374_v47 }
 0xb56   :  { %v7380_v38 = vpop.eup %7379 }
 0xb57   :  { %v4407_v25 = vmul.f32 %v7380_v38, %v8589_v36  ;;  %v8694_v36 = vld [vmem:[#allocation12 + $0x16c] ss:$16 sps:$4 sm:$0xff]  }
 0xb58   :  { %v7382_v39 = vpop.eup %7381 }
 0xb59   :  { %v8637_v35 = vadd.f32 %v4408_v51, %v4407_v25  ;;  %v9031_v51 = vld [vmem:[#allocation35_spill] sm:$0xff]  ;;  %v9032_v25 = vld [vmem:[#allocation29_spill] sm:$0xff] }
 0xb5a   :  { %v3422_v38 = vadd.f32 %v9031_v51, %v8531_v59 }
 0xb5b   :  { %7383 = vtanh.f32 %v8637_v35 }
 0xb68   :  { %v7384_v9 = vpop.eup %7383 }
 0xb69   :  { %v8640_v15 = vmul.f32 %v7384_v9, %v7382_v39  ;;  %v3420_v39 = vadd.f32 %v9032_v25, %v8536_v48  ;;  %v9034_v25 = vld [vmem:[#allocation38_spill] sm:$0xff] }
 0xb6b   :  { %v4420_v28 = vpack.c.bf16 %v8640_v15, %v8640_v15 }
 0xb6d   :  { %4646 = vmatmul.mubr.bf16.vlgmr.msra.gmra.mxu0 %v4420_v28  ;;  %4687 = vmatmul.mubr.bf16.vlgmr.msra.gmra.mxu1 %v4420_v28 }
 0xb6e   :  { %4957 = vmatprep.mubr.bf16.mxu0 %v8988_v46  ;;  %4998 = vmatprep.mubr.bf16.mxu1 %v8988_v46 }
 0xb6f   :  { %4926 = vmatpush1.bf16.msra.mxu0 %v8650_v17  ;;  %4967 = vmatpush1.bf16.msra.mxu1 %v8652_v12 }
 0xb70   :  { %4927 = vmatprep.subr.bf16.mxu0 %v8658_v21  ;;  %4968 = vmatprep.subr.bf16.mxu1 %v8660_v62 }
 0xb73   :  { %4928 = vmatpush1.bf16.msra.mxu0 %v8662_v45  ;;  %4969 = vmatpush1.bf16.msra.mxu1 %v8664_v20 }
 0xb74   :  { %4929 = vmatprep.subr.bf16.mxu0 %v8670_v13  ;;  %4970 = vmatprep.subr.bf16.mxu1 %v8672_v7 }
 0xb77   :  { %4930 = vmatpush1.bf16.msra.mxu0 %v8674_v56  ;;  %4971 = vmatpush1.bf16.msra.mxu1 %v8676_v34 }
 0xb78   :  { %4931 = vmatprep.subr.bf16.mxu0 %v8682_v60  ;;  %4972 = vmatprep.subr.bf16.mxu1 %v8684_v27 }
 0xb7b   :  { %4932 = vmatpush1.bf16.msra.mxu0 %v8686_v52  ;;  %4973 = vmatpush1.bf16.msra.mxu1 %v8688_v22 }
 0xb7c   :  { %4933 = vmatprep.subr.bf16.mxu0 %v8692_v61  ;;  %4974 = vmatprep.subr.bf16.mxu1 %v8694_v36 }
 0xb7f   :  { %4934 = vmatpush1.bf16.msra.mxu0 %v8698_v18  ;;  %4975 = vmatpush1.bf16.msra.mxu1 %v8700_v58 }
 0xb80   :  { %4935 = vmatprep.subr.bf16.mxu0 %v8704_v14  ;;  %4976 = vmatprep.subr.bf16.mxu1 %v8706_v8 }
 0xb83   :  { %4936 = vmatpush1.bf16.msra.mxu0 %v8710_v16  ;;  %4977 = vmatpush1.bf16.msra.mxu1 %v8712_v44 }
 0xb84   :  { %4937 = vmatprep.subr.bf16.mxu0 %v8716_v23  ;;  %4978 = vmatprep.subr.bf16.mxu1 %v8718_v1 }
 0xb87   :  { %4938 = vmatpush1.bf16.msra.mxu0 %v8722_v2  ;;  %4979 = vmatpush1.bf16.msra.mxu1 %v8724_v3 }
 0xb88   :  { %4939 = vmatprep.subr.bf16.mxu0 %v8728_v4  ;;  %4980 = vmatprep.subr.bf16.mxu1 %v8730_v5 }
 0xb8b   :  { %4940 = vmatpush1.bf16.msra.mxu0 %v8734_v6  ;;  %4981 = vmatpush1.bf16.msra.mxu1 %v8736_v40 }
 0xb8c   :  { %5237 = vmatprep.subr.bf16.mxu0 %v8646_v19  ;;  %5278 = vmatprep.subr.bf16.mxu1 %v8648_v49 }
 0xc2d   :  { %v4647_v50 = vpop.f32.mrf.mxu0  ;;  %v4688_v32 = vpop.f32.mrf.mxu1 }
 0xc2e   :  { %v4695_v41 = vadd.f32 %v4647_v50, %v3347_v11  ;;  %v4697_v9 = vadd.f32 %v4688_v32, %v3420_v39  ;;  %v3355_v39 = vadd.f32 %v9034_v25, %v8521_v63 }
 0xc2f   :  { %v4649_v31 = vpop.f32.mrf.mxu0  ;;  %v4690_v55 = vpop.f32.mrf.mxu1 }
 0xc30   :  { %v6680_v43 = vmul.f32 -1.442695, %v4695_v41  ;;  %v4696_v53 = vadd.f32 %v4649_v31, %v3349_v24  ;;  %v4698_v33 = vadd.f32 %v4690_v55, %v3422_v38 }
 0xc31   :  { %v4651_v30 = vpop.f32.mrf.mxu0  ;;  %v4692_v10 = vpop.f32.mrf.mxu1 }
 0xc32   :  { %7385 = vpow2.f32 %v6680_v43  ;;  %v6681_v47 = vmul.f32 -1.442695, %v4696_v53  ;;  %v6682_v28 = vmul.f32 -1.442695, %v4698_v33 }
 0xc33   :  { %v4652_v54 = vpop.f32.mrf.mxu0  ;;  %v4693_v29 = vpop.f32.mrf.mxu1 }
 0xc34   :  { %7387 = vpow2.f32 %v6681_v47 }
 0xc35   :  { %7389 = vtanh.f32 %v4697_v9 }
 0xc36   :  { %7391 = vpow2.f32 %v6682_v28 }
 0xc3f   :  { %v7386_v42 = vpop.eup %7385 }
 0xc40   :  { %v4702_v11 = vadd.f32 1.0, %v7386_v42 }
 0xc41   :  { %v7388_v50 = vpop.eup %7387 }
 0xc42   :  { %7393 = vrcp.f32 %v4702_v11  ;;  %v4708_v37 = vadd.f32 1.0, %v7388_v50  ;;  %v7390_v24 = vpop.eup %7389 }
 0xc43   :  { %v7392_v41 = vpop.eup %7391 }
 0xc44   :  { %7395 = vrcp.f32 %v4708_v37  ;;  %v4715_v30 = vadd.f32 1.0, %v7392_v41 }
 0xc46   :  { %7397 = vrcp.f32 %v4715_v30 }
 0xc4f   :  { %v7394_v31 = vpop.eup %7393 }
 0xc50   :  { %v4720_v43 = vmul.f32 %v7394_v31, %v7390_v24 }
 0xc51   :  { %v7396_v53 = vpop.eup %7395 }
 0xc52   :  { %v4719_v55 = vmul.f32 %v7396_v53, %v8637_v35  ;;  %v9033_v35 = vld [vmem:[#allocation30_spill] sm:$0xff]  ;;  %v9035_v53 = vld [vmem:[#allocation37_spill] sm:$0xff] }
 0xc53   :  { %v7398_v32 = vpop.eup %7397  ;;  %v3353_v51 = vadd.f32 %v9033_v35, %v8513_v57  ;;  %v3428_v30 = vadd.f32 %v9035_v53, %v8531_v59 }
 0xc54   :  { %v8753_v10 = vadd.f32 %v4720_v43, %v4719_v55 }
 0xc56   :  { %7399 = vtanh.f32 %v8753_v10 }
 0xc63   :  { %v7400_v47 = vpop.eup %7399 }
 0xc64   :  { %v8756_v54 = vmul.f32 %v7400_v47, %v7398_v32  ;;  %v9036_v32 = vld [vmem:[#allocation31_spill] sm:$0xff] }
 0xc65   :  { %v3426_v47 = vadd.f32 %v9036_v32, %v8536_v48 }
 0xc66   :  { %v4732_v29 = vpack.c.bf16 %v8756_v54, %v8756_v54 }
 0xc68   :  { %4958 = vmatmul.mubr.bf16.vlgmr.msra.gmra.mxu0 %v4732_v29  ;;  %4999 = vmatmul.mubr.bf16.vlgmr.msra.gmra.mxu1 %v4732_v29 }
 0xc69   :  { %5238 = vmatpush1.bf16.msra.mxu0 %v8650_v17  ;;  %5279 = vmatpush1.bf16.msra.mxu1 %v8652_v12 }
 0xc6a   :  { %5239 = vmatprep.subr.bf16.mxu0 %v8658_v21  ;;  %5280 = vmatprep.subr.bf16.mxu1 %v8660_v62 }
 0xc6b   :  { %5269 = vmatprep.mubr.bf16.mxu0 %v8988_v46  ;;  %5310 = vmatprep.mubr.bf16.mxu1 %v8988_v46 }
 0xc6d   :  { %5240 = vmatpush1.bf16.msra.mxu0 %v8662_v45  ;;  %5281 = vmatpush1.bf16.msra.mxu1 %v8664_v20 }
 0xc6e   :  { %5241 = vmatprep.subr.bf16.mxu0 %v8670_v13  ;;  %5282 = vmatprep.subr.bf16.mxu1 %v8672_v7 }
 0xc71   :  { %5242 = vmatpush1.bf16.msra.mxu0 %v8674_v56  ;;  %5283 = vmatpush1.bf16.msra.mxu1 %v8676_v34 }
 0xc72   :  { %5243 = vmatprep.subr.bf16.mxu0 %v8682_v60  ;;  %5284 = vmatprep.subr.bf16.mxu1 %v8684_v27 }
 0xc75   :  { %5244 = vmatpush1.bf16.msra.mxu0 %v8686_v52  ;;  %5285 = vmatpush1.bf16.msra.mxu1 %v8688_v22 }
 0xc76   :  { %5245 = vmatprep.subr.bf16.mxu0 %v8692_v61  ;;  %5286 = vmatprep.subr.bf16.mxu1 %v8694_v36 }
 0xc79   :  { %5246 = vmatpush1.bf16.msra.mxu0 %v8698_v18  ;;  %5287 = vmatpush1.bf16.msra.mxu1 %v8700_v58 }
 0xc7a   :  { %5247 = vmatprep.subr.bf16.mxu0 %v8704_v14  ;;  %5288 = vmatprep.subr.bf16.mxu1 %v8706_v8 }
 0xc7d   :  { %5248 = vmatpush1.bf16.msra.mxu0 %v8710_v16  ;;  %5289 = vmatpush1.bf16.msra.mxu1 %v8712_v44 }
 0xc7e   :  { %5249 = vmatprep.subr.bf16.mxu0 %v8716_v23  ;;  %5290 = vmatprep.subr.bf16.mxu1 %v8718_v1 }
 0xc81   :  { %5250 = vmatpush1.bf16.msra.mxu0 %v8722_v2  ;;  %5291 = vmatpush1.bf16.msra.mxu1 %v8724_v3 }
 0xc82   :  { %5251 = vmatprep.subr.bf16.mxu0 %v8728_v4  ;;  %5292 = vmatprep.subr.bf16.mxu1 %v8730_v5 }
 0xc85   :  { %5252 = vmatpush1.bf16.msra.mxu0 %v8734_v6  ;;  %5293 = vmatpush1.bf16.msra.mxu1 %v8736_v40 }
 0xc86   :  { %5549 = vmatprep.subr.bf16.mxu0 %v8646_v19  ;;  %5590 = vmatprep.subr.bf16.mxu1 %v8648_v49 }
 0xd28   :  { %v4959_v38 = vpop.f32.mrf.mxu0  ;;  %v5000_v33 = vpop.f32.mrf.mxu1 }
 0xd29   :  { %v5007_v9 = vadd.f32 %v4959_v38, %v3353_v51  ;;  %v5009_v29 = vadd.f32 %v5000_v33, %v3426_v47  ;;  %v9038_v47 = vld [vmem:[#allocation39_spill] sm:$0xff] }
 0xd2a   :  { %v4961_v28 = vpop.f32.mrf.mxu0  ;;  %v5002_v42 = vpop.f32.mrf.mxu1 }
 0xd2b   :  { %v6715_v11 = vmul.f32 -1.442695, %v5007_v9  ;;  %v5008_v50 = vadd.f32 %v4961_v28, %v3355_v39  ;;  %v5010_v55 = vadd.f32 %v5002_v42, %v3428_v30 }
 0xd2c   :  { %v4963_v37 = vpop.f32.mrf.mxu0  ;;  %v5004_v24 = vpop.f32.mrf.mxu1 }
 0xd2d   :  { %7401 = vpow2.f32 %v6715_v11  ;;  %v6716_v41 = vmul.f32 -1.442695, %v5008_v50  ;;  %v6717_v35 = vmul.f32 -1.442695, %v5010_v55 }
 0xd2e   :  { %v4964_v31 = vpop.f32.mrf.mxu0  ;;  %v5005_v43 = vpop.f32.mrf.mxu1 }
 0xd2f   :  { %7403 = vpow2.f32 %v6716_v41 }
 0xd30   :  { %7405 = vtanh.f32 %v5009_v29  ;;  %v3359_v29 = vadd.f32 %v9038_v47, %v8521_v63 }
 0xd31   :  { %7407 = vpow2.f32 %v6717_v35 }
 0xd3a   :  { %v7402_v51 = vpop.eup %7401 }
 0xd3b   :  { %v5014_v38 = vadd.f32 1.0, %v7402_v51 }
 0xd3c   :  { %v7404_v25 = vpop.eup %7403 }
 0xd3d   :  { %7409 = vrcp.f32 %v5014_v38  ;;  %v5020_v39 = vadd.f32 1.0, %v7404_v25  ;;  %v7406_v9 = vpop.eup %7405 }
 0xd3e   :  { %v7408_v28 = vpop.eup %7407 }
 0xd3f   :  { %7411 = vrcp.f32 %v5020_v39  ;;  %v5027_v24 = vadd.f32 1.0, %v7408_v28 }
 0xd41   :  { %7413 = vrcp.f32 %v5027_v24 }
 0xd4a   :  { %v7410_v11 = vpop.eup %7409 }
 0xd4b   :  { %v5032_v50 = vmul.f32 %v7410_v11, %v7406_v9 }
 0xd4c   :  { %v7412_v37 = vpop.eup %7411 }
 0xd4d   :  { %v5031_v42 = vmul.f32 %v7412_v37, %v8753_v10  ;;  %v9037_v10 = vld [vmem:[#allocation32_spill] sm:$0xff] }
 0xd4e   :  { %v7414_v33 = vpop.eup %7413  ;;  %v3357_v30 = vadd.f32 %v9037_v10, %v8513_v57 }
 0xd4f   :  { %v8803_v41 = vadd.f32 %v5032_v50, %v5031_v42  ;;  %v9040_v42 = vld [vmem:[#allocation33_spill] sm:$0xff] }
 0xd51   :  { %7415 = vtanh.f32 %v8803_v41 }
 0xd5e   :  { %v7416_v31 = vpop.eup %7415 }
 0xd5f   :  { %v8806_v43 = vmul.f32 %v7416_v31, %v7414_v33  ;;  %v3430_v33 = vadd.f32 %v9040_v42, %v8536_v48 }
 0xd61   :  { %v5044_v53 = vpack.c.bf16 %v8806_v43, %v8806_v43 }
 0xd63   :  { %5270 = vmatmul.mubr.bf16.vlgmr.msra.gmra.mxu0 %v5044_v53  ;;  %5311 = vmatmul.mubr.bf16.vlgmr.msra.gmra.mxu1 %v5044_v53 }
 0xd64   :  { %5550 = vmatpush1.bf16.msra.mxu0 %v8650_v17  ;;  %5591 = vmatpush1.bf16.msra.mxu1 %v8652_v12 }
 0xd65   :  { %5551 = vmatprep.subr.bf16.mxu0 %v8658_v21  ;;  %5592 = vmatprep.subr.bf16.mxu1 %v8660_v62 }
 0xd66   :  { %5581 = vmatprep.mubr.bf16.mxu0 %v8988_v46  ;;  %5622 = vmatprep.mubr.bf16.mxu1 %v8988_v46 }
 0xd68   :  { %5552 = vmatpush1.bf16.msra.mxu0 %v8662_v45  ;;  %5593 = vmatpush1.bf16.msra.mxu1 %v8664_v20 }
 0xd69   :  { %5553 = vmatprep.subr.bf16.mxu0 %v8670_v13  ;;  %5594 = vmatprep.subr.bf16.mxu1 %v8672_v7 }
 0xd6c   :  { %5554 = vmatpush1.bf16.msra.mxu0 %v8674_v56  ;;  %5595 = vmatpush1.bf16.msra.mxu1 %v8676_v34 }
 0xd6d   :  { %5555 = vmatprep.subr.bf16.mxu0 %v8682_v60  ;;  %5596 = vmatprep.subr.bf16.mxu1 %v8684_v27 }
 0xd70   :  { %5556 = vmatpush1.bf16.msra.mxu0 %v8686_v52  ;;  %5597 = vmatpush1.bf16.msra.mxu1 %v8688_v22 }
 0xd71   :  { %5557 = vmatprep.subr.bf16.mxu0 %v8692_v61  ;;  %5598 = vmatprep.subr.bf16.mxu1 %v8694_v36 }
 0xd74   :  { %5558 = vmatpush1.bf16.msra.mxu0 %v8698_v18  ;;  %5599 = vmatpush1.bf16.msra.mxu1 %v8700_v58 }
 0xd75   :  { %5559 = vmatprep.subr.bf16.mxu0 %v8704_v14  ;;  %5600 = vmatprep.subr.bf16.mxu1 %v8706_v8 }
 0xd78   :  { %5560 = vmatpush1.bf16.msra.mxu0 %v8710_v16  ;;  %5601 = vmatpush1.bf16.msra.mxu1 %v8712_v44 }
 0xd79   :  { %5561 = vmatprep.subr.bf16.mxu0 %v8716_v23  ;;  %5602 = vmatprep.subr.bf16.mxu1 %v8718_v1 }
 0xd7c   :  { %5562 = vmatpush1.bf16.msra.mxu0 %v8722_v2  ;;  %5603 = vmatpush1.bf16.msra.mxu1 %v8724_v3 }
 0xd7d   :  { %5563 = vmatprep.subr.bf16.mxu0 %v8728_v4  ;;  %5604 = vmatprep.subr.bf16.mxu1 %v8730_v5 }
 0xd80   :  { %5564 = vmatpush1.bf16.msra.mxu0 %v8734_v6  ;;  %5605 = vmatpush1.bf16.msra.mxu1 %v8736_v40 }
 0xd81   :  { %5861 = vmatprep.subr.bf16.mxu0 %v8646_v19  ;;  %5902 = vmatprep.subr.bf16.mxu1 %v8648_v49  ;;  %v9039_v49 = vld [vmem:[#allocation40_spill] sm:$0xff] }
 0xd82   :  { %v3432_v37 = vadd.f32 %v9039_v49, %v8531_v59 }
 0xe23   :  { %v5271_v55 = vpop.f32.mrf.mxu0  ;;  %v5312_v32 = vpop.f32.mrf.mxu1 }
 0xe24   :  { %v5319_v35 = vadd.f32 %v5271_v55, %v3357_v30  ;;  %v5321_v31 = vadd.f32 %v5312_v32, %v3430_v33 }
 0xe25   :  { %v5273_v51 = vpop.f32.mrf.mxu0  ;;  %v5314_v38 = vpop.f32.mrf.mxu1 }
 0xe26   :  { %v6750_v25 = vmul.f32 -1.442695, %v5319_v35  ;;  %v5320_v39 = vadd.f32 %v5273_v51, %v3359_v29  ;;  %v5322_v24 = vadd.f32 %v5314_v38, %v3432_v37 }
 0xe27   :  { %v5275_v9 = vpop.f32.mrf.mxu0  ;;  %v5316_v28 = vpop.f32.mrf.mxu1 }
 0xe28   :  { %7417 = vpow2.f32 %v6750_v25  ;;  %v6751_v11 = vmul.f32 -1.442695, %v5320_v39  ;;  %v6752_v53 = vmul.f32 -1.442695, %v5322_v24 }
 0xe29   :  { %v5276_v19 = vpop.f32.mrf.mxu0  ;;  %v5317_v50 = vpop.f32.mrf.mxu1 }
 0xe2a   :  { %7419 = vpow2.f32 %v6751_v11 }
 0xe2b   :  { %7421 = vtanh.f32 %v5321_v31 }
 0xe2c   :  { %7423 = vpow2.f32 %v6752_v53 }
 0xe35   :  { %v7418_v10 = vpop.eup %7417 }
 0xe36   :  { %v5326_v30 = vadd.f32 1.0, %v7418_v10 }
 0xe37   :  { %v7420_v55 = vpop.eup %7419 }
 0xe38   :  { %7425 = vrcp.f32 %v5326_v30  ;;  %v5332_v47 = vadd.f32 1.0, %v7420_v55  ;;  %v7422_v29 = vpop.eup %7421  ;;  %v7202_v30 = vld [vmem:[#allocation15 + $0x30] sm:$0xff]   ;;  %v5989_v55 = vpack.c.bf16 %v8592_v0, %v8542_v26  ;;  %v7208_v26 = vld [vmem:[#allocation15] sm:$0xff]   ;;  %v5990_v0 = vpack.c.bf16 %v8756_v54, %v8640_v15 }
 0xe39   :  { %v7424_v35 = vpop.eup %7423 }
 0xe3a   :  { %7427 = vrcp.f32 %v5332_v47  ;;  %v5339_v9 = vadd.f32 1.0, %v7424_v35  ;;  %v7203_v47 = vld [vmem:[#allocation15 + $0x28] sm:$0xff]   ;;  %v7205_v35 = vld [vmem:[#allocation15 + $0x18] sm:$0xff]  }
 0xe3c   :  { %7429 = vrcp.f32 %v5339_v9  ;;  %v9045_v9 = vld [vmem:[#allocation27_spill] sm:$0xff] }
 0xe45   :  { %v7426_v51 = vpop.eup %7425 }
 0xe46   :  { %v5344_v25 = vmul.f32 %v7426_v51, %v7422_v29  ;;  %v7204_v29 = vld [vmem:[#allocation15 + $0x20] sm:$0xff]   ;;  %v7206_v51 = vld [vmem:[#allocation15 + $0x10] sm:$0xff]  }
 0xe47   :  { %v7428_v39 = vpop.eup %7427 }
 0xe48   :  { %v5343_v38 = vmul.f32 %v7428_v39, %v8803_v41 }
 0xe49   :  { %v7430_v32 = vpop.eup %7429 }
 0xe4a   :  { %v8853_v28 = vadd.f32 %v5344_v25, %v5343_v38  ;;  %v7207_v25 = vld [vmem:[#allocation15 + $0x8] sm:$0xff]   ;;  %v3367_v38 = vadd.f32 %v9045_v9, %v8513_v57 }
 0xe4c   :  { %7431 = vtanh.f32 %v8853_v28 }
 0xe59   :  { %v7432_v11 = vpop.eup %7431 }
 0xe5a   :  { %v8856_v19 = vmul.f32 %v7432_v11, %v7430_v32  ;;  %v9046_v11 = vld [vmem:[#allocation46_spill] sm:$0xff] }
 0xe5c   :  { %v5356_v50 = vpack.c.bf16 %v8856_v19, %v8856_v19  ;;  %v5991_v39 = vpack.c.bf16 %v8856_v19, %v8806_v43 }
 0xe5e   :  { %5582 = vmatmul.mubr.bf16.vlgmr.msra.gmra.mxu0 %v5356_v50  ;;  %5623 = vmatmul.mubr.bf16.vlgmr.msra.gmra.mxu1 %v5356_v50  ;;  %v3369_v50 = vadd.f32 %v9046_v11, %v8521_v63 }
 0xe5f   :  { %5862 = vmatpush1.bf16.msra.mxu0 %v8650_v17  ;;  %5903 = vmatpush1.bf16.msra.mxu1 %v8652_v12  ;;  %v9041_v17 = vld [vmem:[#allocation41_spill] sm:$0xff] }
 0xe60   :  { %5863 = vmatprep.subr.bf16.mxu0 %v8658_v21  ;;  %5904 = vmatprep.subr.bf16.mxu1 %v8660_v62  ;;  %v3363_v12 = vadd.f32 %v9041_v17, %v8513_v57 }
 0xe61   :  { %5893 = vmatprep.mubr.bf16.mxu0 %v8988_v46  ;;  %5934 = vmatprep.mubr.bf16.mxu1 %v8988_v46  ;;  %v7201_v46 = vld [vmem:[#allocation15 + $0x38] sm:$0xff]  }
 0xe63   :  { %5864 = vmatpush1.bf16.msra.mxu0 %v8662_v45  ;;  %5905 = vmatpush1.bf16.msra.mxu1 %v8664_v20  ;;  %v9042_v45 = vld [vmem:[#allocation43_spill] sm:$0xff] }
 0xe64   :  { %5865 = vmatprep.subr.bf16.mxu0 %v8670_v13  ;;  %5906 = vmatprep.subr.bf16.mxu1 %v8672_v7  ;;  %v3365_v20 = vadd.f32 %v9042_v45, %v8521_v63 }
 0xe67   :  { %5866 = vmatpush1.bf16.msra.mxu0 %v8674_v56  ;;  %5907 = vmatpush1.bf16.msra.mxu1 %v8676_v34 }
 0xe68   :  { %5867 = vmatprep.subr.bf16.mxu0 %v8682_v60  ;;  %5908 = vmatprep.subr.bf16.mxu1 %v8684_v27 }
 0xe6b   :  { %5868 = vmatpush1.bf16.msra.mxu0 %v8686_v52  ;;  %5909 = vmatpush1.bf16.msra.mxu1 %v8688_v22 }
 0xe6c   :  { %5869 = vmatprep.subr.bf16.mxu0 %v8692_v61  ;;  %5910 = vmatprep.subr.bf16.mxu1 %v8694_v36 }
 0xe6f   :  { %5870 = vmatpush1.bf16.msra.mxu0 %v8698_v18  ;;  %5911 = vmatpush1.bf16.msra.mxu1 %v8700_v58  ;;  %v9043_v18 = vld [vmem:[#allocation44_spill] sm:$0xff] }
 0xe70   :  { %5871 = vmatprep.subr.bf16.mxu0 %v8704_v14  ;;  %5912 = vmatprep.subr.bf16.mxu1 %v8706_v8  ;;  %v3438_v58 = vadd.f32 %v9043_v18, %v8531_v59  ;;  %v9044_v8 = vld [vmem:[#allocation42_spill] sm:$0xff] }
 0xe73   :  { %5872 = vmatpush1.bf16.msra.mxu0 %v8710_v16  ;;  %5913 = vmatpush1.bf16.msra.mxu1 %v8712_v44  ;;  %v3436_v16 = vadd.f32 %v9044_v8, %v8536_v48 }
 0xe74   :  { %5873 = vmatprep.subr.bf16.mxu0 %v8716_v23  ;;  %5914 = vmatprep.subr.bf16.mxu1 %v8718_v1 }
 0xe77   :  { %5874 = vmatpush1.bf16.msra.mxu0 %v8722_v2  ;;  %5915 = vmatpush1.bf16.msra.mxu1 %v8724_v3 }
 0xe78   :  { %5875 = vmatprep.subr.bf16.mxu0 %v8728_v4  ;;  %5916 = vmatprep.subr.bf16.mxu1 %v8730_v5 }
 0xe7b   :  { %5876 = vmatpush1.bf16.msra.mxu0 %v8734_v6  ;;  %5917 = vmatpush1.bf16.msra.mxu1 %v8736_v40 }
 0xe7c   :  { %6844 = vmatprep.subr.bf16.mxu0 %v7201_v46 }
 0xf1e   :  { %v5583_v21 = vpop.f32.mrf.mxu0  ;;  %v5624_v62 = vpop.f32.mrf.mxu1 }
 0xf1f   :  { %v5631_v13 = vadd.f32 %v5583_v21, %v3363_v12  ;;  %v5633_v44 = vadd.f32 %v5624_v62, %v3436_v16 }
 0xf20   :  { %v5585_v7 = vpop.f32.mrf.mxu0  ;;  %v5626_v56 = vpop.f32.mrf.mxu1 }
 0xf21   :  { %v6785_v34 = vmul.f32 -1.442695, %v5631_v13  ;;  %v5632_v60 = vadd.f32 %v5585_v7, %v3365_v20  ;;  %v5634_v14 = vadd.f32 %v5626_v56, %v3438_v58  ;;  %v9047_v20 = vld [vmem:[#allocation47_spill] sm:$0xff]  ;;  %v9048_v7 = vld [vmem:[#allocation45_spill] sm:$0xff] }
 0xf22   :  { %v5587_v27 = vpop.f32.mrf.mxu0  ;;  %v5628_v52 = vpop.f32.mrf.mxu1  ;;  %v3442_v57 = vadd.f32 %v9047_v20, %v8531_v59  ;;  %v3440_v56 = vadd.f32 %v9048_v7, %v8536_v48 }
 0xf23   :  { %7433 = vpow2.f32 %v6785_v34  ;;  %v6786_v22 = vmul.f32 -1.442695, %v5632_v60  ;;  %v6787_v23 = vmul.f32 -1.442695, %v5634_v14 }
 0xf24   :  { %v5588_v61 = vpop.f32.mrf.mxu0  ;;  %v5629_v36 = vpop.f32.mrf.mxu1 }
 0xf25   :  { %7435 = vpow2.f32 %v6786_v22  ;;  %v8925_v61 = vld [vmem:[%s8961_s6] ss:$0 sm:$0xff]  ;;  %s7673_s6 = smov [#allocation18]  }
 0xf26   :  { %7437 = vtanh.f32 %v5633_v44  ;;  %s6154_s13 = sshll.u32 %s7673_s6, 4  ;;  %s6155_s13 = int_to_ptr.vmem [resolvable:$true] %s6154_s13 }
 0xf27   :  { %7439 = vpow2.f32 %v6787_v23  ;;  %s7589_s19 = scalar_lea.vmem %s6155_s13, 256  ;;  %p7594_p3 = scmp.lt.s32.totalorder %s6155_s13, %s6155_s13 }
 0xf28   :  { %p7590_p2 = scmp.ne.s32.totalorder %s6155_s13, %s7589_s19  ;;  %p7595_p4 = scmp.lt.s32.totalorder %s7589_s19, %s7589_s19 }
 0xf2a   :  { %p7596_p5 = por %p7595_p4, %p7594_p3 }
 0xf2c   :  { %p7597_p6 = pnand %p7596_p5, %p7590_p2 }
 0xf30   :  { %v7434_v1 = vpop.eup %7433 }
 0xf31   :  { %v5638_v2 = vadd.f32 1.0, %v7434_v1 }
 0xf32   :  { %v7436_v3 = vpop.eup %7435 }
 0xf33   :  { %7441 = vrcp.f32 %v5638_v2  ;;  %v5644_v4 = vadd.f32 1.0, %v7436_v3  ;;  %v7438_v5 = vpop.eup %7437 }
 0xf34   :  { %v7440_v6 = vpop.eup %7439 }
 0xf35   :  { %7443 = vrcp.f32 %v5644_v4  ;;  %v5651_v37 = vadd.f32 1.0, %v7440_v6 }
 0xf37   :  { %7445 = vrcp.f32 %v5651_v37 }
 0xf40   :  { %v7442_v40 = vpop.eup %7441 }
 0xf41   :  { %v5656_v41 = vmul.f32 %v7442_v40, %v7438_v5 }
 0xf42   :  { %v7444_v49 = vpop.eup %7443 }
 0xf43   :  { %v5655_v24 = vmul.f32 %v7444_v49, %v8853_v28 }
 0xf44   :  { %v7446_v33 = vpop.eup %7445 }
 0xf45   :  { %v8901_v42 = vadd.f32 %v5656_v41, %v5655_v24 }
 0xf47   :  { %7447 = vtanh.f32 %v8901_v42 }
 0xf54   :  { %v7448_v31 = vpop.eup %7447 }
 0xf55   :  { %v8904_v53 = vmul.f32 %v7448_v31, %v7446_v33 }
 0xf57   :  { %v5668_v10 = vpack.c.bf16 %v8904_v53, %v8904_v53 }
 0xf59   :  { %5894 = vmatmul.mubr.bf16.vlgmr.msra.gmra.mxu0 %v5668_v10  ;;  %5935 = vmatmul.mubr.bf16.vlgmr.msra.gmra.mxu1 %v5668_v10 }
 0xf5a   :  { %6845 = vmatpush3.bf16.msra.mxu0 %v7201_v46  ;;  %6860 = vmatprep.mubr.bf16.mxu0 %v5989_v55 }
 0xf5b   :  { %6846 = vmatprep.subr.bf16.mxu0 %v7202_v30 }
 0xf5e   :  { %6847 = vmatpush3.bf16.msra.mxu0 %v7202_v30 }
 0xf5f   :  { %6848 = vmatprep.subr.bf16.mxu0 %v7203_v47 }
 0xf62   :  { %6849 = vmatpush3.bf16.msra.mxu0 %v7203_v47 }
 0xf63   :  { %6850 = vmatprep.subr.bf16.mxu0 %v7204_v29 }
 0xf66   :  { %6851 = vmatpush3.bf16.msra.mxu0 %v7204_v29 }
 0xf67   :  { %6852 = vmatprep.subr.bf16.mxu0 %v7205_v35 }
 0xf6a   :  { %6853 = vmatpush3.bf16.msra.mxu0 %v7205_v35 }
 0xf6b   :  { %6854 = vmatprep.subr.bf16.mxu0 %v7206_v51 }
 0xf6e   :  { %6855 = vmatpush3.bf16.msra.mxu0 %v7206_v51 }
 0xf6f   :  { %6856 = vmatprep.subr.bf16.mxu0 %v7207_v25 }
 0xf72   :  { %6857 = vmatpush3.bf16.msra.mxu0 %v7207_v25 }
 0xf73   :  { %6858 = vmatprep.subr.bf16.mxu0 %v7208_v26 }
 0xf76   :  { %6859 = vmatpush3.bf16.msra.mxu0 %v7208_v26 }
 0xf79   :  { %6861 = vmatmul.mubr.bf16.vlgmr.msra.gmra.mxu0 %v5990_v0 }
 0xf7a   :  { %6864 = vmatprep.mubr.bf16.mxu0 %v5991_v39 }
0x1019   :  { %v5895_v28 = vpop.f32.mrf.mxu0  ;;  %v5936_v32 = vpop.f32.mrf.mxu1 }
0x101a   :  { %v5943_v46 = vadd.f32 %v5895_v28, %v3367_v38  ;;  %v5945_v63 = vadd.f32 %v5936_v32, %v3440_v56 }
0x101b   :  { %v5897_v17 = vpop.f32.mrf.mxu0  ;;  %v5938_v12 = vpop.f32.mrf.mxu1 }
0x101c   :  { %v6820_v21 = vmul.f32 -1.442695, %v5943_v46  ;;  %v5944_v62 = vadd.f32 %v5897_v17, %v3369_v50  ;;  %v5946_v13 = vadd.f32 %v5938_v12, %v3442_v57 }
0x101d   :  { %v5899_v45 = vpop.f32.mrf.mxu0  ;;  %v5940_v15 = vpop.f32.mrf.mxu1 }
0x101e   :  { %7449 = vpow2.f32 %v6820_v21  ;;  %v6821_v54 = vmul.f32 -1.442695, %v5944_v62  ;;  %v6822_v34 = vmul.f32 -1.442695, %v5946_v13 }
0x101f   :  { %v5900_v43 = vpop.f32.mrf.mxu0  ;;  %v5941_v19 = vpop.f32.mrf.mxu1 }
0x1020   :  { %7451 = vpow2.f32 %v6821_v54 }
0x1021   :  { %7453 = vtanh.f32 %v5945_v63 }
0x1022   :  { %7455 = vpow2.f32 %v6822_v34 }
0x102b   :  { %v7450_v60 = vpop.eup %7449 }
0x102c   :  { %v5950_v27 = vadd.f32 1.0, %v7450_v60 }
0x102d   :  { %v7452_v52 = vpop.eup %7451 }
0x102e   :  { %7457 = vrcp.f32 %v5950_v27  ;;  %v5956_v22 = vadd.f32 1.0, %v7452_v52  ;;  %v7454_v59 = vpop.eup %7453 }
0x102f   :  { %v7456_v18 = vpop.eup %7455 }
0x1030   :  { %7459 = vrcp.f32 %v5956_v22  ;;  %v5963_v23 = vadd.f32 1.0, %v7456_v18 }
0x1032   :  { %7461 = vrcp.f32 %v5963_v23 }
0x1039   :  { %v6862_v36 = vpop.f32.mrf.mxu0 }
0x103a   :  { %v6107_v48 = vadd.f32 %v6862_v36, %v8925_v61 }
0x103b   :  { %v7458_v58 = vpop.eup %7457  ;;  %v6098_v14 = vpop.f32.mrf.mxu0 }
0x103c   :  { %v5968_v8 = vmul.f32 %v7458_v58, %v7454_v59  ;;  %6131 = vst [vmem:[#allocation17 + $0x10] sm:$0xff] %v6107_v48  ;;  %v6099_v16 = vadd.f32 %v8925_v61, %v6098_v14 }
0x103d   :  { %v7460_v44 = vpop.eup %7459  ;;  %v6863_v1 = vpop.f32.mrf.mxu0 }
0x103e   :  { %v5967_v2 = vmul.f32 %v7460_v44, %v8901_v42  ;;  %6129 = vst [vmem:[#allocation17] sm:$0xff] %v6099_v16  ;;  %v6110_v3 = vadd.f32 %v6863_v1, %v8925_v61 }
0x103f   :  { %v6101_v4 = vpop.f32.mrf.mxu0  ;;  %v7462_v40 = vpop.eup %7461 }
0x1040   :  { %v5969_v5 = vadd.f32 %v5968_v8, %v5967_v2  ;;  %6132 = vst [vmem:[#allocation17 + $0x18] sm:$0xff] %v6110_v3  ;;  %v6102_v6 = vadd.f32 %v8925_v61, %v6101_v4 }
0x1042   :  { %5980 = vst [vmem:[#allocation20 + $0x8] sm:$0xff] %v5969_v5  ;;  %6130 = vst [vmem:[#allocation17 + $0x8] sm:$0xff] %v6102_v6  ;;  %7463 = vtanh.f32 %v5969_v5 }
0x104f   :  { %v7464_v41 = vpop.eup %7463 }
0x1050   :  { %v5971_v49 = vmul.f32 %v7464_v41, %v7462_v40 }
0x1052   :  { %5977 = vst [vmem:[#allocation18 + $0x8] sm:$0xff] %v5971_v49  ;;  %v5992_v37 = vpack.c.bf16 %v5971_v49, %v8904_v53 }
0x1054   :  { %6865 = vmatmul.mubr.bf16.gmra.mxu0 %v5992_v37 }
0x1055   :  { %7600 = shalt.err (!%p7597_p6)
}
0x1056   :  { %s7674_s20 = smov 128   ;;  %s7675_s21 = smov 8  }
0x1057   :  { %6160 = dma.vmem_to_hbm [thread:$0]  %s6155_s13, 256, %s8963_s8, [#allocation19], %s7674_s20, %s7674_s20, %s7675_s21  }
0x1058   :  { %s7676_s23 = smov [#allocation20]  }
0x1059   :  { %s6166_s24 = sshll.u32 %s7676_s23, 4  ;;  %s6167_s24 = int_to_ptr.vmem [resolvable:$true] %s6166_s24 }
0x105a   :  { %s7609_s25 = scalar_lea.vmem %s6167_s24, 256  ;;  %p7614_p8 = scmp.lt.s32.totalorder %s6167_s24, %s6167_s24 }
0x105b   :  { %p7610_p7 = scmp.ne.s32.totalorder %s6167_s24, %s7609_s25  ;;  %p7615_p9 = scmp.lt.s32.totalorder %s7609_s25, %s7609_s25 }
0x105d   :  { %p7616_p10 = por %p7615_p9, %p7614_p8 }
0x105f   :  { %p7617_p11 = pnand %p7616_p10, %p7610_p7 }
0x1061   :  { %7620 = shalt.err (!%p7617_p11)
}
0x1062   :  { %6172 = dma.vmem_to_hbm [thread:$0]  %s6167_s24, 256, %s8964_s9, [#allocation19], %s7674_s20, %s7674_s20, %s7675_s21  }
0x1063   :  { %s7677_s8 = smov [#allocation17]  }
0x1064   :  { %s6142_s28 = sshll.u32 %s7677_s8, 4  ;;  %s6143_s28 = int_to_ptr.vmem [resolvable:$true] %s6142_s28 }
0x1065   :  { %s7629_s9 = scalar_lea.vmem %s6143_s28, 1024  ;;  %p7634_p13 = scmp.lt.s32.totalorder %s6143_s28, %s6143_s28 }
0x1066   :  { %p7630_p12 = scmp.ne.s32.totalorder %s6143_s28, %s7629_s9  ;;  %p7635_p0 = scmp.lt.s32.totalorder %s7629_s9, %s7629_s9 }
0x1068   :  { %p7636_p1 = por %p7635_p0, %p7634_p13 }
0x106a   :  { %p7637_p2 = pnand %p7636_p1, %p7630_p12 }
0x1114   :  { %v6866_v24 = vpop.f32.mrf.mxu0 }
0x1115   :  { %v6123_v42 = vadd.f32 %v6866_v24, %v8925_v61 }
0x1116   :  { %v6114_v33 = vpop.f32.mrf.mxu0 }
0x1117   :  { %6135 = vst [vmem:[#allocation17 + $0x30] sm:$0xff] %v6123_v42  ;;  %v6115_v31 = vadd.f32 %v8925_v61, %v6114_v33 }
0x1118   :  { %v6867_v53 = vpop.f32.mrf.mxu0 }
0x1119   :  { %6133 = vst [vmem:[#allocation17 + $0x20] sm:$0xff] %v6115_v31  ;;  %v6126_v10 = vadd.f32 %v6867_v53, %v8925_v61 }
0x111a   :  { %v6117_v30 = vpop.f32.mrf.mxu0 }
0x111b   :  { %6136 = vst [vmem:[#allocation17 + $0x38] sm:$0xff] %v6126_v10  ;;  %v6118_v55 = vadd.f32 %v8925_v61, %v6117_v30 }
0x111d   :  { %6134 = vst [vmem:[#allocation17 + $0x28] sm:$0xff] %v6118_v55 }
0x111e   :  { %7640 = shalt.err (!%p7637_p2)
}
0x111f   :  { %6148 = dma.vmem_to_hbm [thread:$0]  %s6143_s28, 1024, %s8962_s7, [#allocation8], %s7674_s20, %s7674_s20, %s7675_s21  }
0x1120   :  { %7657 = dma.done.wait [#allocation8], 1024  }
0x1121   :  { %7658 = vsyncadd [#allocation8], 4294966272 }
0x1122   :  { %7659 = dma.done.wait [#allocation19], 512  }
0x1123   :  { %7660 = vsyncadd [#allocation19], 4294966784 }
0x1124   :  { %6182 = vsyncpa [#allocation7], 1 }
0x1125   :  { %6183 = vsyncpa [#allocation10], 1 }
0x1126   :  { %6184 = vsyncpa [#allocation13], 1 }
0x1127   :  { %6185 = vsyncpa [#allocation16], 1 }
0x1128   :  { %6186 = vsyncpa [#allocation8], 1 }
0x1129   :  { %6187 = vsyncpa [#allocation19], 1 }

</bundles_post_ra>
